<compile_context>
chip_gen: v7x
topology: tpu7x:2x2x1
jax: 0.10.0
libtpu: 0.0.40
codegen_flags: <defaults>
</compile_context>

<pallas_src>
import jax
import jax.numpy as jnp
from jax.experimental import pallas as pl
from jax.experimental.pallas import tpu as pltpu


def _round_up(v, m):
    return (v + m - 1) // m * m


def _make_fused_kernel(H, W, Cin, Cout, pad_rows, with_time):
    """Fused kernel: conv3x3+bias+ReLU (+time add) -> conv3x3+bias+ReLU.

    Activations live in the row-major (H*W, C) layout.  A 3x3 tap (ky, kx) of the
    zero-row-padded image is simply the (H*W, C) window starting at
    pad_rows + (ky-1)*W + (kx-1); left/right image borders are fixed up by the
    0/1 column masks (rows with x==0 / x==W-1)."""
    HW = H * W

    def conv3x3(padded, w_ref, mask_left, mask_right):
        # padded: (2*pad_rows + HW, C) bf16 value; w_ref: (9, C, Cout) bf16 ref.
        acc = jnp.zeros((HW, Cout), jnp.float32)
        for ky in range(3):
            for kx in range(3):
                start = pad_rows + (ky - 1) * W + (kx - 1)
                v = padded[start:start + HW, :]          # sublane-shifted window
                if kx == 0:
                    v = v * mask_left                    # x==0 has no left neighbour
                elif kx == 2:
                    v = v * mask_right                   # x==W-1 has no right neighbour
                acc = acc + jnp.dot(v, w_ref[ky * 3 + kx],
                                    preferred_element_type=jnp.float32)
        return acc

    def kernel(*refs):
        if with_time:
            (x_ref, w1_ref, b1_ref, ml_ref, mr_ref, te_ref,
             w2_ref, b2_ref, o_ref, xp, hp) = refs
        else:
            (x_ref, w1_ref, b1_ref, ml_ref, mr_ref,
             w2_ref, b2_ref, o_ref, xp, hp) = refs

        mask_left = ml_ref[...]       # (HW, 1) bf16 0/1
        mask_right = mr_ref[...]      # (HW, 1) bf16 0/1

        # ---- stage 1: conv1 (3x3, pad=1) + bias + ReLU (+ time embedding) ----
        # Zero ONLY the halo rows (interior is fully overwritten every step).
        xp[0:pad_rows, :] = jnp.zeros((pad_rows, Cin), xp.dtype)
        xp[pad_rows + HW:, :] = jnp.zeros((pad_rows, Cin), xp.dtype)
        xp[pad_rows:pad_rows + HW, :] = x_ref[0]          # bf16 in, bf16 scratch
        h = conv3x3(xp[...], w1_ref, mask_left, mask_right)      # (HW, Cout) f32
        h = jnp.maximum(h + b1_ref[...], 0.0)
        if with_time:
            h = h + te_ref[0]          # this batch's precomputed (1, Cout) row

        # ---- stage 2: conv2 (3x3, pad=1) + bias + ReLU; h never leaves VMEM ----
        hp[0:pad_rows, :] = jnp.zeros((pad_rows, Cout), hp.dtype)
        hp[pad_rows + HW:, :] = jnp.zeros((pad_rows, Cout), hp.dtype)
        hp[pad_rows:pad_rows + HW, :] = h.astype(hp.dtype)
        out = conv3x3(hp[...], w2_ref, mask_left, mask_right)    # (HW, Cout) f32
        out = jnp.maximum(out + b2_ref[...], 0.0)

        # Same (H*W, Cout) layout as the matmul output: no relayout before the store.
        # (At production Cout (multiple of 128) this store is lane-dense.)
        o_ref[0] = out.astype(o_ref.dtype)

    return kernel


def double_convolution_nhwc(x_flat, H, W, params, t_proj=None):
    """Core entry point. x_flat: (N, H*W, Cin) channel-flattened NHWC activations.
    Returns (N, H*W, Cout) f32 in the SAME layout, so consecutive UNet blocks can
    chain without NCHW<->NHWC transposes."""
    N, HW, Cin = x_flat.shape
    assert HW == H * W
    Cout = params["b1"].shape[-1]
    with_time = t_proj is not None

    pad_rows = _round_up(W + 1, 8)           # zero halo rows (>= W+1, 8-aligned)
    kernel = _make_fused_kernel(H, W, Cin, Cout, pad_rows, with_time)

    x_flat = x_flat.astype(jnp.bfloat16)     # bf16 activations into the MXU

    # Precomputed 0/1 left/right border masks (per output row x-coordinate).
    col = jnp.arange(HW, dtype=jnp.int32) % W
    mask_left = (col != 0).astype(jnp.bfloat16).reshape(HW, 1)
    mask_right = (col != W - 1).astype(jnp.bfloat16).reshape(HW, 1)

    in_specs = [
        pl.BlockSpec((1, HW, Cin), lambda n: (n, 0, 0)),
        pl.BlockSpec((9, Cin, Cout), lambda n: (0, 0, 0)),
        pl.BlockSpec((1, Cout), lambda n: (0, 0)),
        pl.BlockSpec((HW, 1), lambda n: (0, 0)),
        pl.BlockSpec((HW, 1), lambda n: (0, 0)),
    ]
    args = [x_flat, params["w1"], params["b1"], mask_left, mask_right]
    if with_time:
        in_specs.append(pl.BlockSpec((1, 1, Cout), lambda n: (n, 0, 0)))
        args.append(t_proj.reshape(N, 1, Cout).astype(jnp.float32))
    in_specs += [
        pl.BlockSpec((9, Cout, Cout), lambda n: (0, 0, 0)),
        pl.BlockSpec((1, Cout), lambda n: (0, 0)),
    ]
    args += [params["w2"], params["b2"]]

    out = pl.pallas_call(
        kernel,
        out_shape=jax.ShapeDtypeStruct((N, HW, Cout), jnp.float32),
        grid=(N,),
        in_specs=in_specs,
        out_specs=pl.BlockSpec((1, HW, Cout), lambda n: (n, 0, 0)),
        scratch_shapes=[
            pltpu.VMEM((2 * pad_rows + HW, Cin), jnp.bfloat16),   # row-padded input
            pltpu.VMEM((2 * pad_rows + HW, Cout), jnp.bfloat16),  # row-padded h
        ],
        compiler_params=pltpu.CompilerParams(
            dimension_semantics=("parallel",),        # batch across TensorCores
            vmem_limit_bytes=48 * 1024 * 1024,
        ),
    )(*args)
    return out


def double_convolution(x_nchw, params, t_emb=None):
    """PyTorch-parity adapter (NCHW in / NCHW out)."""
    N, Cin, H, W = x_nchw.shape
    Cout = params["b1"].shape[-1]
    x_flat = jnp.transpose(x_nchw, (0, 2, 3, 1)).reshape(N, H * W, Cin)
    t_proj = None
    if t_emb is not None:
        # time_mlp done once in XLA for all N; kernel just adds its own row.
        t_proj = t_emb @ params["wt"] + params["bt"]          # (N, Cout)
    out_flat = double_convolution_nhwc(x_flat, H, W, params, t_proj)
    return jnp.transpose(out_flat.reshape(N, H, W, Cout), (0, 3, 1, 2))


if __name__ == "__main__":
    N, Cin, Cout, H, W, Td = 2, 4, 8, 16, 16, 32

    key = jax.random.PRNGKey(0)
    keys = jax.random.split(key, 8)

    # Deterministic synthetic parameters (PyTorch layouts), then repack.
    x = jax.random.normal(keys[0], (N, Cin, H, W), jnp.float32)
    t_emb = jax.random.normal(keys[1], (N, Td), jnp.float32)
    w1_pt = jax.random.normal(keys[2], (Cout, Cin, 3, 3), jnp.float32) * 0.1   # conv1.weight
    b1 = jax.random.normal(keys[3], (Cout,), jnp.float32) * 0.1                # conv1.bias
    w2_pt = jax.random.normal(keys[4], (Cout, Cout, 3, 3), jnp.float32) * 0.1  # conv2.weight
    b2 = jax.random.normal(keys[5], (Cout,), jnp.float32) * 0.1                # conv2.bias
    wt_pt = jax.random.normal(keys[6], (Cout, Td), jnp.float32) * 0.1          # time_mlp.weight
    bt = jax.random.normal(keys[7], (Cout,), jnp.float32) * 0.1                # time_mlp.bias

    params = {
        # (Cout, Cin, 3, 3) -> (ky, kx, cin, cout) -> (9, Cin, Cout), tap-major, bf16.
        "w1": jnp.transpose(w1_pt, (2, 3, 1, 0)).reshape(9, Cin, Cout).astype(jnp.bfloat16),
        "b1": b1.reshape(1, Cout),
        "w2": jnp.transpose(w2_pt, (2, 3, 1, 0)).reshape(9, Cout, Cout).astype(jnp.bfloat16),
        "b2": b2.reshape(1, Cout),
        "wt": jnp.transpose(wt_pt, (1, 0)),   # (Td, Cout), f32 (used in wrapper GEMM)
        "bt": bt.reshape(1, Cout),
    }

    out = jax.block_until_ready(double_convolution(x, params, t_emb))
    assert out.shape == (N, Cout, H, W)

    # Pure-JAX f32 reference (NCHW, matches PyTorch semantics).  bf16 activations
    # and weights in the kernel (f32 accumulate) loosen the tolerance.
    def reference(x, t_emb):
        dn = ("NCHW", "OIHW", "NCHW")
        h = jax.lax.conv_general_dilated(
            x, w1_pt, (1, 1), ((1, 1), (1, 1)), dimension_numbers=dn)
        h = h + b1[None, :, None, None]
        h = jnp.maximum(h, 0.0)
        te = t_emb @ wt_pt.T + bt
        h = h + te[:, :, None, None]
        h = jax.lax.conv_general_dilated(
            h, w2_pt, (1, 1), ((1, 1), (1, 1)), dimension_numbers=dn)
        h = h + b2[None, :, None, None]
        return jnp.maximum(h, 0.0)

    ref_out = reference(x, t_emb)
    assert jnp.allclose(out, ref_out, atol=3e-2, rtol=3e-2), "mismatch vs reference"

    print("KERNEL_OK")
</pallas_src>

<mosaic_0001>
module attributes {stable_mosaic.version = 11 : i64} {
  func.func @kernel(%arg0: i32, %arg1: memref<1x256x4xbf16, #tpu.memory_space<vmem>>, %arg2: memref<9x4x8xbf16, #tpu.memory_space<vmem>>, %arg3: memref<1x8xf32, #tpu.memory_space<vmem>>, %arg4: memref<256x1xbf16, #tpu.memory_space<vmem>>, %arg5: memref<256x1xbf16, #tpu.memory_space<vmem>>, %arg6: memref<1x1x8xf32, #tpu.memory_space<vmem>>, %arg7: memref<9x8x8xbf16, #tpu.memory_space<vmem>>, %arg8: memref<1x8xf32, #tpu.memory_space<vmem>>, %arg9: memref<1x256x8xf32, #tpu.memory_space<vmem>>, %arg10: memref<304x4xbf16, #tpu.memory_space<vmem>>, %arg11: memref<304x8xbf16, #tpu.memory_space<vmem>>) attributes {dimension_semantics = [#tpu.dimension_semantics<parallel>], iteration_bounds = array<i64: 2>, scalar_prefetch = 0 : i64, scratch_operands = 2 : i64, tpu.core_type = #tpu.core_type<tc>, window_params = [{transform_indices = @transform_0, window_bounds = array<i64: 1, 256, 4>}, {pipeline_mode = #tpu.pipeline_mode<synchronous>, transform_indices = @transform_1, window_bounds = array<i64: 9, 4, 8>}, {pipeline_mode = #tpu.pipeline_mode<synchronous>, transform_indices = @transform_2, window_bounds = array<i64: 1, 8>}, {pipeline_mode = #tpu.pipeline_mode<synchronous>, transform_indices = @transform_3, window_bounds = array<i64: 256, 1>}, {pipeline_mode = #tpu.pipeline_mode<synchronous>, transform_indices = @transform_4, window_bounds = array<i64: 256, 1>}, {transform_indices = @transform_5, window_bounds = array<i64: 1, 1, 8>}, {pipeline_mode = #tpu.pipeline_mode<synchronous>, transform_indices = @transform_6, window_bounds = array<i64: 9, 8, 8>}, {pipeline_mode = #tpu.pipeline_mode<synchronous>, transform_indices = @transform_7, window_bounds = array<i64: 1, 8>}, {transform_indices = @transform_8, window_bounds = array<i64: 1, 256, 8>}]} {
    %c0 = arith.constant 0 : index
    %c0_0 = arith.constant 0 : index
    %0 = vector.load %arg4[%c0, %c0_0] : memref<256x1xbf16, #tpu.memory_space<vmem>>, vector<256x1xbf16>
    %c0_1 = arith.constant 0 : index
    %c0_2 = arith.constant 0 : index
    %1 = vector.load %arg5[%c0_1, %c0_2] : memref<256x1xbf16, #tpu.memory_space<vmem>>, vector<256x1xbf16>
    %cst = arith.constant 0.000000e+00 : bf16
    %2 = vector.broadcast %cst : bf16 to vector<24x4xbf16>
    %c0_3 = arith.constant 0 : index
    %c0_4 = arith.constant 0 : index
    %3 = vector.load %arg10[%c0_3, %c0_4] : memref<304x4xbf16, #tpu.memory_space<vmem>>, vector<24x4xbf16>
    tpu.vector_store %arg10[%c0_3, %c0_4], %2 {strides = array<i32>} : memref<304x4xbf16, #tpu.memory_space<vmem>>, vector<24x4xbf16>,
    %cst_5 = arith.constant 0.000000e+00 : bf16
    %4 = vector.broadcast %cst_5 : bf16 to vector<24x4xbf16>
    %c280 = arith.constant 280 : index
    %c0_6 = arith.constant 0 : index
    %5 = vector.load %arg10[%c280, %c0_6] : memref<304x4xbf16, #tpu.memory_space<vmem>>, vector<24x4xbf16>
    tpu.vector_store %arg10[%c280, %c0_6], %4 {strides = array<i32>} : memref<304x4xbf16, #tpu.memory_space<vmem>>, vector<24x4xbf16>,
    %c0_7 = arith.constant 0 : index
    %c0_8 = arith.constant 0 : index
    %c0_9 = arith.constant 0 : index
    %6 = vector.load %arg1[%c0_7, %c0_8, %c0_9] : memref<1x256x4xbf16, #tpu.memory_space<vmem>>, vector<1x256x4xbf16>
    %7 = vector.shape_cast %6 : vector<1x256x4xbf16> to vector<256x4xbf16>
    %c24 = arith.constant 24 : index
    %c0_10 = arith.constant 0 : index
    %8 = vector.load %arg10[%c24, %c0_10] : memref<304x4xbf16, #tpu.memory_space<vmem>>, vector<256x4xbf16>
    tpu.vector_store %arg10[%c24, %c0_10], %7 {strides = array<i32>} : memref<304x4xbf16, #tpu.memory_space<vmem>>, vector<256x4xbf16>,
    %c0_11 = arith.constant 0 : index
    %c0_12 = arith.constant 0 : index
    %9 = vector.load %arg10[%c0_11, %c0_12] : memref<304x4xbf16, #tpu.memory_space<vmem>>, vector<304x4xbf16>
    %cst_13 = arith.constant 0.000000e+00 : f32
    %10 = vector.broadcast %cst_13 : f32 to vector<256x8xf32>
    %11 = vector.extract_strided_slice %9 {offsets = [7, 0], sizes = [256, 4], strides = [1, 1]} : vector<304x4xbf16> to vector<256x4xbf16>
    %12 = vector.broadcast %0 : vector<256x1xbf16> to vector<256x4xbf16>
    %13 = arith.mulf %11, %12 : vector<256x4xbf16>
    %c0_14 = arith.constant 0 : index
    %c0_15 = arith.constant 0 : index
    %c0_16 = arith.constant 0 : index
    %14 = vector.load %arg2[%c0_14, %c0_15, %c0_16] : memref<9x4x8xbf16, #tpu.memory_space<vmem>>, vector<1x4x8xbf16>
    %15 = vector.shape_cast %14 : vector<1x4x8xbf16> to vector<4x8xbf16>
    %cst_17 = arith.constant dense<0.000000e+00> : vector<256x8xf32>
    %16 = tpu.matmul %13, %15, %cst_17 {dimension_numbers = #tpu.dot_dimension_numbers<[1], [0], [0], [1], [0, 0, 1, 1], [], []>} : vector<256x4xbf16>, vector<4x8xbf16>, vector<256x8xf32> -> vector<256x8xf32>
    %17 = arith.addf %10, %16 : vector<256x8xf32>
    %18 = vector.extract_strided_slice %9 {offsets = [8, 0], sizes = [256, 4], strides = [1, 1]} : vector<304x4xbf16> to vector<256x4xbf16>
    %c1 = arith.constant 1 : index
    %c0_18 = arith.constant 0 : index
    %c0_19 = arith.constant 0 : index
    %19 = vector.load %arg2[%c1, %c0_18, %c0_19] : memref<9x4x8xbf16, #tpu.memory_space<vmem>>, vector<1x4x8xbf16>
    %20 = vector.shape_cast %19 : vector<1x4x8xbf16> to vector<4x8xbf16>
    %cst_20 = arith.constant dense<0.000000e+00> : vector<256x8xf32>
    %21 = tpu.matmul %18, %20, %cst_20 {dimension_numbers = #tpu.dot_dimension_numbers<[1], [0], [0], [1], [0, 0, 1, 1], [], []>} : vector<256x4xbf16>, vector<4x8xbf16>, vector<256x8xf32> -> vector<256x8xf32>
    %22 = arith.addf %17, %21 : vector<256x8xf32>
    %23 = vector.extract_strided_slice %9 {offsets = [9, 0], sizes = [256, 4], strides = [1, 1]} : vector<304x4xbf16> to vector<256x4xbf16>
    %24 = vector.broadcast %1 : vector<256x1xbf16> to vector<256x4xbf16>
    %25 = arith.mulf %23, %24 : vector<256x4xbf16>
    %c2 = arith.constant 2 : index
    %c0_21 = arith.constant 0 : index
    %c0_22 = arith.constant 0 : index
    %26 = vector.load %arg2[%c2, %c0_21, %c0_22] : memref<9x4x8xbf16, #tpu.memory_space<vmem>>, vector<1x4x8xbf16>
    %27 = vector.shape_cast %26 : vector<1x4x8xbf16> to vector<4x8xbf16>
    %cst_23 = arith.constant dense<0.000000e+00> : vector<256x8xf32>
    %28 = tpu.matmul %25, %27, %cst_23 {dimension_numbers = #tpu.dot_dimension_numbers<[1], [0], [0], [1], [0, 0, 1, 1], [], []>} : vector<256x4xbf16>, vector<4x8xbf16>, vector<256x8xf32> -> vector<256x8xf32>
    %29 = arith.addf %22, %28 : vector<256x8xf32>
    %30 = vector.extract_strided_slice %9 {offsets = [23, 0], sizes = [256, 4], strides = [1, 1]} : vector<304x4xbf16> to vector<256x4xbf16>
    %31 = vector.broadcast %0 : vector<256x1xbf16> to vector<256x4xbf16>
    %32 = arith.mulf %30, %31 : vector<256x4xbf16>
    %c3 = arith.constant 3 : index
    %c0_24 = arith.constant 0 : index
    %c0_25 = arith.constant 0 : index
    %33 = vector.load %arg2[%c3, %c0_24, %c0_25] : memref<9x4x8xbf16, #tpu.memory_space<vmem>>, vector<1x4x8xbf16>
    %34 = vector.shape_cast %33 : vector<1x4x8xbf16> to vector<4x8xbf16>
    %cst_26 = arith.constant dense<0.000000e+00> : vector<256x8xf32>
    %35 = tpu.matmul %32, %34, %cst_26 {dimension_numbers = #tpu.dot_dimension_numbers<[1], [0], [0], [1], [0, 0, 1, 1], [], []>} : vector<256x4xbf16>, vector<4x8xbf16>, vector<256x8xf32> -> vector<256x8xf32>
    %36 = arith.addf %29, %35 : vector<256x8xf32>
    %37 = vector.extract_strided_slice %9 {offsets = [24, 0], sizes = [256, 4], strides = [1, 1]} : vector<304x4xbf16> to vector<256x4xbf16>
    %c4 = arith.constant 4 : index
    %c0_27 = arith.constant 0 : index
    %c0_28 = arith.constant 0 : index
    %38 = vector.load %arg2[%c4, %c0_27, %c0_28] : memref<9x4x8xbf16, #tpu.memory_space<vmem>>, vector<1x4x8xbf16>
    %39 = vector.shape_cast %38 : vector<1x4x8xbf16> to vector<4x8xbf16>
    %cst_29 = arith.constant dense<0.000000e+00> : vector<256x8xf32>
    %40 = tpu.matmul %37, %39, %cst_29 {dimension_numbers = #tpu.dot_dimension_numbers<[1], [0], [0], [1], [0, 0, 1, 1], [], []>} : vector<256x4xbf16>, vector<4x8xbf16>, vector<256x8xf32> -> vector<256x8xf32>
    %41 = arith.addf %36, %40 : vector<256x8xf32>
    %42 = vector.extract_strided_slice %9 {offsets = [25, 0], sizes = [256, 4], strides = [1, 1]} : vector<304x4xbf16> to vector<256x4xbf16>
    %43 = vector.broadcast %1 : vector<256x1xbf16> to vector<256x4xbf16>
    %44 = arith.mulf %42, %43 : vector<256x4xbf16>
    %c5 = arith.constant 5 : index
    %c0_30 = arith.constant 0 : index
    %c0_31 = arith.constant 0 : index
    %45 = vector.load %arg2[%c5, %c0_30, %c0_31] : memref<9x4x8xbf16, #tpu.memory_space<vmem>>, vector<1x4x8xbf16>
    %46 = vector.shape_cast %45 : vector<1x4x8xbf16> to vector<4x8xbf16>
    %cst_32 = arith.constant dense<0.000000e+00> : vector<256x8xf32>
    %47 = tpu.matmul %44, %46, %cst_32 {dimension_numbers = #tpu.dot_dimension_numbers<[1], [0], [0], [1], [0, 0, 1, 1], [], []>} : vector<256x4xbf16>, vector<4x8xbf16>, vector<256x8xf32> -> vector<256x8xf32>
    %48 = arith.addf %41, %47 : vector<256x8xf32>
    %49 = vector.extract_strided_slice %9 {offsets = [39, 0], sizes = [256, 4], strides = [1, 1]} : vector<304x4xbf16> to vector<256x4xbf16>
    %50 = vector.broadcast %0 : vector<256x1xbf16> to vector<256x4xbf16>
    %51 = arith.mulf %49, %50 : vector<256x4xbf16>
    %c6 = arith.constant 6 : index
    %c0_33 = arith.constant 0 : index
    %c0_34 = arith.constant 0 : index
    %52 = vector.load %arg2[%c6, %c0_33, %c0_34] : memref<9x4x8xbf16, #tpu.memory_space<vmem>>, vector<1x4x8xbf16>
    %53 = vector.shape_cast %52 : vector<1x4x8xbf16> to vector<4x8xbf16>
    %cst_35 = arith.constant dense<0.000000e+00> : vector<256x8xf32>
    %54 = tpu.matmul %51, %53, %cst_35 {dimension_numbers = #tpu.dot_dimension_numbers<[1], [0], [0], [1], [0, 0, 1, 1], [], []>} : vector<256x4xbf16>, vector<4x8xbf16>, vector<256x8xf32> -> vector<256x8xf32>
    %55 = arith.addf %48, %54 : vector<256x8xf32>
    %56 = vector.extract_strided_slice %9 {offsets = [40, 0], sizes = [256, 4], strides = [1, 1]} : vector<304x4xbf16> to vector<256x4xbf16>
    %c7 = arith.constant 7 : index
    %c0_36 = arith.constant 0 : index
    %c0_37 = arith.constant 0 : index
    %57 = vector.load %arg2[%c7, %c0_36, %c0_37] : memref<9x4x8xbf16, #tpu.memory_space<vmem>>, vector<1x4x8xbf16>
    %58 = vector.shape_cast %57 : vector<1x4x8xbf16> to vector<4x8xbf16>
    %cst_38 = arith.constant dense<0.000000e+00> : vector<256x8xf32>
    %59 = tpu.matmul %56, %58, %cst_38 {dimension_numbers = #tpu.dot_dimension_numbers<[1], [0], [0], [1], [0, 0, 1, 1], [], []>} : vector<256x4xbf16>, vector<4x8xbf16>, vector<256x8xf32> -> vector<256x8xf32>
    %60 = arith.addf %55, %59 : vector<256x8xf32>
    %61 = vector.extract_strided_slice %9 {offsets = [41, 0], sizes = [256, 4], strides = [1, 1]} : vector<304x4xbf16> to vector<256x4xbf16>
    %62 = vector.broadcast %1 : vector<256x1xbf16> to vector<256x4xbf16>
    %63 = arith.mulf %61, %62 : vector<256x4xbf16>
    %c8 = arith.constant 8 : index
    %c0_39 = arith.constant 0 : index
    %c0_40 = arith.constant 0 : index
    %64 = vector.load %arg2[%c8, %c0_39, %c0_40] : memref<9x4x8xbf16, #tpu.memory_space<vmem>>, vector<1x4x8xbf16>
    %65 = vector.shape_cast %64 : vector<1x4x8xbf16> to vector<4x8xbf16>
    %cst_41 = arith.constant dense<0.000000e+00> : vector<256x8xf32>
    %66 = tpu.matmul %63, %65, %cst_41 {dimension_numbers = #tpu.dot_dimension_numbers<[1], [0], [0], [1], [0, 0, 1, 1], [], []>} : vector<256x4xbf16>, vector<4x8xbf16>, vector<256x8xf32> -> vector<256x8xf32>
    %67 = arith.addf %60, %66 : vector<256x8xf32>
    %c0_42 = arith.constant 0 : index
    %c0_43 = arith.constant 0 : index
    %68 = vector.load %arg3[%c0_42, %c0_43] : memref<1x8xf32, #tpu.memory_space<vmem>>, vector<1x8xf32>
    %69 = vector.broadcast %68 : vector<1x8xf32> to vector<256x8xf32>
    %70 = arith.addf %67, %69 : vector<256x8xf32>
    %cst_44 = arith.constant 0.000000e+00 : f32
    %71 = vector.broadcast %cst_44 : f32 to vector<256x8xf32>
    %72 = arith.maximumf %70, %71 : vector<256x8xf32>
    %c0_45 = arith.constant 0 : index
    %c0_46 = arith.constant 0 : index
    %c0_47 = arith.constant 0 : index
    %73 = vector.load %arg6[%c0_45, %c0_46, %c0_47] : memref<1x1x8xf32, #tpu.memory_space<vmem>>, vector<1x1x8xf32>
    %74 = vector.shape_cast %73 : vector<1x1x8xf32> to vector<1x8xf32>
    %75 = vector.broadcast %74 : vector<1x8xf32> to vector<256x8xf32>
    %76 = arith.addf %72, %75 : vector<256x8xf32>
    %cst_48 = arith.constant 0.000000e+00 : bf16
    %77 = vector.broadcast %cst_48 : bf16 to vector<24x8xbf16>
    %c0_49 = arith.constant 0 : index
    %c0_50 = arith.constant 0 : index
    %78 = vector.load %arg11[%c0_49, %c0_50] : memref<304x8xbf16, #tpu.memory_space<vmem>>, vector<24x8xbf16>
    tpu.vector_store %arg11[%c0_49, %c0_50], %77 {strides = array<i32>} : memref<304x8xbf16, #tpu.memory_space<vmem>>, vector<24x8xbf16>,
    %cst_51 = arith.constant 0.000000e+00 : bf16
    %79 = vector.broadcast %cst_51 : bf16 to vector<24x8xbf16>
    %c280_52 = arith.constant 280 : index
    %c0_53 = arith.constant 0 : index
    %80 = vector.load %arg11[%c280_52, %c0_53] : memref<304x8xbf16, #tpu.memory_space<vmem>>, vector<24x8xbf16>
    tpu.vector_store %arg11[%c280_52, %c0_53], %79 {strides = array<i32>} : memref<304x8xbf16, #tpu.memory_space<vmem>>, vector<24x8xbf16>,
    %81 = arith.truncf %76 : vector<256x8xf32> to vector<256x8xbf16>
    %c24_54 = arith.constant 24 : index
    %c0_55 = arith.constant 0 : index
    %82 = vector.load %arg11[%c24_54, %c0_55] : memref<304x8xbf16, #tpu.memory_space<vmem>>, vector<256x8xbf16>
    tpu.vector_store %arg11[%c24_54, %c0_55], %81 {strides = array<i32>} : memref<304x8xbf16, #tpu.memory_space<vmem>>, vector<256x8xbf16>,
    %c0_56 = arith.constant 0 : index
    %c0_57 = arith.constant 0 : index
    %83 = vector.load %arg11[%c0_56, %c0_57] : memref<304x8xbf16, #tpu.memory_space<vmem>>, vector<304x8xbf16>
    %cst_58 = arith.constant 0.000000e+00 : f32
    %84 = vector.broadcast %cst_58 : f32 to vector<256x8xf32>
    %85 = vector.extract_strided_slice %83 {offsets = [7, 0], sizes = [256, 8], strides = [1, 1]} : vector<304x8xbf16> to vector<256x8xbf16>
    %86 = vector.broadcast %0 : vector<256x1xbf16> to vector<256x8xbf16>
    %87 = arith.mulf %85, %86 : vector<256x8xbf16>
    %c0_59 = arith.constant 0 : index
    %c0_60 = arith.constant 0 : index
    %c0_61 = arith.constant 0 : index
    %88 = vector.load %arg7[%c0_59, %c0_60, %c0_61] : memref<9x8x8xbf16, #tpu.memory_space<vmem>>, vector<1x8x8xbf16>
    %89 = vector.shape_cast %88 : vector<1x8x8xbf16> to vector<8x8xbf16>
    %cst_62 = arith.constant dense<0.000000e+00> : vector<256x8xf32>
    %90 = tpu.matmul %87, %89, %cst_62 {dimension_numbers = #tpu.dot_dimension_numbers<[1], [0], [0], [1], [0, 0, 1, 1], [], []>} : vector<256x8xbf16>, vector<8x8xbf16>, vector<256x8xf32> -> vector<256x8xf32>
    %91 = arith.addf %84, %90 : vector<256x8xf32>
    %92 = vector.extract_strided_slice %83 {offsets = [8, 0], sizes = [256, 8], strides = [1, 1]} : vector<304x8xbf16> to vector<256x8xbf16>
    %c1_63 = arith.constant 1 : index
    %c0_64 = arith.constant 0 : index
    %c0_65 = arith.constant 0 : index
    %93 = vector.load %arg7[%c1_63, %c0_64, %c0_65] : memref<9x8x8xbf16, #tpu.memory_space<vmem>>, vector<1x8x8xbf16>
    %94 = vector.shape_cast %93 : vector<1x8x8xbf16> to vector<8x8xbf16>
    %cst_66 = arith.constant dense<0.000000e+00> : vector<256x8xf32>
    %95 = tpu.matmul %92, %94, %cst_66 {dimension_numbers = #tpu.dot_dimension_numbers<[1], [0], [0], [1], [0, 0, 1, 1], [], []>} : vector<256x8xbf16>, vector<8x8xbf16>, vector<256x8xf32> -> vector<256x8xf32>
    %96 = arith.addf %91, %95 : vector<256x8xf32>
    %97 = vector.extract_strided_slice %83 {offsets = [9, 0], sizes = [256, 8], strides = [1, 1]} : vector<304x8xbf16> to vector<256x8xbf16>
    %98 = vector.broadcast %1 : vector<256x1xbf16> to vector<256x8xbf16>
    %99 = arith.mulf %97, %98 : vector<256x8xbf16>
    %c2_67 = arith.constant 2 : index
    %c0_68 = arith.constant 0 : index
    %c0_69 = arith.constant 0 : index
    %100 = vector.load %arg7[%c2_67, %c0_68, %c0_69] : memref<9x8x8xbf16, #tpu.memory_space<vmem>>, vector<1x8x8xbf16>
    %101 = vector.shape_cast %100 : vector<1x8x8xbf16> to vector<8x8xbf16>
    %cst_70 = arith.constant dense<0.000000e+00> : vector<256x8xf32>
    %102 = tpu.matmul %99, %101, %cst_70 {dimension_numbers = #tpu.dot_dimension_numbers<[1], [0], [0], [1], [0, 0, 1, 1], [], []>} : vector<256x8xbf16>, vector<8x8xbf16>, vector<256x8xf32> -> vector<256x8xf32>
    %103 = arith.addf %96, %102 : vector<256x8xf32>
    %104 = vector.extract_strided_slice %83 {offsets = [23, 0], sizes = [256, 8], strides = [1, 1]} : vector<304x8xbf16> to vector<256x8xbf16>
    %105 = vector.broadcast %0 : vector<256x1xbf16> to vector<256x8xbf16>
    %106 = arith.mulf %104, %105 : vector<256x8xbf16>
    %c3_71 = arith.constant 3 : index
    %c0_72 = arith.constant 0 : index
    %c0_73 = arith.constant 0 : index
    %107 = vector.load %arg7[%c3_71, %c0_72, %c0_73] : memref<9x8x8xbf16, #tpu.memory_space<vmem>>, vector<1x8x8xbf16>
    %108 = vector.shape_cast %107 : vector<1x8x8xbf16> to vector<8x8xbf16>
    %cst_74 = arith.constant dense<0.000000e+00> : vector<256x8xf32>
    %109 = tpu.matmul %106, %108, %cst_74 {dimension_numbers = #tpu.dot_dimension_numbers<[1], [0], [0], [1], [0, 0, 1, 1], [], []>} : vector<256x8xbf16>, vector<8x8xbf16>, vector<256x8xf32> -> vector<256x8xf32>
    %110 = arith.addf %103, %109 : vector<256x8xf32>
    %111 = vector.extract_strided_slice %83 {offsets = [24, 0], sizes = [256, 8], strides = [1, 1]} : vector<304x8xbf16> to vector<256x8xbf16>
    %c4_75 = arith.constant 4 : index
    %c0_76 = arith.constant 0 : index
    %c0_77 = arith.constant 0 : index
    %112 = vector.load %arg7[%c4_75, %c0_76, %c0_77] : memref<9x8x8xbf16, #tpu.memory_space<vmem>>, vector<1x8x8xbf16>
    %113 = vector.shape_cast %112 : vector<1x8x8xbf16> to vector<8x8xbf16>
    %cst_78 = arith.constant dense<0.000000e+00> : vector<256x8xf32>
    %114 = tpu.matmul %111, %113, %cst_78 {dimension_numbers = #tpu.dot_dimension_numbers<[1], [0], [0], [1], [0, 0, 1, 1], [], []>} : vector<256x8xbf16>, vector<8x8xbf16>, vector<256x8xf32> -> vector<256x8xf32>
    %115 = arith.addf %110, %114 : vector<256x8xf32>
    %116 = vector.extract_strided_slice %83 {offsets = [25, 0], sizes = [256, 8], strides = [1, 1]} : vector<304x8xbf16> to vector<256x8xbf16>
    %117 = vector.broadcast %1 : vector<256x1xbf16> to vector<256x8xbf16>
    %118 = arith.mulf %116, %117 : vector<256x8xbf16>
    %c5_79 = arith.constant 5 : index
    %c0_80 = arith.constant 0 : index
    %c0_81 = arith.constant 0 : index
    %119 = vector.load %arg7[%c5_79, %c0_80, %c0_81] : memref<9x8x8xbf16, #tpu.memory_space<vmem>>, vector<1x8x8xbf16>
    %120 = vector.shape_cast %119 : vector<1x8x8xbf16> to vector<8x8xbf16>
    %cst_82 = arith.constant dense<0.000000e+00> : vector<256x8xf32>
    %121 = tpu.matmul %118, %120, %cst_82 {dimension_numbers = #tpu.dot_dimension_numbers<[1], [0], [0], [1], [0, 0, 1, 1], [], []>} : vector<256x8xbf16>, vector<8x8xbf16>, vector<256x8xf32> -> vector<256x8xf32>
    %122 = arith.addf %115, %121 : vector<256x8xf32>
    %123 = vector.extract_strided_slice %83 {offsets = [39, 0], sizes = [256, 8], strides = [1, 1]} : vector<304x8xbf16> to vector<256x8xbf16>
    %124 = vector.broadcast %0 : vector<256x1xbf16> to vector<256x8xbf16>
    %125 = arith.mulf %123, %124 : vector<256x8xbf16>
    %c6_83 = arith.constant 6 : index
    %c0_84 = arith.constant 0 : index
    %c0_85 = arith.constant 0 : index
    %126 = vector.load %arg7[%c6_83, %c0_84, %c0_85] : memref<9x8x8xbf16, #tpu.memory_space<vmem>>, vector<1x8x8xbf16>
    %127 = vector.shape_cast %126 : vector<1x8x8xbf16> to vector<8x8xbf16>
    %cst_86 = arith.constant dense<0.000000e+00> : vector<256x8xf32>
    %128 = tpu.matmul %125, %127, %cst_86 {dimension_numbers = #tpu.dot_dimension_numbers<[1], [0], [0], [1], [0, 0, 1, 1], [], []>} : vector<256x8xbf16>, vector<8x8xbf16>, vector<256x8xf32> -> vector<256x8xf32>
    %129 = arith.addf %122, %128 : vector<256x8xf32>
    %130 = vector.extract_strided_slice %83 {offsets = [40, 0], sizes = [256, 8], strides = [1, 1]} : vector<304x8xbf16> to vector<256x8xbf16>
    %c7_87 = arith.constant 7 : index
    %c0_88 = arith.constant 0 : index
    %c0_89 = arith.constant 0 : index
    %131 = vector.load %arg7[%c7_87, %c0_88, %c0_89] : memref<9x8x8xbf16, #tpu.memory_space<vmem>>, vector<1x8x8xbf16>
    %132 = vector.shape_cast %131 : vector<1x8x8xbf16> to vector<8x8xbf16>
    %cst_90 = arith.constant dense<0.000000e+00> : vector<256x8xf32>
    %133 = tpu.matmul %130, %132, %cst_90 {dimension_numbers = #tpu.dot_dimension_numbers<[1], [0], [0], [1], [0, 0, 1, 1], [], []>} : vector<256x8xbf16>, vector<8x8xbf16>, vector<256x8xf32> -> vector<256x8xf32>
    %134 = arith.addf %129, %133 : vector<256x8xf32>
    %135 = vector.extract_strided_slice %83 {offsets = [41, 0], sizes = [256, 8], strides = [1, 1]} : vector<304x8xbf16> to vector<256x8xbf16>
    %136 = vector.broadcast %1 : vector<256x1xbf16> to vector<256x8xbf16>
    %137 = arith.mulf %135, %136 : vector<256x8xbf16>
    %c8_91 = arith.constant 8 : index
    %c0_92 = arith.constant 0 : index
    %c0_93 = arith.constant 0 : index
    %138 = vector.load %arg7[%c8_91, %c0_92, %c0_93] : memref<9x8x8xbf16, #tpu.memory_space<vmem>>, vector<1x8x8xbf16>
    %139 = vector.shape_cast %138 : vector<1x8x8xbf16> to vector<8x8xbf16>
    %cst_94 = arith.constant dense<0.000000e+00> : vector<256x8xf32>
    %140 = tpu.matmul %137, %139, %cst_94 {dimension_numbers = #tpu.dot_dimension_numbers<[1], [0], [0], [1], [0, 0, 1, 1], [], []>} : vector<256x8xbf16>, vector<8x8xbf16>, vector<256x8xf32> -> vector<256x8xf32>
    %141 = arith.addf %134, %140 : vector<256x8xf32>
    %c0_95 = arith.constant 0 : index
    %c0_96 = arith.constant 0 : index
    %142 = vector.load %arg8[%c0_95, %c0_96] : memref<1x8xf32, #tpu.memory_space<vmem>>, vector<1x8xf32>
    %143 = vector.broadcast %142 : vector<1x8xf32> to vector<256x8xf32>
    %144 = arith.addf %141, %143 : vector<256x8xf32>
    %cst_97 = arith.constant 0.000000e+00 : f32
    %145 = vector.broadcast %cst_97 : f32 to vector<256x8xf32>
    %146 = arith.maximumf %144, %145 : vector<256x8xf32>
    %c0_98 = arith.constant 0 : index
    %c0_99 = arith.constant 0 : index
    %c0_100 = arith.constant 0 : index
    %147 = vector.load %arg9[%c0_98, %c0_99, %c0_100] : memref<1x256x8xf32, #tpu.memory_space<vmem>>, vector<1x256x8xf32>
    %148 = vector.shape_cast %147 : vector<1x256x8xf32> to vector<256x8xf32>
    %149 = vector.shape_cast %146 : vector<256x8xf32> to vector<1x256x8xf32>
    tpu.vector_store %arg9[%c0_98, %c0_99, %c0_100], %149 {strides = array<i32>} : memref<1x256x8xf32, #tpu.memory_space<vmem>>, vector<1x256x8xf32>,
    return
  }
  func.func @transform_0(%arg0: i32) -> (i32, i32, i32) {
    %c0_i32 = arith.constant 0 : i32
    %c0_i32_0 = arith.constant 0 : i32
    %c0_i32_1 = arith.constant 0 : i32
    return %arg0, %c0_i32, %c0_i32_0 : i32, i32, i32
  }
  func.func @transform_1(%arg0: i32) -> (i32, i32, i32) {
    %c0_i32 = arith.constant 0 : i32
    %c0_i32_0 = arith.constant 0 : i32
    %c0_i32_1 = arith.constant 0 : i32
    %c0_i32_2 = arith.constant 0 : i32
    return %c0_i32, %c0_i32_0, %c0_i32_1 : i32, i32, i32
  }
  func.func @transform_2(%arg0: i32) -> (i32, i32) {
    %c0_i32 = arith.constant 0 : i32
    %c0_i32_0 = arith.constant 0 : i32
    %c0_i32_1 = arith.constant 0 : i32
    return %c0_i32, %c0_i32_0 : i32, i32
  }
  func.func @transform_3(%arg0: i32) -> (i32, i32) {
    %c0_i32 = arith.constant 0 : i32
    %c0_i32_0 = arith.constant 0 : i32
    %c0_i32_1 = arith.constant 0 : i32
    return %c0_i32, %c0_i32_0 : i32, i32
  }
  func.func @transform_4(%arg0: i32) -> (i32, i32) {
    %c0_i32 = arith.constant 0 : i32
    %c0_i32_0 = arith.constant 0 : i32
    %c0_i32_1 = arith.constant 0 : i32
    return %c0_i32, %c0_i32_0 : i32, i32
  }
  func.func @transform_5(%arg0: i32) -> (i32, i32, i32) {
    %c0_i32 = arith.constant 0 : i32
    %c0_i32_0 = arith.constant 0 : i32
    %c0_i32_1 = arith.constant 0 : i32
    return %arg0, %c0_i32, %c0_i32_0 : i32, i32, i32
  }
  func.func @transform_6(%arg0: i32) -> (i32, i32, i32) {
    %c0_i32 = arith.constant 0 : i32
    %c0_i32_0 = arith.constant 0 : i32
    %c0_i32_1 = arith.constant 0 : i32
    %c0_i32_2 = arith.constant 0 : i32
    return %c0_i32, %c0_i32_0, %c0_i32_1 : i32, i32, i32
  }
  func.func @transform_7(%arg0: i32) -> (i32, i32) {
    %c0_i32 = arith.constant 0 : i32
    %c0_i32_0 = arith.constant 0 : i32
    %c0_i32_1 = arith.constant 0 : i32
    return %c0_i32, %c0_i32_0 : i32, i32
  }
  func.func @transform_8(%arg0: i32) -> (i32, i32, i32) {
    %c0_i32 = arith.constant 0 : i32
    %c0_i32_0 = arith.constant 0 : i32
    %c0_i32_1 = arith.constant 0 : i32
    return %arg0, %c0_i32, %c0_i32_0 : i32, i32, i32
  }
}

</mosaic_0001>

<bundles_post_ra>
// kernel: tpu_custom_call.1
= control target key start
LH: loop header
LB: loop body
LE: loop exit
PB: predicated region body
PF: predicated region fallthrough
CT: control target
= control target key end

     0   :  { %s10418_s27 = smov 0   ;;  %s12470_s0 = inlined_call_operand.vmem [shape: bf16[2,256,4], index: 0, kind: input, shape index: {}]   ;;  %s12471_s1 = inlined_call_operand.vmem [shape: bf16[9,4,8], index: 1, kind: input, shape index: {}]   ;;  %s12472_s2 = inlined_call_operand.vmem [shape: f32[1,8], index: 2, kind: input, shape index: {}]   ;;  %s12473_s3 = inlined_call_operand.vmem [shape: bf16[256,1], index: 3, kind: input, shape index: {}]   ;;  %s12474_s4 = inlined_call_operand.vmem [shape: bf16[256,1], index: 4, kind: input, shape index: {}]   ;;  %s12475_s5 = inlined_call_operand.vmem [shape: f32[2,1,8], index: 5, kind: input, shape index: {}]   ;;  %s12476_s6 = inlined_call_operand.vmem [shape: bf16[9,8,8], index: 6, kind: input, shape index: {}]   ;;  %s12477_s7 = inlined_call_operand.vmem [shape: f32[1,8], index: 7, kind: input, shape index: {}]   ;;  %s12478_s8 = inlined_call_operand.vmem [shape: f32[2,256,8], index: 8, kind: output, shape index: {}]  }
   0x1 LB: > { %s8469_s28 = sadd.s32 4294967295, %s10369_s27   ;;  %p8473_p0 = scmp.ge.s32.totalorder %s10369_s27, 1  ;;  %s10369_s27 = sphi %s10418_s27, %s18_s27  }
   0x2   : > { %p270_p1 = scmp.lt.s32.totalorder %s10369_s27, 3 }
   0x4   : > { %p271_p2 = pnand %p8473_p0, %p270_p1 }
   0x6   : > { %274 = sbr.rel (%p271_p2) target bundleno = 1653 (0x675), region = 52 }
   0xd   : > { %v323_v0 = vld [vmem:[%s12473_s3 + $0x8] sm:$0xf]  ;;  %v321_v1 = vld [vmem:[%s12473_s3] sm:$0xf]  ;;  %v12480_v2 = vmov 0   ;;  %vm1302_vm0 = vcmask 1041408  }
   0xe   : > { %10297 = vset.pattern.permute.xlu1 %v12480_v2  ;;  %10296 = vset.pattern.permute.xlu0 %v12480_v2  ;;  %v324_v3 = vld [vmem:[%s12473_s3 + $0xc] sm:$0xf]  ;;  %v322_v4 = vld [vmem:[%s12473_s3 + $0x4] sm:$0xf]  ;;  %v326_v5 = vld [vmem:[%s12473_s3 + $0x14] sm:$0xf] }
   0xf   : > { %584 = vperm.xlu1 %10297, %v323_v0   ;;  %560 = vperm.xlu0 %10296, %v321_v1   ;;  %v325_v6 = vld [vmem:[%s12473_s3 + $0x10] sm:$0xf]  ;;  %v328_v7 = vld [vmem:[%s12473_s3 + $0x1c] sm:$0xf]  ;;  %v327_v8 = vld [vmem:[%s12473_s3 + $0x18] sm:$0xf] }
  0x10   : > { %v330_v9 = vld [vmem:[%s12473_s3 + $0x24] sm:$0xf]  ;;  %v329_v10 = vld [vmem:[%s12473_s3 + $0x20] sm:$0xf]  ;;  %p307_p3 = scmp.lt.s32.totalorder %s8469_s28, 1  ;;  %vm385_vm1 = vcmask 31744  }
  0x11   : > { %v8511_v11 = vld [vmem:[%s12471_s1 + $0x2] sm:$0x3]  ;;  %vm387_vm2 = vcmask 27648   ;;  %vm389_vm3 = vcmask 31748   ;;  %386 = vst.msk [vmem:[#allocation2] sm:$0xff] %vm385_vm1, %v12480_v2  ;;  %391 = vst.msk [vmem:[#allocation2 + $0x90] sm:$0xff] %vm385_vm1, %v12480_v2 }
  0x12   : > { %10268 = vmatprep.subr.msk.bf16.mxu0 %vm1302_vm0, %v8511_v11  ;;  %v1304_v12 = vsel %vm1302_vm0, %v8511_v11, 0  ;;  %388 = vst.msk [vmem:[#allocation2 + $0x8] sm:$0xf] %vm387_vm2, %v12480_v2  ;;  %v1200_v13 = vld [vmem:[%s12471_s1] sm:$0x3]  ;;  %s12766_s28 = smov (!%p307_p3, %s8469_s28), 1 }
  0x13   : > { %596 = vperm.xlu1 %10297, %v324_v3   ;;  %572 = vperm.xlu0 %10296, %v322_v4   ;;  %390 = vst.msk [vmem:[#allocation2 + $0x88] sm:$0xf0] %vm389_vm3, %v12480_v2  ;;  %v332_v14 = vld [vmem:[%s12473_s3 + $0x2c] sm:$0xf]  ;;  %v331_v15 = vld [vmem:[%s12473_s3 + $0x28] sm:$0xf] }
  0x14   : > { %9145 = vmatpush3.bf16.msra.mxu0 %v1304_v12  ;;  %s8836_s15 = sshll.u32 %s12766_s28, 7  ;;  %v334_v16 = vld [vmem:[%s12473_s3 + $0x34] sm:$0xf]  ;;  %v333_v17 = vld [vmem:[%s12473_s3 + $0x30] sm:$0xf]  ;;  %vm1220_vm4 = vcmask 1043456  }
  0x15   : > { %10269 = vmatprep.subr.msk.bf16.mxu0 %vm1302_vm0, %v1200_v13  ;;  %s10497_s22 = scalar_lea.vmem %s12470_s0, %s8836_s15  ;;  %v336_v21 = vld [vmem:[%s12473_s3 + $0x3c] sm:$0xf]  ;;  %v335_v22 = vld [vmem:[%s12473_s3 + $0x38] sm:$0xf]  ;;  %v338_v28 = vld [vmem:[%s12473_s3 + $0x44] sm:$0xf] }
  0x16   : > { %v10298_v18 = vld [vmem:[%s10497_s22] ss:$0 sps:$4 sm:$0xff]   ;;  %v10299_v19 = vld [vmem:[%s10497_s22 + $0x7c] ss:$0 sps:$4 sm:$0xff]   ;;  %v10300_v20 = vld [vmem:[%s10497_s22 + $0x4] sm:$0xff]   ;;  %v1669_v45 = vsel %vm1302_vm0, %v1200_v13, 0 }
  0x17   : > { %620 = vperm.xlu1 %10297, %v326_v5   ;;  %608 = vperm.xlu0 %10296, %v325_v6   ;;  %522 = vst.msk [vmem:[#allocation2 + $0x8] sm:$0xf0] %vm389_vm3, %v10298_v18  ;;  %v10301_v24 = vld [vmem:[%s10497_s22 + $0xc] sm:$0xff]   ;;  %v10302_v25 = vld [vmem:[%s10497_s22 + $0x14] sm:$0xff]   ;;  %v10303_v26 = vld [vmem:[%s10497_s22 + $0x1c] sm:$0xff]   ;;  %vm5049_vm7 = vcmask 64512  }
  0x18   : > { %538 = vst.msk [vmem:[#allocation2 + $0x88] sm:$0xf] %vm387_vm2, %v10299_v19  ;;  %v10510_v23 = vld [vmem:[#allocation2] sm:$0xff]  ;;  %v10305_v29 = vld [vmem:[%s10497_s22 + $0x2c] sm:$0xff]   ;;  %v10306_v33 = vld [vmem:[%s10497_s22 + $0x34] sm:$0xff]   ;;  %vm5053_vm8 = vcmask 64516  }
  0x19   : > { %523 = vst.msk [vmem:[#allocation2 + $0x10] sm:$0xff] %vm385_vm1, %v10300_v20  ;;  %524 = vst.msk [vmem:[#allocation2 + $0x18] sm:$0xff] %vm385_vm1, %v10301_v24  ;;  %v10304_v27 = vld [vmem:[%s10497_s22 + $0x24] sm:$0xff]   ;;  %v337_v30 = vld [vmem:[%s12473_s3 + $0x40] sm:$0xf]  ;;  %v1221_v31 = vrot.slane %v10510_v23, 4 }
  0x1a   : > { %525 = vst.msk [vmem:[#allocation2 + $0x20] sm:$0xff] %vm385_vm1, %v10302_v25  ;;  %526 = vst.msk [vmem:[#allocation2 + $0x28] sm:$0xff] %vm385_vm1, %v10303_v26  ;;  %v10307_v35 = vld [vmem:[%s10497_s22 + $0x3c] sm:$0xff]   ;;  %v340_v37 = vld [vmem:[%s12473_s3 + $0x4c] sm:$0xf]  ;;  %vm5051_vm9 = vcmask 60416  }
  0x1b   : > { %644 = vperm.xlu1 %10297, %v328_v7   ;;  %632 = vperm.xlu0 %10296, %v327_v8   ;;  %527 = vst.msk [vmem:[#allocation2 + $0x30] sm:$0xff] %vm385_vm1, %v10304_v27  ;;  %528 = vst.msk [vmem:[#allocation2 + $0x38] sm:$0xff] %vm385_vm1, %v10305_v29  ;;  %v339_v38 = vld [vmem:[%s12473_s3 + $0x48] sm:$0xf]  ;;  %v342_v47 = vld [vmem:[%s12473_s3 + $0x54] sm:$0xf] }
  0x1c   : > { %529 = vst.msk [vmem:[#allocation2 + $0x40] sm:$0xff] %vm385_vm1, %v10306_v33  ;;  %530 = vst.msk [vmem:[#allocation2 + $0x48] sm:$0xff] %vm385_vm1, %v10307_v35  ;;  %v10308_v46 = vld [vmem:[%s10497_s22 + $0x44] sm:$0xff]   ;;  %v341_v48 = vld [vmem:[%s12473_s3 + $0x50] sm:$0xf]  ;;  %s8837_s23 = sshll.u32 %s12766_s28, 8 }
  0x1d   : > { %v10309_v51 = vld [vmem:[%s10497_s22 + $0x4c] sm:$0xff]   ;;  %531 = vst.msk [vmem:[#allocation2 + $0x50] sm:$0xff] %vm385_vm1, %v10308_v46  ;;  %v10310_v53 = vld [vmem:[%s10497_s22 + $0x54] sm:$0xff]   ;;  %v10311_v55 = vld [vmem:[%s10497_s22 + $0x5c] sm:$0xff]   ;;  %vm1022_vm5 = vsmask.f32 3328 }
  0x1e   : > { %v10529_v32 = vld [vmem:[#allocation2 + $0x8] sm:$0xff]  ;;  %532 = vst.msk [vmem:[#allocation2 + $0x58] sm:$0xff] %vm385_vm1, %v10309_v51  ;;  %v344_v56 = vld [vmem:[%s12473_s3 + $0x5c] sm:$0xf]  ;;  %v343_v57 = vld [vmem:[%s12473_s3 + $0x58] sm:$0xf] }
  0x1f   : > { %668 = vperm.xlu1 %10297, %v330_v9   ;;  %656 = vperm.xlu0 %10296, %v329_v10   ;;  %v1222_v34 = vrot.slane %v10529_v32, 4  ;;  %533 = vst.msk [vmem:[#allocation2 + $0x60] sm:$0xff] %vm385_vm1, %v10310_v53  ;;  %v10312_v59 = vld [vmem:[%s10497_s22 + $0x64] sm:$0xff]   ;;  %534 = vst.msk [vmem:[#allocation2 + $0x68] sm:$0xff] %vm385_vm1, %v10311_v55  ;;  %v10313_v61 = vld [vmem:[%s10497_s22 + $0x6c] sm:$0xff]  }
  0x20   : > { %v10535_v36 = vld [vmem:[#allocation2 + $0x10] sm:$0xff]  ;;  %v10546_v41 = vld [vmem:[#allocation2 + $0x18] sm:$0xff]  ;;  %535 = vst.msk [vmem:[#allocation2 + $0x70] sm:$0xff] %vm385_vm1, %v10312_v59  ;;  %536 = vst.msk [vmem:[#allocation2 + $0x78] sm:$0xff] %vm385_vm1, %v10313_v61  ;;  %vm1467_vm6 = vsmask.f32 4352 }
  0x21   : > { %v1223_v39 = vsel %vm1220_vm4, %v1221_v31, %v1222_v34  ;;  %v1224_v40 = vrot.slane %v10535_v36, 4  ;;  %v1226_v42 = vrot.slane %v10546_v41, 4  ;;  %v10551_v43 = vld [vmem:[#allocation2 + $0x20] sm:$0xff]  ;;  %v10569_v50 = vld [vmem:[#allocation2 + $0x28] sm:$0xff]  ;;  %v10314_v62 = vld [vmem:[%s10497_s22 + $0x74] sm:$0xff]   ;;  %s314_s22 = scalar_lea.vmem %s12475_s5, %s12766_s28 }
  0x22   : > { %9146 = vmatprep.mubr.msk.bf16.mxu0 %vm385_vm1, %v1223_v39  ;;  %v1228_v52 = vrot.slane %v10551_v43, 4  ;;  %v1230_v54 = vrot.slane %v10569_v50, 4  ;;  %v10586_v58 = vld [vmem:[#allocation2 + $0x30] sm:$0xff]  ;;  %v10604_v0 = vld [vmem:[%s12471_s1 + $0x4] sm:$0x3]  ;;  %v10608_v1 = vld [vmem:[#allocation2 + $0x38] sm:$0xff] }
  0x23   : > { %692 = vperm.xlu1 %10297, %v332_v14   ;;  %680 = vperm.xlu0 %10296, %v331_v15   ;;  %v10554_v44 = vsel %vm1220_vm4, %v1222_v34, %v1224_v40  ;;  %v10567_v49 = vsel %vm1220_vm4, %v1224_v40, %v1226_v42  ;;  %537 = vst.msk [vmem:[#allocation2 + $0x80] sm:$0xff] %vm385_vm1, %v10314_v62  ;;  %v1232_v3 = vrot.slane %v10586_v58, 4  ;;  %v346_v4 = vld [vmem:[%s12473_s3 + $0x64] sm:$0xf]  ;;  %v345_v5 = vld [vmem:[%s12473_s3 + $0x60] sm:$0xf] }
  0x24   : > { %9147 = vmatmul.mubr.msk.bf16.vlgmr.msra.gmra.mrb[0].mxu0 %vm385_vm1, %v10554_v44  ;;  %v10591_v60 = vsel %vm1220_vm4, %v1226_v42, %v1228_v52  ;;  %v10598_v63 = vsel %vm1220_vm4, %v1228_v52, %v1230_v54  ;;  %v1234_v6 = vrot.slane %v10608_v1, 4  ;;  %v348_v8 = vld [vmem:[%s12473_s3 + $0x6c] sm:$0xf]  ;;  %v347_v9 = vld [vmem:[%s12473_s3 + $0x68] sm:$0xf]  ;;  %v10632_v10 = vld [vmem:[#allocation2 + $0x40] sm:$0xff] }
  0x25   : > { %9179 = vmatpush3.bf16.msra.mxu0 %v1669_v45  ;;  %9150 = vmatprep.mubr.msk.bf16.mxu0 %vm385_vm1, %v10567_v49  ;;  %v10624_v7 = vsel %vm1220_vm4, %v1230_v54, %v1232_v3  ;;  %v10639_v12 = vld [vmem:[#allocation2 + $0x48] sm:$0xff]  ;;  %v1236_v13 = vrot.slane %v10632_v10, 4  ;;  %v350_v14 = vld [vmem:[%s12473_s3 + $0x74] sm:$0xf]  ;;  %v349_v15 = vld [vmem:[%s12473_s3 + $0x70] sm:$0xf] }
  0x26   : > { %10270 = vmatprep.subr.msk.bf16.mxu0 %vm1302_vm0, %v10604_v0  ;;  %v10635_v11 = vsel %vm1220_vm4, %v1232_v3, %v1234_v6  ;;  %v352_v18 = vld [vmem:[%s12473_s3 + $0x7c] sm:$0xf]  ;;  %v351_v19 = vld [vmem:[%s12473_s3 + $0x78] sm:$0xf]  ;;  %v10660_v20 = vld [vmem:[#allocation2 + $0x50] sm:$0xff] }
  0x27   : > { %716 = vperm.xlu1 %10297, %v334_v16   ;;  %704 = vperm.xlu0 %10296, %v333_v17   ;;  %v1238_v16 = vrot.slane %v10639_v12, 4  ;;  %v10652_v17 = vsel %vm1220_vm4, %v1234_v6, %v1236_v13  ;;  %v1240_v24 = vrot.slane %v10660_v20, 4  ;;  %v354_v25 = vld [vmem:[%s12474_s4 + $0x4] sm:$0xf]  ;;  %v353_v26 = vld [vmem:[%s12474_s4] sm:$0xf] }
  0x28   : > { %12601 = vst [vmem:[#allocation4_spill] sm:$0xff] %v10652_v17  ;;  %v356_v29 = vld [vmem:[%s12474_s4 + $0xc] sm:$0xf]  ;;  %v10688_v31 = vld [vmem:[#allocation2 + $0x60] sm:$0xff]  ;;  %v360_v42 = vld [vmem:[%s12474_s4 + $0x1c] sm:$0xf] }
  0x29   : > { %v10695_v34 = vld [vmem:[#allocation2 + $0x68] sm:$0xff]  ;;  %v1244_v35 = vrot.slane %v10688_v31, 4  ;;  %v359_v45 = vld [vmem:[%s12474_s4 + $0x18] sm:$0xf]  ;;  %v10716_v46 = vld [vmem:[#allocation2 + $0x70] sm:$0xff] }
  0x2a   : > { %v1246_v39 = vrot.slane %v10695_v34, 4  ;;  %v1248_v51 = vrot.slane %v10716_v46, 4  ;;  %v362_v52 = vld [vmem:[%s12474_s4 + $0x24] sm:$0xf]  ;;  %v361_v53 = vld [vmem:[%s12474_s4 + $0x20] sm:$0xf] }
  0x2b   : > { %740 = vperm.xlu1 %10297, %v336_v21   ;;  %728 = vperm.xlu0 %10296, %v335_v22   ;;  %v10663_v21 = vsel %vm1220_vm4, %v1236_v13, %v1238_v16  ;;  %v10667_v22 = vld [vmem:[#allocation2 + $0x58] sm:$0xff]  ;;  %v10744_v59 = vld [vmem:[#allocation2 + $0x80] sm:$0xff]  ;;  %v366_v3 = vld [vmem:[%s12474_s4 + $0x34] sm:$0xf] }
  0x2c   : > { %9151 = vmatmul.mubr.msk.bf16.gmra.mrb[4].mxu0 %vm385_vm1, %v10591_v60  ;;  %12602 = vst [vmem:[#allocation5_spill] sm:$0xff] %v10663_v21  ;;  %v1242_v27 = vrot.slane %v10667_v22, 4  ;;  %v10736_v55 = vsel %vm1220_vm4, %v1246_v39, %v1248_v51  ;;  %12608 = vst [vmem:[#allocation11_spill] sm:$0xff] %v10744_v59  ;;  %v12479_v62 = vrot.slane %v10744_v59, 4  ;;  %v368_v6 = vld [vmem:[%s12474_s4 + $0x3c] sm:$0xf] }
  0x2d   : > { %9154 = vmatprep.mubr.msk.bf16.mxu0 %vm385_vm1, %v10598_v63  ;;  %12607 = vst [vmem:[#allocation10_spill] sm:$0xff] %v10736_v55  ;;  %v369_v13 = vld [vmem:[%s12474_s4 + $0x40] sm:$0xf] }
  0x2e   : > { %v10691_v33 = vsel %vm1220_vm4, %v1240_v24, %v1242_v27  ;;  %v10708_v40 = vsel %vm1220_vm4, %v1242_v27, %v1244_v35  ;;  %v380_v27 = vld [vmem:[%s12474_s4 + $0x6c] sm:$0xf] }
  0x2f   : > { %764 = vperm.xlu1 %10297, %v338_v28   ;;  %752 = vperm.xlu0 %10296, %v337_v30   ;;  %v10680_v28 = vsel %vm1220_vm4, %v1238_v16, %v1240_v24  ;;  %v355_v30 = vld [vmem:[%s12474_s4 + $0x8] sm:$0xf]  ;;  %12604 = vst [vmem:[#allocation7_spill] sm:$0xff] %v10691_v33  ;;  %12605 = vst [vmem:[#allocation8_spill] sm:$0xff] %v10708_v40  ;;  %v374_v16 = vld [vmem:[%s12474_s4 + $0x54] sm:$0xf] }
  0x30   : > { %12603 = vst [vmem:[#allocation6_spill] sm:$0xff] %v10680_v28  ;;  %v375_v24 = vld [vmem:[%s12474_s4 + $0x58] sm:$0xf] }
  0x33   : > { %788 = vperm.xlu1 %10297, %v340_v37   ;;  %776 = vperm.xlu0 %10296, %v339_v38   ;;  %v358_v37 = vld [vmem:[%s12474_s4 + $0x14] sm:$0xf]  ;;  %v357_v38 = vld [vmem:[%s12474_s4 + $0x10] sm:$0xf] }
  0x34   : > { %9155 = vmatmul.mubr.msk.bf16.gmra.mrb[8].mxu0 %vm385_vm1, %v10624_v7 }
  0x35   : > { %9158 = vmatprep.mubr.msk.bf16.mxu0 %vm385_vm1, %v10635_v11 }
  0x37   : > { %812 = vperm.xlu1 %10297, %v342_v47   ;;  %800 = vperm.xlu0 %10296, %v341_v48   ;;  %v10719_v47 = vsel %vm1220_vm4, %v1244_v35, %v1246_v39  ;;  %v10723_v48 = vld [vmem:[#allocation2 + $0x78] sm:$0xff]  ;;  %v381_v35 = vld [vmem:[%s12474_s4 + $0x70] sm:$0xf]  ;;  %v566_v39 = vlaneseq }
  0x38   : > { %12606 = vst [vmem:[#allocation9_spill] sm:$0xff] %v10719_v47  ;;  %v1250_v54 = vrot.slane %v10723_v48, 4 }
  0x3a   : > { %v10747_v61 = vsel %vm1220_vm4, %v1248_v51, %v1250_v54 }
  0x3b   : > { %836 = vperm.xlu1 %10297, %v344_v56   ;;  %824 = vperm.xlu0 %10296, %v343_v57   ;;  %v364_v56 = vld [vmem:[%s12474_s4 + $0x2c] sm:$0xf]  ;;  %v363_v57 = vld [vmem:[%s12474_s4 + $0x28] sm:$0xf]  ;;  %12609 = vst [vmem:[#allocation12_spill] sm:$0xff] %v10747_v61 }
  0x3c   : > { %9159 = vmatmul.mubr.msk.bf16.gmra.mrb[12].mxu0 %vm385_vm1, %v10652_v17 }
  0x3d   : > { %9162 = vmatprep.mubr.msk.bf16.mxu0 %vm385_vm1, %v10663_v21 }
  0x3f   : > { %860 = vperm.xlu1 %10297, %v346_v4   ;;  %848 = vperm.xlu0 %10296, %v345_v5   ;;  %v365_v4 = vld [vmem:[%s12474_s4 + $0x30] sm:$0xf]  ;;  %v10763_v5 = vsel %vm1220_vm4, %v1250_v54, %v12479_v62 }
  0x40   : > { %12610 = vst [vmem:[#allocation13_spill] sm:$0xff] %v10763_v5 }
  0x43   : > { %884 = vperm.xlu1 %10297, %v348_v8   ;;  %872 = vperm.xlu0 %10296, %v347_v9   ;;  %v367_v8 = vld [vmem:[%s12474_s4 + $0x38] sm:$0xf]  ;;  %v370_v9 = vld [vmem:[%s12474_s4 + $0x44] sm:$0xf] }
  0x44   : > { %9163 = vmatmul.mubr.msk.bf16.gmra.mrb[16].mxu0 %vm385_vm1, %v10680_v28 }
  0x45   : > { %9166 = vmatprep.mubr.msk.bf16.mxu0 %vm385_vm1, %v10691_v33 }
  0x47   : > { %908 = vperm.xlu1 %10297, %v350_v14   ;;  %896 = vperm.xlu0 %10296, %v349_v15   ;;  %v372_v14 = vld [vmem:[%s12474_s4 + $0x4c] sm:$0xf]  ;;  %v371_v15 = vld [vmem:[%s12474_s4 + $0x48] sm:$0xf] }
  0x4b   : > { %932 = vperm.xlu1 %10297, %v352_v18   ;;  %920 = vperm.xlu0 %10296, %v351_v19   ;;  %v373_v18 = vld [vmem:[%s12474_s4 + $0x50] sm:$0xf]  ;;  %v376_v19 = vld [vmem:[%s12474_s4 + $0x5c] sm:$0xf] }
  0x4c   : > { %9167 = vmatmul.mubr.msk.bf16.gmra.mrb[20].mxu0 %vm385_vm1, %v10708_v40 }
  0x4d   : > { %9170 = vmatprep.mubr.msk.bf16.mxu0 %vm385_vm1, %v10719_v47 }
  0x4f   : > { %1846 = vperm.xlu1 %10297, %v354_v25   ;;  %1834 = vperm.xlu0 %10296, %v353_v26   ;;  %v378_v25 = vld [vmem:[%s12474_s4 + $0x64] sm:$0xf]  ;;  %v377_v26 = vld [vmem:[%s12474_s4 + $0x60] sm:$0xf] }
  0x53   : > { %1870 = vperm.xlu1 %10297, %v356_v29   ;;  %1858 = vperm.xlu0 %10296, %v355_v30   ;;  %v379_v29 = vld [vmem:[%s12474_s4 + $0x68] sm:$0xf]  ;;  %v382_v30 = vld [vmem:[%s12474_s4 + $0x74] sm:$0xf] }
  0x54   : > { %9171 = vmatmul.mubr.msk.bf16.gmra.mrb[24].mxu0 %vm385_vm1, %v10736_v55 }
  0x55   : > { %9174 = vmatprep.mubr.msk.bf16.mxu0 %vm385_vm1, %v10747_v61 }
  0x57   : > { %1894 = vperm.xlu1 %10297, %v358_v37   ;;  %1882 = vperm.xlu0 %10296, %v357_v38   ;;  %v10372_v37 = vmov 839922192  }
  0x58   : > { %v564_v38 = vunpack.c.l.s4 %v10372_v37 }
  0x5a   : > { %v565_v51 = vunpack.c.0.s8 %v564_v38 }
  0x5b   : > { %1918 = vperm.xlu1 %10297, %v360_v42   ;;  %1906 = vperm.xlu0 %10296, %v359_v45   ;;  %v384_v42 = vld [vmem:[%s12474_s4 + $0x7c] sm:$0xf]  ;;  %v383_v45 = vld [vmem:[%s12474_s4 + $0x78] sm:$0xf] }
  0x5c   : > { %9175 = vmatmul.mubr.msk.bf16.gmra.mrb[28].mxu0 %vm385_vm1, %v10763_v5 }
  0x5f   : > { %1942 = vperm.xlu1 %10297, %v362_v52   ;;  %1930 = vperm.xlu0 %10296, %v361_v53   ;;  %v567_v52 = vshrl.u32 %v566_v39, 7 }
  0x63   : > { %1966 = vperm.xlu1 %10297, %v364_v56   ;;  %1954 = vperm.xlu0 %10296, %v363_v57   ;;  %v10821_v56 = vsub.s32 %v565_v51, %v567_v52 }
  0x67   : > { %1990 = vperm.xlu1 %10297, %v366_v3   ;;  %1978 = vperm.xlu0 %10296, %v365_v4  }
  0x6b   : > { %2014 = vperm.xlu1 %10297, %v368_v6   ;;  %2002 = vperm.xlu0 %10296, %v367_v8  }
  0x6f   : > { %2038 = vperm.xlu1 %10297, %v370_v9   ;;  %2026 = vperm.xlu0 %10296, %v369_v13  }
  0x73   : > { %2062 = vperm.xlu1 %10297, %v372_v14   ;;  %2050 = vperm.xlu0 %10296, %v371_v15  }
  0x77   : > { %2086 = vperm.xlu1 %10297, %v374_v16   ;;  %2074 = vperm.xlu0 %10296, %v373_v18  }
  0x7b   : > { %2110 = vperm.xlu1 %10297, %v376_v19   ;;  %2098 = vperm.xlu0 %10296, %v375_v24  }
  0x7f   : > { %2134 = vperm.xlu1 %10297, %v378_v25   ;;  %2122 = vperm.xlu0 %10296, %v377_v26  }
  0x83   : > { %2158 = vperm.xlu1 %10297, %v380_v27   ;;  %2146 = vperm.xlu0 %10296, %v379_v29  }
  0x87   : > { %2182 = vperm.xlu1 %10297, %v382_v30   ;;  %2170 = vperm.xlu0 %10296, %v381_v35  }
  0x8b   : > { %2206 = vperm.xlu1 %10297, %v384_v42   ;;  %2194 = vperm.xlu0 %10296, %v383_v45  }
  0x8e   : > { %v585_v53 = vpop.permute.xlu1 %584  ;;  %v561_v54 = vpop.permute.xlu0 %560 }
  0x8f   : > { %v593_v4 = vrot.slane %v585_v53, %v10821_v56  ;;  %v569_v6 = vrot.slane %v561_v54, %v10821_v56 }
  0x92   : > { %v597_v57 = vpop.permute.xlu1 %596  ;;  %v573_v3 = vpop.permute.xlu0 %572 }
  0x93   : > { %v605_v8 = vrot.slane %v597_v57, %v10821_v56  ;;  %v581_v9 = vrot.slane %v573_v3, %v10821_v56 }
  0x95   : > { %v8496_v13 = vcombine.low %v593_v4, %v605_v8  ;;  %v8495_v14 = vcombine.low %v569_v6, %v581_v9 }
  0x96   : > { %v621_v15 = vpop.permute.xlu1 %620  ;;  %v609_v16 = vpop.permute.xlu0 %608 }
  0x97   : > { %v1032_v18 = vshrl.u32 %v8496_v13, 16  ;;  %v1035_v19 = vshll.u32 %v8496_v13, 16  ;;  %v1024_v24 = vshrl.u32 %v8495_v14, 16  ;;  %v1027_v25 = vshll.u32 %v8495_v14, 16 }
  0x98   : > { %v629_v26 = vrot.slane %v621_v15, %v10821_v56  ;;  %v617_v27 = vrot.slane %v609_v16, %v10821_v56 }
  0x99   : > { %v1034_v29 = vrot.slane %v1032_v18, 4  ;;  %v1037_v30 = vrot.slane %v1035_v19, 5  ;;  %v1026_v35 = vrot.slane %v1024_v24, 4  ;;  %v1029_v37 = vrot.slane %v1027_v25, 5 }
  0x9a   : > { %v8497_v38 = vcombine.low %v617_v27, %v629_v26  ;;  %v645_v39 = vpop.permute.xlu1 %644  ;;  %v633_v42 = vpop.permute.xlu0 %632 }
  0x9b   : > { %v1038_v45 = vor.u32 %v1037_v30, %v1034_v29  ;;  %v10829_v51 = vor.u32 %v1029_v37, %v1026_v35  ;;  %v653_v52 = vrot.slane %v645_v39, %v10821_v56  ;;  %v641_v53 = vrot.slane %v633_v42, %v10821_v56 }
  0x9c   : > { %v1041_v54 = vshrl.u32 %v8497_v38, 16  ;;  %v1044_v57 = vshll.u32 %v8497_v38, 16 }
  0x9d   : > { %12611 = vst [vmem:[#allocation14_spill] sm:$0xff] %v10829_v51  ;;  %v8498_v3 = vcombine.low %v641_v53, %v653_v52  ;;  %v10835_v4 = vsel %vm1022_vm5, %v10829_v51, %v1038_v45  ;;  %v1183_v6 = vmul.bf16 %v10829_v51, %v10510_v23 }
  0x9e   : > { %12612 = vst [vmem:[#allocation15_spill] sm:$0xff] %v10835_v4  ;;  %v1043_v8 = vrot.slane %v1041_v54, 4  ;;  %v1046_v9 = vrot.slane %v1044_v57, 5  ;;  %v669_v13 = vpop.permute.xlu1 %668  ;;  %v657_v14 = vpop.permute.xlu0 %656  ;;  %v1184_v15 = vmul.bf16 %v10835_v4, %v10529_v32 }
  0x9f   : > { %v1050_v16 = vshrl.u32 %v8498_v3, 16  ;;  %v1053_v18 = vshll.u32 %v8498_v3, 16  ;;  %v677_v19 = vrot.slane %v669_v13, %v10821_v56  ;;  %v665_v24 = vrot.slane %v657_v14, %v10821_v56 }
  0xa0   : > { %v1047_v25 = vor.u32 %v1046_v9, %v1043_v8  ;;  %v1469_v26 = vshrl.u32 %v1183_v6, 16  ;;  %v1472_v27 = vshll.u32 %v1183_v6, 16  ;;  %v1477_v29 = vshrl.u32 %v1184_v15, 16 }
  0xa1   : > { %v1052_v30 = vrot.slane %v1050_v16, 4  ;;  %v1055_v23 = vrot.slane %v1053_v18, 5  ;;  %v8499_v35 = vcombine.low %v665_v24, %v677_v19  ;;  %v1480_v37 = vshll.u32 %v1184_v15, 16 }
  0xa2   : > { %v10844_v38 = vsel %vm1022_vm5, %v1038_v45, %v1047_v25  ;;  %v693_v39 = vpop.permute.xlu1 %692  ;;  %v681_v32 = vpop.permute.xlu0 %680  ;;  %v1471_v42 = vrot.slane %v1469_v26, 3  ;;  %v1474_v52 = vrot.slane %v1472_v27, 4  ;;  %v1479_v53 = vrot.slane %v1477_v29, 3 }
  0xa3   : > { %12613 = vst [vmem:[#allocation16_spill] sm:$0xff] %v10844_v38  ;;  %v1056_v54 = vor.u32 %v1055_v23, %v1052_v30  ;;  %v1059_v57 = vshrl.u32 %v8499_v35, 16  ;;  %v1062_v3 = vshll.u32 %v8499_v35, 16  ;;  %v701_v8 = vrot.slane %v693_v39, %v10821_v56 }
  0xa4   : > { %v689_v6 = vrot.slane %v681_v32, %v10821_v56  ;;  %v1475_v9 = vor.u32 %v1474_v52, %v1471_v42  ;;  %v1482_v13 = vrot.slane %v1480_v37, 4  ;;  %v1185_v14 = vmul.bf16 %v10844_v38, %v10535_v36 }
  0xa5   : > { %v10851_v45 = vsel %vm1022_vm5, %v1047_v25, %v1056_v54  ;;  %v1061_v15 = vrot.slane %v1059_v57, 4  ;;  %v1064_v16 = vrot.slane %v1062_v3, 5  ;;  %v2676_v18 = vsel %vm1302_vm0, %v10604_v0, 0 }
  0xa6   : > { %12614 = vst [vmem:[#allocation17_spill] sm:$0xff] %v10851_v45  ;;  %v8500_v19 = vcombine.low %v689_v6, %v701_v8  ;;  %v717_v24 = vpop.permute.xlu1 %716  ;;  %v705_v26 = vpop.permute.xlu0 %704  ;;  %v1483_v27 = vor.u32 %v1482_v13, %v1479_v53  ;;  %v1486_v29 = vshrl.u32 %v1185_v14, 16  ;;  %v1489_v30 = vshll.u32 %v1185_v14, 16 }
  0xa7   : > { %v1065_v23 = vor.u32 %v1064_v16, %v1061_v15  ;;  %v725_v35 = vrot.slane %v717_v24, %v10821_v56  ;;  %v713_v37 = vrot.slane %v705_v26, %v10821_v56  ;;  %v1186_v36 = vmul.bf16 %v10851_v45, %v10546_v41 }
  0xa8   : > { %v1068_v25 = vshrl.u32 %v8500_v19, 16  ;;  %v1071_v39 = vshll.u32 %v8500_v19, 16  ;;  %v1484_v32 = vsel %vm1467_vm6, %v1475_v9, %v1483_v27  ;;  %v1488_v42 = vrot.slane %v1486_v29, 3 }
  0xa9   : > { %v10861_v0 = vsel %vm1022_vm5, %v1056_v54, %v1065_v23  ;;  %v8501_v52 = vcombine.low %v713_v37, %v725_v35  ;;  %9180 = vmatprep.mubr.msk.bf16.mxu0 %vm385_vm1, %v1484_v32  ;;  %v1491_v53 = vrot.slane %v1489_v30, 4  ;;  %v1495_v57 = vshrl.u32 %v1186_v36, 16 }
  0xaa   : > { %12615 = vst [vmem:[#allocation18_spill] sm:$0xff] %v10861_v0  ;;  %v1070_v3 = vrot.slane %v1068_v25, 4  ;;  %v1073_v8 = vrot.slane %v1071_v39, 5  ;;  %v741_v6 = vpop.permute.xlu1 %740  ;;  %v729_v13 = vpop.permute.xlu0 %728  ;;  %v1498_v14 = vshll.u32 %v1186_v36, 16  ;;  %v1187_v41 = vmul.bf16 %v10861_v0, %v10551_v43 }
  0xab   : > { %v1077_v15 = vshrl.u32 %v8501_v52, 16  ;;  %v1080_v16 = vshll.u32 %v8501_v52, 16  ;;  %v749_v9 = vrot.slane %v741_v6, %v10821_v56  ;;  %v737_v54 = vrot.slane %v729_v13, %v10821_v56 }
  0xac   : > { %v1074_v19 = vor.u32 %v1073_v8, %v1070_v3  ;;  %v1492_v24 = vor.u32 %v1491_v53, %v1488_v42  ;;  %v1497_v26 = vrot.slane %v1495_v57, 3  ;;  %v1500_v29 = vrot.slane %v1498_v14, 4  ;;  %v10875_v3 = vld [vmem:[%s12471_s1 + $0x6] sm:$0x3] }
  0xad   : > { %v1079_v30 = vrot.slane %v1077_v15, 4  ;;  %v1082_v35 = vrot.slane %v1080_v16, 5  ;;  %v8502_v37 = vcombine.low %v737_v54, %v749_v9  ;;  %v1504_v25 = vshrl.u32 %v1187_v41, 16 }
  0xae   : > { %v10869_v39 = vsel %vm1022_vm5, %v1065_v23, %v1074_v19  ;;  %v1493_v36 = vsel %vm1467_vm6, %v1483_v27, %v1492_v24  ;;  %v765_v43 = vpop.permute.xlu1 %764  ;;  %v753_v32 = vpop.permute.xlu0 %752  ;;  %v1501_v52 = vor.u32 %v1500_v29, %v1497_v26  ;;  %v1507_v62 = vshll.u32 %v1187_v41, 16 }
  0xaf   : > { %v1083_v42 = vor.u32 %v1082_v35, %v1079_v30  ;;  %v1086_v53 = vshrl.u32 %v8502_v37, 16  ;;  %v1089_v57 = vshll.u32 %v8502_v37, 16  ;;  %9181 = vmatmul.mubr.msk.bf16.vlgmr.msra.gmra.mrb[0].mxu0 %vm385_vm1, %v1493_v36  ;;  %v773_v8 = vrot.slane %v765_v43, %v10821_v56 }
  0xb0   : > { %9213 = vmatpush3.bf16.msra.mxu0 %v2676_v18  ;;  %v761_v23 = vrot.slane %v753_v32, %v10821_v56  ;;  %v1502_v27 = vsel %vm1467_vm6, %v1492_v24, %v1501_v52  ;;  %v1506_v6 = vrot.slane %v1504_v25, 3  ;;  %v1509_v13 = vrot.slane %v1507_v62, 4 }
  0xb1   : > { %v10882_v14 = vsel %vm1022_vm5, %v1074_v19, %v1083_v42  ;;  %v1088_v41 = vrot.slane %v1086_v53, 4  ;;  %v1091_v15 = vrot.slane %v1089_v57, 5  ;;  %9184 = vmatprep.mubr.msk.bf16.mxu0 %vm385_vm1, %v1502_v27  ;;  %v1188_v16 = vmul.bf16 %v10869_v39, %v10569_v50  ;;  %10271 = vmatprep.subr.msk.bf16.mxu0 %vm1302_vm0, %v10875_v3 }
  0xb2   : > { %v8503_v18 = vcombine.low %v761_v23, %v773_v8  ;;  %v789_v9 = vpop.permute.xlu1 %788  ;;  %v777_v54 = vpop.permute.xlu0 %776  ;;  %v1510_v26 = vor.u32 %v1509_v13, %v1506_v6  ;;  %v1189_v62 = vmul.bf16 %v10882_v14, %v10586_v58 }
  0xb3   : > { %v1092_v24 = vor.u32 %v1091_v15, %v1088_v41  ;;  %v797_v19 = vrot.slane %v789_v9, %v10821_v56  ;;  %v785_v29 = vrot.slane %v777_v54, %v10821_v56  ;;  %v1513_v30 = vshrl.u32 %v1188_v16, 16 }
  0xb4   : > { %v1095_v35 = vshrl.u32 %v8503_v18, 16  ;;  %v1098_v37 = vshll.u32 %v8503_v18, 16  ;;  %v1511_v50 = vsel %vm1467_vm6, %v1501_v52, %v1510_v26  ;;  %v1516_v25 = vshll.u32 %v1188_v16, 16 }
  0xb5   : > { %v10895_v36 = vsel %vm1022_vm5, %v1083_v42, %v1092_v24  ;;  %v8504_v43 = vcombine.low %v785_v29, %v797_v19  ;;  %v1515_v32 = vrot.slane %v1513_v30, 3  ;;  %v1522_v53 = vshrl.u32 %v1189_v62, 16 }
  0xb6   : > { %v1097_v57 = vrot.slane %v1095_v35, 4  ;;  %v1100_v8 = vrot.slane %v1098_v37, 5  ;;  %v813_v58 = vpop.permute.xlu1 %812  ;;  %v801_v23 = vpop.permute.xlu0 %800  ;;  %v1518_v27 = vrot.slane %v1516_v25, 4  ;;  %v1525_v6 = vshll.u32 %v1189_v62, 16 }
  0xb7   : > { %v1104_v13 = vshrl.u32 %v8504_v43, 16  ;;  %v1107_v41 = vshll.u32 %v8504_v43, 16  ;;  %9185 = vmatmul.mubr.msk.bf16.gmra.mrb[4].mxu0 %vm385_vm1, %v1511_v50  ;;  %v821_v15 = vrot.slane %v813_v58, %v10821_v56  ;;  %v809_v52 = vrot.slane %v801_v23, %v10821_v56 }
  0xb8   : > { %v1101_v16 = vor.u32 %v1100_v8, %v1097_v57  ;;  %v1519_v42 = vor.u32 %v1518_v27, %v1515_v32  ;;  %v1524_v18 = vrot.slane %v1522_v53, 3  ;;  %v1527_v9 = vrot.slane %v1525_v6, 4 }
  0xb9   : > { %v1106_v54 = vrot.slane %v1104_v13, 4  ;;  %v1109_v19 = vrot.slane %v1107_v41, 5  ;;  %v8505_v29 = vcombine.low %v809_v52, %v821_v15  ;;  %v1190_v30 = vmul.bf16 %v10895_v36, %v10608_v1 }
  0xba   : > { %v10903_v62 = vsel %vm1022_vm5, %v1092_v24, %v1101_v16  ;;  %v1520_v35 = vsel %vm1467_vm6, %v1510_v26, %v1519_v42  ;;  %v837_v37 = vpop.permute.xlu1 %836  ;;  %v825_v50 = vpop.permute.xlu0 %824  ;;  %v1528_v25 = vor.u32 %v1527_v9, %v1524_v18 }
  0xbb   : > { %12616 = vst [vmem:[#allocation19_spill] sm:$0xff] %v10903_v62  ;;  %v1110_v43 = vor.u32 %v1109_v19, %v1106_v54  ;;  %v1113_v58 = vshrl.u32 %v8505_v29, 16  ;;  %v1116_v57 = vshll.u32 %v8505_v29, 16  ;;  %9188 = vmatprep.mubr.msk.bf16.mxu0 %vm385_vm1, %v1520_v35  ;;  %v845_v32 = vrot.slane %v837_v37, %v10821_v56 }
  0xbc   : > { %v833_v53 = vrot.slane %v825_v50, %v10821_v56  ;;  %v1529_v8 = vsel %vm1467_vm6, %v1519_v42, %v1528_v25  ;;  %v1531_v1 = vshrl.u32 %v1190_v30, 16  ;;  %v1534_v23 = vshll.u32 %v1190_v30, 16 }
  0xbd   : > { %v10911_v24 = vsel %vm1022_vm5, %v1101_v16, %v1110_v43  ;;  %v1115_v26 = vrot.slane %v1113_v58, 4  ;;  %v1118_v27 = vrot.slane %v1116_v57, 5  ;;  %v1191_v6 = vmul.bf16 %v10903_v62, %v10632_v10 }
  0xbe   : > { %v8506_v13 = vcombine.low %v833_v53, %v845_v32  ;;  %v861_v41 = vpop.permute.xlu1 %860  ;;  %v849_v15 = vpop.permute.xlu0 %848  ;;  %v1533_v52 = vrot.slane %v1531_v1, 3  ;;  %v1536_v18 = vrot.slane %v1534_v23, 4  ;;  %v1192_v9 = vmul.bf16 %v10911_v24, %v10639_v12 }
  0xbf   : > { %v1119_v54 = vor.u32 %v1118_v27, %v1115_v26  ;;  %9189 = vmatmul.mubr.msk.bf16.gmra.mrb[8].mxu0 %vm385_vm1, %v1529_v8  ;;  %v869_v42 = vrot.slane %v861_v41, %v10821_v56  ;;  %v857_v16 = vrot.slane %v849_v15, %v10821_v56  ;;  %v1540_v19 = vshrl.u32 %v1191_v6, 16 }
  0xc0   : > { %v1122_v29 = vshrl.u32 %v8506_v13, 16  ;;  %v1125_v30 = vshll.u32 %v8506_v13, 16  ;;  %v1537_v35 = vor.u32 %v1536_v18, %v1533_v52  ;;  %v1543_v10 = vshll.u32 %v1191_v6, 16 }
  0xc1   : > { %v10921_v37 = vsel %vm1022_vm5, %v1110_v43, %v1119_v54  ;;  %v8507_v50 = vcombine.low %v857_v16, %v869_v42  ;;  %v1542_v58 = vrot.slane %v1540_v19, 3  ;;  %v1549_v57 = vshrl.u32 %v1192_v9, 16 }
  0xc2   : > { %v1124_v32 = vrot.slane %v1122_v29, 4  ;;  %v1127_v12 = vrot.slane %v1125_v30, 5  ;;  %v1538_v53 = vsel %vm1467_vm6, %v1528_v25, %v1537_v35  ;;  %v885_v8 = vpop.permute.xlu1 %884  ;;  %v873_v1 = vpop.permute.xlu0 %872  ;;  %v1545_v23 = vrot.slane %v1543_v10, 4 }
  0xc3   : > { %v1131_v26 = vshrl.u32 %v8507_v50, 16  ;;  %v1134_v27 = vshll.u32 %v8507_v50, 16  ;;  %9192 = vmatprep.mubr.msk.bf16.mxu0 %vm385_vm1, %v1538_v53  ;;  %v893_v13 = vrot.slane %v885_v8, %v10821_v56  ;;  %v881_v6 = vrot.slane %v873_v1, %v10821_v56 }
  0xc4   : > { %v1128_v43 = vor.u32 %v1127_v12, %v1124_v32  ;;  %v1546_v41 = vor.u32 %v1545_v23, %v1542_v58  ;;  %v1551_v15 = vrot.slane %v1549_v57, 3  ;;  %v1552_v52 = vshll.u32 %v1192_v9, 16 }
  0xc5   : > { %v1133_v18 = vrot.slane %v1131_v26, 4  ;;  %v1136_v42 = vrot.slane %v1134_v27, 5  ;;  %v8508_v16 = vcombine.low %v881_v6, %v893_v13  ;;  %v1193_v25 = vmul.bf16 %v10921_v37, %v10660_v20 }
  0xc6   : > { %v10930_v19 = vsel %vm1022_vm5, %v1119_v54, %v1128_v43  ;;  %v1547_v29 = vsel %vm1467_vm6, %v1537_v35, %v1546_v41  ;;  %v909_v30 = vpop.permute.xlu1 %908  ;;  %v897_v10 = vpop.permute.xlu0 %896  ;;  %v1554_v50 = vrot.slane %v1552_v52, 4 }
  0xc7   : > { %v1137_v53 = vor.u32 %v1136_v42, %v1133_v18  ;;  %v1140_v8 = vshrl.u32 %v8508_v16, 16  ;;  %v1143_v32 = vshll.u32 %v8508_v16, 16  ;;  %9193 = vmatmul.mubr.msk.bf16.gmra.mrb[12].mxu0 %vm385_vm1, %v1547_v29  ;;  %v917_v9 = vrot.slane %v909_v30, %v10821_v56 }
  0xc8   : > { %v905_v58 = vrot.slane %v897_v10, %v10821_v56  ;;  %v1555_v57 = vor.u32 %v1554_v50, %v1551_v15  ;;  %v1558_v12 = vshrl.u32 %v1193_v25, 16  ;;  %v1561_v20 = vshll.u32 %v1193_v25, 16 }
  0xc9   : > { %v10937_v54 = vsel %vm1022_vm5, %v1128_v43, %v1137_v53  ;;  %v1142_v1 = vrot.slane %v1140_v8, 4  ;;  %v1145_v35 = vrot.slane %v1143_v32, 5  ;;  %v1194_v23 = vmul.bf16 %v10930_v19, %v10667_v22 }
  0xca   : > { %v8509_v26 = vcombine.low %v905_v58, %v917_v9  ;;  %v1556_v27 = vsel %vm1467_vm6, %v1546_v41, %v1555_v57  ;;  %v933_v13 = vpop.permute.xlu1 %932  ;;  %v921_v6 = vpop.permute.xlu0 %920  ;;  %v1560_v52 = vrot.slane %v1558_v12, 3  ;;  %v1563_v18 = vrot.slane %v1561_v20, 4 }
  0xcb   : > { %v1146_v42 = vor.u32 %v1145_v35, %v1142_v1  ;;  %9196 = vmatprep.mubr.msk.bf16.mxu0 %vm385_vm1, %v1556_v27  ;;  %v941_v15 = vrot.slane %v933_v13, %v10821_v56  ;;  %v929_v43 = vrot.slane %v921_v6, %v10821_v56  ;;  %v1567_v16 = vshrl.u32 %v1194_v23, 16 }
  0xcc   : > { %v1149_v25 = vshrl.u32 %v8509_v26, 16  ;;  %v1152_v29 = vshll.u32 %v8509_v26, 16  ;;  %v1564_v30 = vor.u32 %v1563_v18, %v1560_v52  ;;  %v1570_v10 = vshll.u32 %v1194_v23, 16 }
  0xcd   : > { %v10946_v22 = vsel %vm1022_vm5, %v1137_v53, %v1146_v42  ;;  %v8510_v41 = vcombine.low %v929_v43, %v941_v15  ;;  %v1569_v50 = vrot.slane %v1567_v16, 3  ;;  %v1195_v8 = vmul.bf16 %v10937_v54, %v10688_v31 }
  0xce   : > { %v1151_v32 = vrot.slane %v1149_v25, 4  ;;  %v1154_v9 = vrot.slane %v1152_v29, 5  ;;  %v1565_v58 = vsel %vm1467_vm6, %v1555_v57, %v1564_v30  ;;  %v1847_v12 = vpop.permute.xlu1 %1846  ;;  %v1835_v20 = vpop.permute.xlu0 %1834  ;;  %v1572_v1 = vrot.slane %v1570_v10, 4 }
  0xcf   : > { %v1158_v35 = vshrl.u32 %v8510_v41, 16  ;;  %v1161_v27 = vshll.u32 %v8510_v41, 16  ;;  %9197 = vmatmul.mubr.msk.bf16.gmra.mrb[16].mxu0 %vm385_vm1, %v1565_v58  ;;  %v1855_v23 = vrot.slane %v1847_v12, %v10821_v56  ;;  %v1843_v53 = vrot.slane %v1835_v20, %v10821_v56 }
  0xd0   : > { %v1155_v26 = vor.u32 %v1154_v9, %v1151_v32  ;;  %v1573_v13 = vor.u32 %v1572_v1, %v1569_v50  ;;  %v1576_v6 = vshrl.u32 %v1195_v8, 16  ;;  %v1579_v52 = vshll.u32 %v1195_v8, 16 }
  0xd1   : > { %v1160_v31 = vrot.slane %v1158_v35, 4  ;;  %v1163_v18 = vrot.slane %v1161_v27, 5  ;;  %v8544_v15 = vcombine.low %v1843_v53, %v1855_v23  ;;  %v1196_v57 = vmul.bf16 %v10946_v22, %v10695_v34 }
  0xd2   : > { %v10957_v43 = vsel %vm1022_vm5, %v1146_v42, %v1155_v26  ;;  %v1574_v16 = vsel %vm1467_vm6, %v1564_v30, %v1573_v13  ;;  %v1871_v25 = vpop.permute.xlu1 %1870  ;;  %v1859_v29 = vpop.permute.xlu0 %1858  ;;  %v1578_v10 = vrot.slane %v1576_v6, 3  ;;  %v1581_v41 = vrot.slane %v1579_v52, 4 }
  0xd3   : > { %v10960_v58 = vor.u32 %v1163_v18, %v1160_v31  ;;  %v2297_v50 = vshrl.u32 %v8544_v15, 16  ;;  %v2300_v32 = vshll.u32 %v8544_v15, 16  ;;  %9200 = vmatprep.mubr.msk.bf16.mxu0 %vm385_vm1, %v1574_v16  ;;  %v1879_v8 = vrot.slane %v1871_v25, %v10821_v56 }
  0xd4   : > { %v1867_v9 = vrot.slane %v1859_v29, %v10821_v56  ;;  %v1582_v34 = vor.u32 %v1581_v41, %v1578_v10  ;;  %v1585_v12 = vshrl.u32 %v1196_v57, 16  ;;  %v1588_v42 = vshll.u32 %v1196_v57, 16 }
  0xd5   : > { %v2299_v20 = vrot.slane %v2297_v50, 3  ;;  %v2302_v1 = vrot.slane %v2300_v32, 4  ;;  %v1197_v30 = vmul.bf16 %v10957_v43, %v10716_v46  ;;  %v10969_v35 = vsel %vm1022_vm5, %v1155_v26, %v10960_v58 }
  0xd6   : > { %v8545_v27 = vcombine.low %v1867_v9, %v1879_v8  ;;  %v1583_v23 = vsel %vm1467_vm6, %v1573_v13, %v1582_v34  ;;  %v1895_v53 = vpop.permute.xlu1 %1894  ;;  %v1883_v6 = vpop.permute.xlu0 %1882  ;;  %v1587_v52 = vrot.slane %v1585_v12, 3  ;;  %v1590_v31 = vrot.slane %v1588_v42, 4 }
  0xd7   : > { %v10972_v18 = vor.u32 %v2302_v1, %v2299_v20  ;;  %9201 = vmatmul.mubr.msk.bf16.gmra.mrb[20].mxu0 %vm385_vm1, %v1583_v23  ;;  %v1903_v15 = vrot.slane %v1895_v53, %v10821_v56  ;;  %v1891_v57 = vrot.slane %v1883_v6, %v10821_v56  ;;  %v1594_v46 = vshrl.u32 %v1197_v30, 16 }
  0xd8   : > { %v2305_v16 = vshrl.u32 %v8545_v27, 16  ;;  %v2308_v25 = vshll.u32 %v8545_v27, 16  ;;  %v1591_v26 = vor.u32 %v1590_v31, %v1587_v52  ;;  %v1597_v29 = vshll.u32 %v1197_v30, 16 }
  0xd9   : > { %12617 = vst [vmem:[#allocation20_spill] sm:$0xff] %v10972_v18  ;;  %v8546_v10 = vcombine.low %v1891_v57, %v1903_v15  ;;  %v1596_v41 = vrot.slane %v1594_v46, 3  ;;  %v1198_v13 = vmul.bf16 %v10969_v35, %v10723_v48  ;;  %v1199_v50 = vmul.bf16 %v10960_v58, %v10744_v59 }
  0xda   : > { %v2307_v32 = vrot.slane %v2305_v16, 3  ;;  %v2310_v8 = vrot.slane %v2308_v25, 4  ;;  %v1592_v9 = vsel %vm1467_vm6, %v1582_v34, %v1591_v26  ;;  %v1919_v12 = vpop.permute.xlu1 %1918  ;;  %v1907_v42 = vpop.permute.xlu0 %1906  ;;  %v1599_v20 = vrot.slane %v1597_v29, 4 }
  0xdb   : > { %v2314_v1 = vshrl.u32 %v8546_v10, 16  ;;  %v2317_v23 = vshll.u32 %v8546_v10, 16  ;;  %9204 = vmatprep.mubr.msk.bf16.mxu0 %vm385_vm1, %v1592_v9  ;;  %v1927_v30 = vrot.slane %v1919_v12, %v10821_v56  ;;  %v1915_v27 = vrot.slane %v1907_v42, %v10821_v56 }
  0xdc   : > { %v2311_v53 = vor.u32 %v2310_v8, %v2307_v32  ;;  %v1600_v48 = vor.u32 %v1599_v20, %v1596_v41  ;;  %v1603_v6 = vshrl.u32 %v1198_v13, 16  ;;  %v1606_v52 = vshll.u32 %v1198_v13, 16 }
  0xdd   : > { %v2316_v31 = vrot.slane %v2314_v1, 3  ;;  %v2319_v15 = vrot.slane %v2317_v23, 4  ;;  %v8547_v57 = vcombine.low %v1915_v27, %v1927_v30  ;;  %v1612_v46 = vshrl.u32 %v1199_v50, 16  ;;  %v10315_v27 = vld [vmem:[#allocation2] sm:$0xff] }
  0xde   : > { %v10987_v34 = vsel %vm1467_vm6, %v10972_v18, %v2311_v53  ;;  %v1601_v16 = vsel %vm1467_vm6, %v1591_v26, %v1600_v48  ;;  %v1943_v25 = vpop.permute.xlu1 %1942  ;;  %v1931_v29 = vpop.permute.xlu0 %1930  ;;  %v1605_v10 = vrot.slane %v1603_v6, 3  ;;  %v1608_v9 = vrot.slane %v1606_v52, 4 }
  0xdf   : > { %12618 = vst [vmem:[#allocation21_spill] sm:$0xff] %v10987_v34  ;;  %v2320_v12 = vor.u32 %v2319_v15, %v2316_v31  ;;  %v2323_v42 = vshrl.u32 %v8547_v57, 16  ;;  %v2326_v32 = vshll.u32 %v8547_v57, 16  ;;  %9205 = vmatmul.mubr.msk.bf16.gmra.mrb[24].mxu0 %vm385_vm1, %v1601_v16  ;;  %v1951_v41 = vrot.slane %v1943_v25, %v10821_v56  ;;  %v10998_v25 = vld [vmem:[#allocation2 + $0x8] sm:$0xff] }
  0xe0   : > { %v1939_v13 = vrot.slane %v1931_v29, %v10821_v56  ;;  %v1609_v8 = vor.u32 %v1608_v9, %v1605_v10  ;;  %v1614_v20 = vrot.slane %v1612_v46, 3  ;;  %v1615_v1 = vshll.u32 %v1199_v50, 16 }
  0xe1   : > { %v10994_v23 = vsel %vm1467_vm6, %v2311_v53, %v2320_v12  ;;  %v2325_v26 = vrot.slane %v2323_v42, 3  ;;  %v2328_v30 = vrot.slane %v2326_v32, 4  ;;  %v2456_v6 = vmul.bf16 %v10315_v27, %v10972_v18 }
  0xe2   : > { %12619 = vst [vmem:[#allocation22_spill] sm:$0xff] %v10994_v23  ;;  %v8548_v52 = vcombine.low %v1939_v13, %v1951_v41  ;;  %v1610_v31 = vsel %vm1467_vm6, %v1600_v48, %v1609_v8  ;;  %v1967_v15 = vpop.permute.xlu1 %1966  ;;  %v1955_v57 = vpop.permute.xlu0 %1954  ;;  %v1617_v16 = vrot.slane %v1615_v1, 4  ;;  %v2457_v46 = vmul.bf16 %v10998_v25, %v10987_v34 }
  0xe3   : > { %v2329_v50 = vor.u32 %v2328_v30, %v2325_v26  ;;  %9208 = vmatprep.mubr.msk.bf16.mxu0 %vm385_vm1, %v1610_v31  ;;  %v1975_v53 = vrot.slane %v1967_v15, %v10821_v56  ;;  %v1963_v29 = vrot.slane %v1955_v57, %v10821_v56  ;;  %v2476_v10 = vshrl.u32 %v2456_v6, 16 }
  0xe4   : > { %v2332_v9 = vshrl.u32 %v8548_v52, 16  ;;  %v2335_v42 = vshll.u32 %v8548_v52, 16  ;;  %v1618_v32 = vor.u32 %v1617_v16, %v1614_v20  ;;  %v2479_v48 = vshll.u32 %v2456_v6, 16 }
  0xe5   : > { %v11006_v41 = vsel %vm1467_vm6, %v2320_v12, %v2329_v50  ;;  %v8549_v13 = vcombine.low %v1963_v29, %v1975_v53  ;;  %v2478_v1 = vrot.slane %v2476_v10, 4  ;;  %v2484_v27 = vshrl.u32 %v2457_v46, 16 }
  0xe6   : > { %12620 = vst [vmem:[#allocation23_spill] sm:$0xff] %v11006_v41  ;;  %v2334_v2 = vrot.slane %v2332_v9, 3  ;;  %v2337_v59 = vrot.slane %v2335_v42, 4  ;;  %v1619_v26 = vsel %vm1467_vm6, %v1609_v8, %v1618_v32  ;;  %v1991_v30 = vpop.permute.xlu1 %1990  ;;  %v1979_v31 = vpop.permute.xlu0 %1978  ;;  %v2481_v15 = vrot.slane %v2479_v48, 5  ;;  %v11014_v9 = vld [vmem:[#allocation2 + $0x10] sm:$0xff] }
  0xe7   : > { %v2341_v5 = vshrl.u32 %v8549_v13, 16  ;;  %v2344_v57 = vshll.u32 %v8549_v13, 16  ;;  %9209 = vmatmul.mubr.msk.bf16.gmra.mrb[28].mxu0 %vm385_vm1, %v1619_v26  ;;  %v1999_v20 = vrot.slane %v1991_v30, %v10821_v56  ;;  %v1987_v6 = vrot.slane %v1979_v31, %v10821_v56 }
  0xe8   : > { %v2338_v12 = vor.u32 %v2337_v59, %v2334_v2  ;;  %v2486_v52 = vrot.slane %v2484_v27, 4  ;;  %v2487_v16 = vshll.u32 %v2457_v46, 16  ;;  %v3091_v53 = vsel %vm1302_vm0, %v10875_v3, 0  ;;  %v11021_v59 = vld [vmem:[#allocation2 + $0x18] sm:$0xff] }
  0xe9   : > { %v2343_v29 = vrot.slane %v2341_v5, 3  ;;  %v2346_v10 = vrot.slane %v2344_v57, 4  ;;  %v8550_v8 = vcombine.low %v1987_v6, %v1999_v20  ;;  %v2458_v42 = vmul.bf16 %v11014_v9, %v10994_v23 }
  0xea   : > { %v11019_v32 = vsel %vm1467_vm6, %v2329_v50, %v2338_v12  ;;  %v2482_v48 = vor.u32 %v2481_v15, %v2478_v1  ;;  %v2489_v13 = vrot.slane %v2487_v16, 5  ;;  %v2015_v26 = vpop.permute.xlu1 %2014  ;;  %v2003_v2 = vpop.permute.xlu0 %2002  ;;  %v2459_v3 = vmul.bf16 %v11021_v59, %v11006_v41 }
  0xeb   : > { %12621 = vst [vmem:[#allocation24_spill] sm:$0xff] %v11019_v32  ;;  %v2347_v5 = vor.u32 %v2346_v10, %v2343_v29  ;;  %v2350_v46 = vshrl.u32 %v8550_v8, 16  ;;  %v2353_v27 = vshll.u32 %v8550_v8, 16  ;;  %v2023_v30 = vrot.slane %v2015_v26, %v10821_v56 }
  0xec   : > { %v2490_v31 = vor.u32 %v2489_v13, %v2486_v52  ;;  %v2011_v57 = vrot.slane %v2003_v2, %v10821_v56  ;;  %v2493_v20 = vshrl.u32 %v2458_v42, 16  ;;  %v2496_v50 = vshll.u32 %v2458_v42, 16 }
  0xed   : > { %v11028_v1 = vsel %vm1467_vm6, %v2338_v12, %v2347_v5  ;;  %v2352_v15 = vrot.slane %v2350_v46, 3  ;;  %v2355_v6 = vrot.slane %v2353_v27, 4  ;;  %v2502_v16 = vshrl.u32 %v2459_v3, 16 }
  0xee   : > { %12622 = vst [vmem:[#allocation25_spill] sm:$0xff] %v11028_v1  ;;  %v2491_v61 = vsel %vm1022_vm5, %v2482_v48, %v2490_v31  ;;  %v8551_v23 = vcombine.low %v2011_v57, %v2023_v30  ;;  %v2495_v41 = vrot.slane %v2493_v20, 4  ;;  %v2498_v29 = vrot.slane %v2496_v50, 5  ;;  %v2039_v10 = vpop.permute.xlu1 %2038  ;;  %v2027_v8 = vpop.permute.xlu0 %2026  ;;  %v11037_v30 = vld [vmem:[#allocation2 + $0x20] sm:$0xff]  ;;  %v11041_v20 = vld [vmem:[#allocation2 + $0x28] sm:$0xff] }
  0xef   : > { %v2356_v18 = vor.u32 %v2355_v6, %v2352_v15  ;;  %9214 = vmatprep.mubr.msk.bf16.mxu0 %vm385_vm1, %v2491_v61  ;;  %v2047_v52 = vrot.slane %v2039_v10, %v10821_v56  ;;  %v2035_v42 = vrot.slane %v2027_v8, %v10821_v56  ;;  %v2504_v13 = vrot.slane %v2502_v16, 4 }
  0xf0   : > { %v2359_v12 = vshrl.u32 %v8551_v23, 16  ;;  %v2362_v26 = vshll.u32 %v8551_v23, 16  ;;  %v2499_v2 = vor.u32 %v2498_v29, %v2495_v41  ;;  %v2505_v46 = vshll.u32 %v2459_v3, 16 }
  0xf1   : > { %v11035_v27 = vsel %vm1467_vm6, %v2347_v5, %v2356_v18  ;;  %v8552_v48 = vcombine.low %v2035_v42, %v2047_v52  ;;  %v2460_v57 = vmul.bf16 %v11037_v30, %v11019_v32  ;;  %v2461_v61 = vmul.bf16 %v11041_v20, %v11028_v1  ;;  %v11049_v5 = vld [vmem:[%s12471_s1 + $0x8] sm:$0x3] }
  0xf2   : > { %12623 = vst [vmem:[#allocation26_spill] sm:$0xff] %v11035_v27  ;;  %v2361_v50 = vrot.slane %v2359_v12, 3  ;;  %v2364_v15 = vrot.slane %v2362_v26, 4  ;;  %v2500_v23 = vsel %vm1022_vm5, %v2490_v31, %v2499_v2  ;;  %v2507_v41 = vrot.slane %v2505_v46, 5  ;;  %v2063_v3 = vpop.permute.xlu1 %2062  ;;  %v2051_v6 = vpop.permute.xlu0 %2050 }
  0xf3   : > { %9215 = vmatmul.mubr.msk.bf16.vlgmr.msra.gmra.mrb[0].mxu0 %vm385_vm1, %v2500_v23  ;;  %v2368_v16 = vshrl.u32 %v8552_v48, 16  ;;  %v2371_v29 = vshll.u32 %v8552_v48, 16  ;;  %v2071_v10 = vrot.slane %v2063_v3, %v10821_v56  ;;  %v2059_v8 = vrot.slane %v2051_v6, %v10821_v56 }
  0xf4   : > { %v2365_v52 = vor.u32 %v2364_v15, %v2361_v50  ;;  %9247 = vmatpush3.bf16.msra.mxu0 %v3091_v53  ;;  %v2508_v42 = vor.u32 %v2507_v41, %v2504_v13  ;;  %v2511_v31 = vshrl.u32 %v2460_v57, 16  ;;  %v2514_v12 = vshll.u32 %v2460_v57, 16 }
  0xf5   : > { %v2370_v26 = vrot.slane %v2368_v16, 3  ;;  %v2373_v46 = vrot.slane %v2371_v29, 4  ;;  %v8553_v1 = vcombine.low %v2059_v8, %v2071_v10  ;;  %v2520_v32 = vshrl.u32 %v2461_v61, 16  ;;  %10272 = vmatprep.subr.msk.bf16.mxu0 %vm1302_vm0, %v11049_v5 }
  0xf6   : > { %v11057_v23 = vsel %vm1467_vm6, %v2356_v18, %v2365_v52  ;;  %v2509_v48 = vsel %vm1022_vm5, %v2499_v2, %v2508_v42  ;;  %v2513_v3 = vrot.slane %v2511_v31, 4  ;;  %v2516_v55 = vrot.slane %v2514_v12, 5  ;;  %v2087_v6 = vpop.permute.xlu1 %2086  ;;  %v2075_v50 = vpop.permute.xlu0 %2074  ;;  %v11066_v31 = vld [vmem:[#allocation2 + $0x30] sm:$0xff] }
  0xf7   : > { %12624 = vst [vmem:[#allocation27_spill] sm:$0xff] %v11057_v23  ;;  %v2374_v53 = vor.u32 %v2373_v46, %v2370_v26  ;;  %9218 = vmatprep.mubr.msk.bf16.mxu0 %vm385_vm1, %v2509_v48  ;;  %v2377_v13 = vshrl.u32 %v8553_v1, 16  ;;  %v2380_v57 = vshll.u32 %v8553_v1, 16  ;;  %v2095_v15 = vrot.slane %v2087_v6, %v10821_v56 }
  0xf8   : > { %v2517_v41 = vor.u32 %v2516_v55, %v2513_v3  ;;  %v2083_v16 = vrot.slane %v2075_v50, %v10821_v56  ;;  %v2522_v29 = vrot.slane %v2520_v32, 4  ;;  %v2523_v10 = vshll.u32 %v2461_v61, 16  ;;  %v11071_v3 = vld [vmem:[#allocation2 + $0x38] sm:$0xff] }
  0xf9   : > { %v11064_v18 = vsel %vm1467_vm6, %v2365_v52, %v2374_v53  ;;  %v2379_v2 = vrot.slane %v2377_v13, 3  ;;  %v2382_v8 = vrot.slane %v2380_v57, 4  ;;  %v2462_v12 = vmul.bf16 %v11066_v31, %v11035_v27 }
  0xfa   : > { %12625 = vst [vmem:[#allocation28_spill] sm:$0xff] %v11064_v18  ;;  %v2518_v26 = vsel %vm1022_vm5, %v2508_v42, %v2517_v41  ;;  %v8554_v1 = vcombine.low %v2083_v16, %v2095_v15  ;;  %v2525_v46 = vrot.slane %v2523_v10, 5  ;;  %v2111_v48 = vpop.permute.xlu1 %2110  ;;  %v2099_v55 = vpop.permute.xlu0 %2098  ;;  %v2463_v32 = vmul.bf16 %v11071_v3, %v11057_v23 }
  0xfb   : > { %v2383_v61 = vor.u32 %v2382_v8, %v2379_v2  ;;  %9219 = vmatmul.mubr.msk.bf16.gmra.mrb[4].mxu0 %vm385_vm1, %v2518_v26  ;;  %v2119_v52 = vrot.slane %v2111_v48, %v10821_v56  ;;  %v2107_v6 = vrot.slane %v2099_v55, %v10821_v56  ;;  %v2529_v50 = vshrl.u32 %v2462_v12, 16 }
  0xfc   : > { %v2386_v13 = vshrl.u32 %v8554_v1, 16  ;;  %v2389_v57 = vshll.u32 %v8554_v1, 16  ;;  %v2526_v42 = vor.u32 %v2525_v46, %v2522_v29  ;;  %v2532_v15 = vshll.u32 %v2462_v12, 16 }
  0xfd   : > { %v11079_v16 = vsel %vm1467_vm6, %v2374_v53, %v2383_v61  ;;  %v8555_v10 = vcombine.low %v2107_v6, %v2119_v52  ;;  %v2531_v27 = vrot.slane %v2529_v50, 4  ;;  %v2538_v34 = vshrl.u32 %v2463_v32, 16 }
  0xfe   : > { %12626 = vst [vmem:[#allocation29_spill] sm:$0xff] %v11079_v16  ;;  %v2388_v47 = vrot.slane %v2386_v13, 3  ;;  %v2391_v23 = vrot.slane %v2389_v57, 4  ;;  %v2527_v2 = vsel %vm1022_vm5, %v2517_v41, %v2526_v42  ;;  %v2534_v8 = vrot.slane %v2532_v15, 5  ;;  %v2135_v26 = vpop.permute.xlu1 %2134  ;;  %v2123_v48 = vpop.permute.xlu0 %2122  ;;  %v11085_v57 = vld [vmem:[#allocation2 + $0x40] sm:$0xff] }
  0xff   : > { %9222 = vmatprep.mubr.msk.bf16.mxu0 %vm385_vm1, %v2527_v2  ;;  %v2395_v55 = vshrl.u32 %v8555_v10, 16  ;;  %v2398_v40 = vshll.u32 %v8555_v10, 16  ;;  %v2143_v29 = vrot.slane %v2135_v26, %v10821_v56  ;;  %v2131_v12 = vrot.slane %v2123_v48, %v10821_v56 }
 0x100   : > { %v2392_v53 = vor.u32 %v2391_v23, %v2388_v47  ;;  %v2535_v1 = vor.u32 %v2534_v8, %v2531_v27  ;;  %v2540_v46 = vrot.slane %v2538_v34, 4  ;;  %v2541_v52 = vshll.u32 %v2463_v32, 16  ;;  %v11093_v47 = vld [vmem:[#allocation2 + $0x48] sm:$0xff] }
 0x101   : > { %v2397_v6 = vrot.slane %v2395_v55, 3  ;;  %v2400_v50 = vrot.slane %v2398_v40, 4  ;;  %v8556_v13 = vcombine.low %v2131_v12, %v2143_v29  ;;  %v2464_v41 = vmul.bf16 %v11085_v57, %v11064_v18 }
 0x102   : > { %v11090_v15 = vsel %vm1467_vm6, %v2383_v61, %v2392_v53  ;;  %v2536_v10 = vsel %vm1022_vm5, %v2526_v42, %v2535_v1  ;;  %v2543_v2 = vrot.slane %v2541_v52, 5  ;;  %v2159_v26 = vpop.permute.xlu1 %2158  ;;  %v2147_v48 = vpop.permute.xlu0 %2146  ;;  %v2465_v34 = vmul.bf16 %v11093_v47, %v11079_v16 }
 0x103   : > { %12627 = vst [vmem:[#allocation30_spill] sm:$0xff] %v11090_v15  ;;  %v2401_v40 = vor.u32 %v2400_v50, %v2397_v6  ;;  %9223 = vmatmul.mubr.msk.bf16.gmra.mrb[8].mxu0 %vm385_vm1, %v2536_v10  ;;  %v2404_v27 = vshrl.u32 %v8556_v13, 16  ;;  %v2407_v23 = vshll.u32 %v8556_v13, 16  ;;  %v2167_v32 = vrot.slane %v2159_v26, %v10821_v56 }
 0x104   : > { %v2544_v8 = vor.u32 %v2543_v2, %v2540_v46  ;;  %v2155_v61 = vrot.slane %v2147_v48, %v10821_v56  ;;  %v2547_v55 = vshrl.u32 %v2464_v41, 16  ;;  %v2550_v42 = vshll.u32 %v2464_v41, 16 }
 0x105   : > { %v11101_v29 = vsel %vm1467_vm6, %v2392_v53, %v2401_v40  ;;  %v2406_v12 = vrot.slane %v2404_v27, 3  ;;  %v2409_v52 = vrot.slane %v2407_v23, 4  ;;  %v2556_v18 = vshrl.u32 %v2465_v34, 16 }
 0x106   : > { %12628 = vst [vmem:[#allocation31_spill] sm:$0xff] %v11101_v29  ;;  %v2545_v16 = vsel %vm1022_vm5, %v2535_v1, %v2544_v8  ;;  %v8557_v6 = vcombine.low %v2155_v61, %v2167_v32  ;;  %v2549_v50 = vrot.slane %v2547_v55, 4  ;;  %v2552_v10 = vrot.slane %v2550_v42, 5  ;;  %v2183_v33 = vpop.permute.xlu1 %2182  ;;  %v2171_v13 = vpop.permute.xlu0 %2170  ;;  %v11110_v32 = vld [vmem:[#allocation2 + $0x50] sm:$0xff]  ;;  %v11114_v55 = vld [vmem:[#allocation2 + $0x58] sm:$0xff] }
 0x107   : > { %v2410_v28 = vor.u32 %v2409_v52, %v2406_v12  ;;  %9226 = vmatprep.mubr.msk.bf16.mxu0 %vm385_vm1, %v2545_v16  ;;  %v2191_v46 = vrot.slane %v2183_v33, %v10821_v56  ;;  %v2179_v41 = vrot.slane %v2171_v13, %v10821_v56  ;;  %v2558_v2 = vrot.slane %v2556_v18, 4 }
 0x108   : > { %v2413_v53 = vshrl.u32 %v8557_v6, 16  ;;  %v2416_v26 = vshll.u32 %v8557_v6, 16  ;;  %v2553_v48 = vor.u32 %v2552_v10, %v2549_v50  ;;  %v2559_v27 = vshll.u32 %v2465_v34, 16 }
 0x109   : > { %v11108_v23 = vsel %vm1467_vm6, %v2401_v40, %v2410_v28  ;;  %v8558_v1 = vcombine.low %v2179_v41, %v2191_v46  ;;  %v2466_v61 = vmul.bf16 %v11110_v32, %v11090_v15  ;;  %v2467_v33 = vmul.bf16 %v11114_v55, %v11101_v29 }
 0x10a   : > { %12629 = vst [vmem:[#allocation32_spill] sm:$0xff] %v11108_v23  ;;  %v2415_v16 = vrot.slane %v2413_v53, 3  ;;  %v2418_v18 = vrot.slane %v2416_v26, 4  ;;  %v2554_v42 = vsel %vm1022_vm5, %v2544_v8, %v2553_v48  ;;  %v2561_v12 = vrot.slane %v2559_v27, 5  ;;  %v2207_v34 = vpop.permute.xlu1 %2206  ;;  %v2195_v52 = vpop.permute.xlu0 %2194 }
 0x10b   : > { %9227 = vmatmul.mubr.msk.bf16.gmra.mrb[12].mxu0 %vm385_vm1, %v2554_v42  ;;  %v2422_v40 = vshrl.u32 %v8558_v1, 16  ;;  %v2425_v6 = vshll.u32 %v8558_v1, 16  ;;  %v2215_v50 = vrot.slane %v2207_v34, %v10821_v56  ;;  %v2203_v10 = vrot.slane %v2195_v52, %v10821_v56  ;;  %v11131_v52 = vld [vmem:[#allocation2 + $0x68] sm:$0xff] }
 0x10c   : > { %v2419_v13 = vor.u32 %v2418_v18, %v2415_v16  ;;  %v2562_v46 = vor.u32 %v2561_v12, %v2558_v2  ;;  %v2565_v41 = vshrl.u32 %v2466_v61, 16  ;;  %v2568_v15 = vshll.u32 %v2466_v61, 16  ;;  %v11127_v61 = vld [vmem:[#allocation2 + $0x60] sm:$0xff] }
 0x10d   : > { %v2424_v29 = vrot.slane %v2422_v40, 3  ;;  %v2427_v53 = vrot.slane %v2425_v6, 4  ;;  %v8559_v26 = vcombine.low %v2203_v10, %v2215_v50  ;;  %v2574_v21 = vshrl.u32 %v2467_v33, 16 }
 0x10e   : > { %v11123_v8 = vsel %vm1467_vm6, %v2410_v28, %v2419_v13  ;;  %v2563_v27 = vsel %vm1022_vm5, %v2553_v48, %v2562_v46  ;;  %v2567_v42 = vrot.slane %v2565_v41, 4  ;;  %v2570_v17 = vrot.slane %v2568_v15, 5  ;;  %v11142_v41 = vld [vmem:[#allocation2 + $0x70] sm:$0xff] }
 0x10f   : > { %12630 = vst [vmem:[#allocation33_spill] sm:$0xff] %v11123_v8  ;;  %v2428_v1 = vor.u32 %v2427_v53, %v2424_v29  ;;  %9230 = vmatprep.mubr.msk.bf16.mxu0 %vm385_vm1, %v2563_v27  ;;  %v2431_v34 = vshrl.u32 %v8559_v26, 16  ;;  %v2434_v56 = vshll.u32 %v8559_v26, 16  ;;  %v2576_v16 = vrot.slane %v2574_v21, 4 }
 0x110   : > { %v2571_v2 = vor.u32 %v2570_v17, %v2567_v42  ;;  %v2577_v18 = vshll.u32 %v2467_v33, 16  ;;  %v2468_v12 = vmul.bf16 %v11127_v61, %v11108_v23  ;;  %v2469_v28 = vmul.bf16 %v11131_v52, %v11123_v8 }
 0x111   : > { %v11136_v15 = vsel %vm1467_vm6, %v2419_v13, %v2428_v1  ;;  %v2433_v29 = vrot.slane %v2431_v34, 3  ;;  %v2436_v48 = vrot.slane %v2434_v56, 4 }
 0x112   : > { %12631 = vst [vmem:[#allocation34_spill] sm:$0xff] %v11136_v15  ;;  %v2572_v40 = vsel %vm1022_vm5, %v2562_v46, %v2571_v2  ;;  %v2579_v21 = vrot.slane %v2577_v18, 5  ;;  %v2583_v17 = vshrl.u32 %v2468_v12, 16  ;;  %v2586_v33 = vshll.u32 %v2468_v12, 16 }
 0x113   : > { %v11139_v6 = vor.u32 %v2436_v48, %v2433_v29  ;;  %9231 = vmatmul.mubr.msk.bf16.gmra.mrb[16].mxu0 %vm385_vm1, %v2572_v40  ;;  %v2592_v50 = vshrl.u32 %v2469_v28, 16  ;;  %v2595_v10 = vshll.u32 %v2469_v28, 16  ;;  %v2470_v53 = vmul.bf16 %v11142_v41, %v11136_v15  ;;  %v11152_v48 = vld [vmem:[#allocation2 + $0x78] sm:$0xff] }
 0x114   : > { %v2580_v13 = vor.u32 %v2579_v21, %v2576_v16  ;;  %v2585_v26 = vrot.slane %v2583_v17, 4  ;;  %v2588_v27 = vrot.slane %v2586_v33, 5 }
 0x115   : > { %12632 = vst [vmem:[#allocation35_spill] sm:$0xff] %v11139_v6  ;;  %v2594_v42 = vrot.slane %v2592_v50, 4  ;;  %v2597_v34 = vrot.slane %v2595_v10, 5  ;;  %v2601_v46 = vshrl.u32 %v2470_v53, 16  ;;  %v2604_v56 = vshll.u32 %v2470_v53, 16  ;;  %v11158_v10 = vld [vmem:[#allocation2 + $0x80] sm:$0xff] }
 0x116   : > { %v2581_v18 = vsel %vm1022_vm5, %v2571_v2, %v2580_v13  ;;  %v2589_v12 = vor.u32 %v2588_v27, %v2585_v26  ;;  %v11149_v29 = vsel %vm1467_vm6, %v2428_v1, %v11139_v6  ;;  %v2472_v1 = vmul.bf16 %v11158_v10, %v11139_v6 }
 0x117   : > { %12633 = vst [vmem:[#allocation36_spill] sm:$0xff] %v11149_v29  ;;  %9234 = vmatprep.mubr.msk.bf16.mxu0 %vm385_vm1, %v2581_v18  ;;  %v2598_v28 = vor.u32 %v2597_v34, %v2594_v42  ;;  %v2471_v16 = vmul.bf16 %v11152_v48, %v11149_v29  ;;  %v2603_v21 = vrot.slane %v2601_v46, 4  ;;  %v2606_v17 = vrot.slane %v2604_v56, 5 }
 0x118   : > { %v2590_v40 = vsel %vm1022_vm5, %v2580_v13, %v2589_v12  ;;  %v2871_v53 = vmul.bf16 %v10998_v25, %v10829_v51  ;;  %v2872_v13 = vmul.bf16 %v11014_v9, %v10835_v4  ;;  %v2619_v46 = vshrl.u32 %v2472_v1, 16 }
 0x119   : > { %v2599_v33 = vsel %vm1022_vm5, %v2589_v12, %v2598_v28  ;;  %v2610_v2 = vshrl.u32 %v2471_v16, 16  ;;  %v2613_v50 = vshll.u32 %v2471_v16, 16  ;;  %v2607_v42 = vor.u32 %v2606_v17, %v2603_v21 }
 0x11a   : > { %v2622_v56 = vshll.u32 %v2472_v1, 16  ;;  %v2891_v18 = vshrl.u32 %v2871_v53, 16  ;;  %v2894_v12 = vshll.u32 %v2871_v53, 16  ;;  %v2899_v16 = vshrl.u32 %v2872_v13, 16 }
 0x11b   : > { %9235 = vmatmul.mubr.msk.bf16.gmra.mrb[20].mxu0 %vm385_vm1, %v2590_v40  ;;  %v2612_v26 = vrot.slane %v2610_v2, 4  ;;  %v2615_v27 = vrot.slane %v2613_v50, 5  ;;  %v2902_v6 = vshll.u32 %v2872_v13, 16  ;;  %v2608_v29 = vsel %vm1022_vm5, %v2598_v28, %v2607_v42 }
 0x11c   : > { %9238 = vmatprep.mubr.msk.bf16.mxu0 %vm385_vm1, %v2599_v33  ;;  %v2621_v40 = vrot.slane %v2619_v46, 4  ;;  %v2624_v2 = vrot.slane %v2622_v56, 5  ;;  %v2893_v50 = vrot.slane %v2891_v18, 3  ;;  %v2873_v4 = vmul.bf16 %v11021_v59, %v10844_v38 }
 0x11d   : > { %v2616_v34 = vor.u32 %v2615_v27, %v2612_v26  ;;  %v2896_v21 = vrot.slane %v2894_v12, 4  ;;  %v2901_v17 = vrot.slane %v2899_v16, 3  ;;  %v2904_v33 = vrot.slane %v2902_v6, 4 }
 0x11e   : > { %v2874_v1 = vmul.bf16 %v11037_v30, %v10851_v45  ;;  %v2625_v53 = vor.u32 %v2624_v2, %v2621_v40  ;;  %v2908_v28 = vshrl.u32 %v2873_v4, 16  ;;  %v2911_v26 = vshll.u32 %v2873_v4, 16 }
 0x11f   : > { %v2617_v51 = vsel %vm1022_vm5, %v2607_v42, %v2616_v34  ;;  %v2897_v27 = vor.u32 %v2896_v21, %v2893_v50  ;;  %v2905_v13 = vor.u32 %v2904_v33, %v2901_v17  ;;  %v2876_v4 = vmul.bf16 %v11066_v31, %v10869_v39 }
 0x120   : > { %v2917_v42 = vshrl.u32 %v2874_v1, 16  ;;  %v2920_v46 = vshll.u32 %v2874_v1, 16  ;;  %v2626_v56 = vsel %vm1022_vm5, %v2616_v34, %v2625_v53  ;;  %v2910_v18 = vrot.slane %v2908_v28, 3 }
 0x121   : > { %v2913_v38 = vrot.slane %v2911_v26, 4  ;;  %v2906_v6 = vsel %vm1467_vm6, %v2897_v27, %v2905_v13  ;;  %v2935_v50 = vshrl.u32 %v2876_v4, 16  ;;  %v2938_v21 = vshll.u32 %v2876_v4, 16  ;;  %v11192_v26 = vld [vmem:[%s12471_s1 + $0xa] sm:$0x3] }
 0x122   : > { %v2919_v12 = vrot.slane %v2917_v42, 3  ;;  %v3295_v17 = vsel %vm1302_vm0, %v11049_v5, 0  ;;  %v2877_v28 = vmul.bf16 %v11071_v3, %v10882_v14  ;;  %v2878_v5 = vmul.bf16 %v11085_v57, %v10895_v36 }
 0x123   : > { %9239 = vmatmul.mubr.msk.bf16.gmra.mrb[24].mxu0 %vm385_vm1, %v2608_v29  ;;  %v2875_v29 = vmul.bf16 %v11041_v20, %v10861_v0  ;;  %v2914_v16 = vor.u32 %v2913_v38, %v2910_v18  ;;  %v2937_v27 = vrot.slane %v2935_v50, 3  ;;  %v2940_v42 = vrot.slane %v2938_v21, 4 }
 0x124   : > { %9242 = vmatprep.mubr.msk.bf16.mxu0 %vm385_vm1, %v2617_v51  ;;  %v2922_v51 = vrot.slane %v2920_v46, 4  ;;  %v2944_v46 = vshrl.u32 %v2877_v28, 16  ;;  %v2880_v21 = vmul.bf16 %v11110_v32, %v10911_v24 }
 0x125   : > { %v2926_v40 = vshrl.u32 %v2875_v29, 16  ;;  %v2929_v2 = vshll.u32 %v2875_v29, 16  ;;  %v2915_v33 = vsel %vm1467_vm6, %v2905_v13, %v2914_v16  ;;  %v2941_v18 = vor.u32 %v2940_v42, %v2937_v27 }
 0x126   : > { %v2923_v34 = vor.u32 %v2922_v51, %v2919_v12  ;;  %v2953_v29 = vshrl.u32 %v2878_v5, 16  ;;  %v2946_v51 = vrot.slane %v2944_v46, 3 }
 0x127   : > { %v2928_v1 = vrot.slane %v2926_v40, 3  ;;  %v2931_v53 = vrot.slane %v2929_v2, 4 }
 0x128   : > { %v2924_v38 = vsel %vm1467_vm6, %v2914_v16, %v2923_v34  ;;  %v2879_v16 = vmul.bf16 %v11093_v47, %v10903_v62  ;;  %v2955_v2 = vrot.slane %v2953_v29, 3  ;;  %v2882_v29 = vmul.bf16 %v11127_v61, %v10930_v19 }
 0x129   : > { %v2932_v13 = vor.u32 %v2931_v53, %v2928_v1  ;;  %v2971_v53 = vshrl.u32 %v2880_v21, 16 }
 0x12a   : > { %v2965_v1 = vshll.u32 %v2879_v16, 16 }
 0x12b   : > { %9243 = vmatmul.mubr.msk.bf16.gmra.mrb[28].mxu0 %vm385_vm1, %v2626_v56  ;;  %v2947_v56 = vshll.u32 %v2877_v28, 16  ;;  %v2933_v12 = vsel %vm1467_vm6, %v2923_v34, %v2932_v13  ;;  %v2942_v40 = vsel %vm1467_vm6, %v2932_v13, %v2941_v18  ;;  %v2974_v28 = vshll.u32 %v2880_v21, 16 }
 0x12c   : > { %9248 = vmatprep.mubr.msk.bf16.mxu0 %vm385_vm1, %v2906_v6  ;;  %v2956_v6 = vshll.u32 %v2878_v5, 16  ;;  %v2967_v42 = vrot.slane %v2965_v1, 4  ;;  %v2881_v5 = vmul.bf16 %v11114_v55, %v10921_v37  ;;  %v2973_v46 = vrot.slane %v2971_v53, 3 }
 0x12d   : > { %v2949_v4 = vrot.slane %v2947_v56, 4  ;;  %v2976_v56 = vrot.slane %v2974_v28, 4  ;;  %v2883_v21 = vmul.bf16 %v11131_v52, %v10937_v54  ;;  %v2884_v53 = vmul.bf16 %v11142_v41, %v10946_v22 }
 0x12e   : > { %v2958_v50 = vrot.slane %v2956_v6, 4 }
 0x130   : > { %v2959_v34 = vor.u32 %v2958_v50, %v2955_v2 }
 0x133   : > { %9249 = vmatmul.mubr.msk.bf16.vlgmr.msra.gmra.mrb[0].mxu0 %vm385_vm1, %v2915_v33  ;;  %v2962_v33 = vshrl.u32 %v2879_v16, 16  ;;  %v2992_v16 = vshll.u32 %v2882_v29, 16 }
 0x134   : > { %9281 = vmatpush3.bf16.msra.mxu0 %v3295_v17  ;;  %9252 = vmatprep.mubr.msk.bf16.mxu0 %vm385_vm1, %v2924_v38  ;;  %v2950_v17 = vor.u32 %v2949_v4, %v2946_v51  ;;  %v2983_v51 = vshll.u32 %v2881_v5, 16  ;;  %v2989_v4 = vshrl.u32 %v2882_v29, 16  ;;  %v2885_v29 = vmul.bf16 %v11152_v48, %v10957_v43 }
 0x135   : > { %10273 = vmatprep.subr.msk.bf16.mxu0 %vm1302_vm0, %v11192_v26  ;;  %v2964_v27 = vrot.slane %v2962_v33, 3  ;;  %v2994_v1 = vrot.slane %v2992_v16, 4 }
 0x136   : > { %v2951_v38 = vsel %vm1467_vm6, %v2941_v18, %v2950_v17  ;;  %v2960_v13 = vsel %vm1467_vm6, %v2950_v17, %v2959_v34  ;;  %v2977_v18 = vor.u32 %v2976_v56, %v2973_v46  ;;  %v2985_v50 = vrot.slane %v2983_v51, 4 }
 0x137   : > { %v2968_v6 = vor.u32 %v2967_v42, %v2964_v27  ;;  %v2991_v33 = vrot.slane %v2989_v4, 3  ;;  %v3001_v27 = vshll.u32 %v2883_v21, 16  ;;  %v3007_v42 = vshrl.u32 %v2884_v53, 16 }
 0x138   : > { %v2886_v4 = vmul.bf16 %v11158_v10, %v10969_v35 }
 0x139   : > { %v2978_v17 = vsel %vm1467_vm6, %v2968_v6, %v2977_v18  ;;  %v3003_v56 = vrot.slane %v3001_v27, 4 }
 0x13b   : > { %9253 = vmatmul.mubr.msk.bf16.gmra.mrb[4].mxu0 %vm385_vm1, %v2933_v12  ;;  %v2980_v12 = vshrl.u32 %v2881_v5, 16  ;;  %v3010_v5 = vshll.u32 %v2884_v53, 16 }
 0x13c   : > { %9256 = vmatprep.mubr.msk.bf16.mxu0 %vm385_vm1, %v2942_v40  ;;  %v2969_v40 = vsel %vm1467_vm6, %v2959_v34, %v2968_v6  ;;  %v2995_v34 = vor.u32 %v2994_v1, %v2991_v33 }
 0x13d   : > { %v2982_v2 = vrot.slane %v2980_v12, 3  ;;  %v3009_v12 = vrot.slane %v3007_v42, 3  ;;  %v3012_v51 = vrot.slane %v3010_v5, 4 }
 0x13f   : > { %v2986_v28 = vor.u32 %v2985_v50, %v2982_v2  ;;  %v3019_v2 = vshll.u32 %v2885_v29, 16  ;;  %v3025_v50 = vshrl.u32 %v2886_v4, 16 }
 0x141   : > { %v2996_v6 = vsel %vm1467_vm6, %v2986_v28, %v2995_v34  ;;  %v3021_v53 = vrot.slane %v3019_v2, 4  ;;  %v3027_v27 = vrot.slane %v3025_v50, 3  ;;  %v12636_v2 = vld [vmem:[#allocation6_spill] sm:$0xff]  ;;  %v12638_v50 = vld [vmem:[#allocation7_spill] sm:$0xff] }
 0x143   : > { %9257 = vmatmul.mubr.msk.bf16.gmra.mrb[8].mxu0 %vm385_vm1, %v2951_v38  ;;  %v2998_v38 = vshrl.u32 %v2883_v21, 16  ;;  %v3028_v21 = vshll.u32 %v2886_v4, 16 }
 0x144   : > { %9260 = vmatprep.mubr.msk.bf16.mxu0 %vm385_vm1, %v2960_v13  ;;  %v2987_v13 = vsel %vm1467_vm6, %v2977_v18, %v2986_v28  ;;  %v3013_v18 = vor.u32 %v3012_v51, %v3009_v12 }
 0x145   : > { %v3000_v46 = vrot.slane %v2998_v38, 3  ;;  %v3030_v42 = vrot.slane %v3028_v21, 4  ;;  %v12639_v21 = vld [vmem:[#allocation8_spill] sm:$0xff] }
 0x147   : > { %v3004_v16 = vor.u32 %v3003_v56, %v3000_v46  ;;  %v3031_v56 = vor.u32 %v3030_v42, %v3027_v27 }
 0x149   : > { %v3005_v33 = vsel %vm1467_vm6, %v2995_v34, %v3004_v16  ;;  %v3014_v38 = vsel %vm1467_vm6, %v3004_v16, %v3013_v18  ;;  %v3710_v16 = vsel %vm1302_vm0, %v11192_v26, 0  ;;  %v12635_v26 = vld [vmem:[#allocation5_spill] sm:$0xff] }
 0x14b   : > { %9261 = vmatmul.mubr.msk.bf16.gmra.mrb[12].mxu0 %vm385_vm1, %v2969_v40  ;;  %v3016_v40 = vshrl.u32 %v2885_v29, 16 }
 0x14c   : > { %9264 = vmatprep.mubr.msk.bf16.mxu0 %vm385_vm1, %v2978_v17  ;;  %v11233_v17 = vld [vmem:[#allocation2 + $0x88] sm:$0xff] }
 0x14d   : > { %v3018_v1 = vrot.slane %v3016_v40, 3  ;;  %v2887_v28 = vmul.bf16 %v10960_v58, %v11233_v17  ;;  %v8628_v40 = vld [vmem:[%s12471_s1 + $0xc] sm:$0x3] }
 0x14f   : > { %v3022_v5 = vor.u32 %v3021_v53, %v3018_v1  ;;  %v3037_v46 = vshll.u32 %v2887_v28, 16  ;;  %v12641_v1 = vld [vmem:[#allocation21_spill] sm:$0xff] }
 0x150   : > { %v3491_v53 = vmul.bf16 %v11014_v9, %v12641_v1 }
 0x151   : > { %v3023_v29 = vsel %vm1467_vm6, %v3013_v18, %v3022_v5  ;;  %v3032_v12 = vsel %vm1467_vm6, %v3022_v5, %v3031_v56  ;;  %v12637_v18 = vmov 0  }
 0x152   : > { %5050 = vst.msk [vmem:[#allocation3] sm:$0xff] %vm5049_vm7, %v12637_v18  ;;  %5055 = vst.msk [vmem:[#allocation3 + $0x90] sm:$0xff] %vm5049_vm7, %v12637_v18  ;;  %v3518_v42 = vshrl.u32 %v3491_v53, 16  ;;  %v3521_v5 = vshll.u32 %v3491_v53, 16 }
 0x153   : > { %9265 = vmatmul.mubr.msk.bf16.gmra.mrb[16].mxu0 %vm385_vm1, %v2987_v13  ;;  %v3034_v13 = vshrl.u32 %v2887_v28, 16  ;;  %v12642_v28 = vld [vmem:[#allocation10_spill] sm:$0xff] }
 0x154   : > { %9268 = vmatprep.mubr.msk.bf16.mxu0 %vm385_vm1, %v2996_v6  ;;  %v3039_v6 = vrot.slane %v3037_v46, 4 }
 0x155   : > { %v3036_v34 = vrot.slane %v3034_v13, 3 }
 0x157   : > { %v3040_v51 = vor.u32 %v3039_v6, %v3036_v34  ;;  %v12645_v34 = vld [vmem:[#allocation12_spill] sm:$0xff]  ;;  %v3520_v6 = vrot.slane %v3518_v42, 4 }
 0x159   : > { %v3041_v4 = vsel %vm1467_vm6, %v3031_v56, %v3040_v51  ;;  %v12644_v56 = vld [vmem:[#allocation22_spill] sm:$0xff]  ;;  %v12646_v51 = vld [vmem:[#allocation23_spill] sm:$0xff] }
 0x15a   : > { %v3493_v9 = vmul.bf16 %v11037_v30, %v12646_v51 }
 0x15b   : > { %9269 = vmatmul.mubr.msk.bf16.gmra.mrb[20].mxu0 %vm385_vm1, %v3005_v33  ;;  %v12640_v33 = vld [vmem:[#allocation9_spill] sm:$0xff] }
 0x15c   : > { %9272 = vmatprep.mubr.msk.bf16.mxu0 %vm385_vm1, %v3014_v38  ;;  %v12643_v38 = vld [vmem:[#allocation20_spill] sm:$0xff]  ;;  %v3536_v1 = vshrl.u32 %v3493_v9, 16 }
 0x15d   : > { %v3490_v27 = vmul.bf16 %v10998_v25, %v12643_v38  ;;  %v12536_v25 = vrot.slane %v11233_v17, 4 }
 0x15f   : > { %v3510_v13 = vshrl.u32 %v3490_v27, 16  ;;  %v3513_v46 = vshll.u32 %v3490_v27, 16 }
 0x161   : > { %v3515_v53 = vrot.slane %v3513_v46, 5  ;;  %v3538_v46 = vrot.slane %v3536_v1, 4 }
 0x163   : > { %9273 = vmatmul.mubr.msk.bf16.gmra.mrb[24].mxu0 %vm385_vm1, %v3023_v29  ;;  %v3492_v29 = vmul.bf16 %v11021_v59, %v12644_v56  ;;  %v3539_v59 = vshll.u32 %v3493_v9, 16  ;;  %v12648_v56 = vld [vmem:[#allocation11_spill] sm:$0xff] }
 0x164   : > { %9276 = vmatprep.mubr.msk.bf16.mxu0 %vm385_vm1, %v3032_v12  ;;  %v3523_v12 = vrot.slane %v3521_v5, 5  ;;  %v12649_v42 = vrot.slane %v12648_v56, 4 }
 0x165   : > { %v3527_v18 = vshrl.u32 %v3492_v29, 16  ;;  %v3530_v27 = vshll.u32 %v3492_v29, 16  ;;  %v3541_v29 = vrot.slane %v3539_v59, 5  ;;  %v11318_v59 = vld [vmem:[%s12471_s1 + $0xe] sm:$0x3] }
 0x166   : > { %v3524_v38 = vor.u32 %v3523_v12, %v3520_v6  ;;  %v11301_v5 = vsel %vm1220_vm4, %v12649_v42, %v12536_v25  ;;  %v12652_v6 = vld [vmem:[#allocation25_spill] sm:$0xff]  ;;  %v4125_v42 = vsel %vm1302_vm0, %v8628_v40, 0 }
 0x167   : > { %v3495_v12 = vmul.bf16 %v11066_v31, %v12652_v6  ;;  %v12656_v6 = vld [vmem:[#allocation29_spill] sm:$0xff] }
 0x16b   : > { %9277 = vmatmul.mubr.msk.bf16.gmra.mrb[28].mxu0 %vm385_vm1, %v3041_v4  ;;  %v12647_v4 = vld [vmem:[#allocation13_spill] sm:$0xff] }
 0x16c   : > { %9282 = vmatprep.mubr.msk.bf16.mxu0 %vm385_vm1, %v10554_v44  ;;  %v12634_v44 = vld [vmem:[#allocation4_spill] sm:$0xff] }
 0x16d   : > { %12650 = vst [vmem:[#allocation4_spill] sm:$0xff] %v11301_v5 }
 0x173   : > { %9283 = vmatmul.mubr.msk.bf16.vlgmr.msra.gmra.mrb[0].mxu0 %vm385_vm1, %v10567_v49 }
 0x174   : > { %9315 = vmatpush3.bf16.msra.mxu0 %v3710_v16  ;;  %9286 = vmatprep.mubr.msk.bf16.mxu0 %vm385_vm1, %v10591_v60  ;;  %v3512_v16 = vrot.slane %v3510_v13, 4 }
 0x175   : > { %10274 = vmatprep.subr.msk.bf16.mxu0 %vm1302_vm0, %v8628_v40 }
 0x176   : > { %v3516_v51 = vor.u32 %v3515_v53, %v3512_v16  ;;  %v3554_v53 = vshrl.u32 %v3495_v12, 16 }
 0x178   : > { %v3525_v13 = vsel %vm1022_vm5, %v3516_v51, %v3524_v38  ;;  %v12653_v51 = vld [vmem:[#allocation26_spill] sm:$0xff] }
 0x179   : > { %v3496_v1 = vmul.bf16 %v11071_v3, %v12653_v51 }
 0x17b   : > { %9287 = vmatmul.mubr.msk.bf16.gmra.mrb[4].mxu0 %vm385_vm1, %v10598_v63 }
 0x17c   : > { %9290 = vmatprep.mubr.msk.bf16.mxu0 %vm385_vm1, %v10624_v7 }
 0x183   : > { %9291 = vmatmul.mubr.msk.bf16.gmra.mrb[8].mxu0 %vm385_vm1, %v10635_v11 }
 0x184   : > { %9294 = vmatprep.mubr.msk.bf16.mxu0 %vm385_vm1, %v12634_v44 }
 0x18b   : > { %9295 = vmatmul.mubr.msk.bf16.gmra.mrb[12].mxu0 %vm385_vm1, %v12635_v26 }
 0x18c   : > { %9298 = vmatprep.mubr.msk.bf16.mxu0 %vm385_vm1, %v12636_v2 }
 0x193   : > { %9299 = vmatmul.mubr.msk.bf16.gmra.mrb[16].mxu0 %vm385_vm1, %v12638_v50 }
 0x194   : > { %9302 = vmatprep.mubr.msk.bf16.mxu0 %vm385_vm1, %v12639_v21 }
 0x19b   : > { %9303 = vmatmul.mubr.msk.bf16.gmra.mrb[20].mxu0 %vm385_vm1, %v12640_v33 }
 0x19c   : > { %9306 = vmatprep.mubr.msk.bf16.mxu0 %vm385_vm1, %v12642_v28  ;;  %v3532_v28 = vrot.slane %v3530_v27, 5  ;;  %v3557_v27 = vshll.u32 %v3495_v12, 16 }
 0x1a3   : > { %9307 = vmatmul.mubr.msk.bf16.gmra.mrb[24].mxu0 %vm385_vm1, %v12645_v34  ;;  %v3529_v34 = vrot.slane %v3527_v18, 4  ;;  %v3542_v18 = vor.u32 %v3541_v29, %v3538_v46  ;;  %v3563_v46 = vshrl.u32 %v3496_v1, 16  ;;  %v3566_v29 = vshll.u32 %v3496_v1, 16 }
 0x1a4   : > { %9310 = vmatprep.mubr.msk.bf16.mxu0 %vm385_vm1, %v12647_v4  ;;  %v12651_v4 = vld [vmem:[#allocation24_spill] sm:$0xff] }
 0x1a5   : > { %v3494_v33 = vmul.bf16 %v11041_v20, %v12651_v4  ;;  %v3533_v56 = vor.u32 %v3532_v28, %v3529_v34  ;;  %v3556_v28 = vrot.slane %v3554_v53, 4  ;;  %v3559_v34 = vrot.slane %v3557_v27, 5  ;;  %v12655_v27 = vld [vmem:[#allocation28_spill] sm:$0xff] }
 0x1a6   : > { %v3568_v53 = vrot.slane %v3566_v29, 5  ;;  %v3498_v51 = vmul.bf16 %v11093_v47, %v12655_v27 }
 0x1a7   : > { %v3545_v9 = vshrl.u32 %v3494_v33, 16  ;;  %v3548_v16 = vshll.u32 %v3494_v33, 16  ;;  %v3534_v25 = vsel %vm1022_vm5, %v3524_v38, %v3533_v56  ;;  %v3543_v33 = vsel %vm1022_vm5, %v3533_v56, %v3542_v18 }
 0x1a8   : > { %v3560_v12 = vor.u32 %v3559_v34, %v3556_v28  ;;  %v3565_v56 = vrot.slane %v3563_v46, 4  ;;  %v3581_v1 = vshrl.u32 %v3498_v51, 16  ;;  %v3584_v28 = vshll.u32 %v3498_v51, 16 }
 0x1a9   : > { %v3547_v4 = vrot.slane %v3545_v9, 4 }
 0x1aa   : > { %v3583_v29 = vrot.slane %v3581_v1, 4  ;;  %v3586_v27 = vrot.slane %v3584_v28, 5 }
 0x1ab   : > { %9311 = vmatmul.mubr.msk.bf16.gmra.mrb[28].mxu0 %vm385_vm1, %v11301_v5  ;;  %v3550_v5 = vrot.slane %v3548_v16, 5 }
 0x1ac   : > { %9316 = vmatprep.mubr.msk.bf16.mxu0 %vm385_vm1, %v3525_v13  ;;  %v12654_v13 = vld [vmem:[#allocation27_spill] sm:$0xff]  ;;  %v3587_v51 = vor.u32 %v3586_v27, %v3583_v29  ;;  %v3503_v27 = vmul.bf16 %v11142_v41, %v11123_v8 }
 0x1ad   : > { %v3497_v40 = vmul.bf16 %v11085_v57, %v12654_v13  ;;  %v3551_v38 = vor.u32 %v3550_v5, %v3547_v4  ;;  %v3499_v4 = vmul.bf16 %v11110_v32, %v12656_v6  ;;  %v3569_v5 = vor.u32 %v3568_v53, %v3565_v56 }
 0x1af   : > { %v3572_v9 = vshrl.u32 %v3497_v40, 16  ;;  %v3575_v16 = vshll.u32 %v3497_v40, 16  ;;  %v3590_v34 = vshrl.u32 %v3499_v4, 16  ;;  %v3593_v40 = vshll.u32 %v3499_v4, 16 }
 0x1b0   : > { %v3570_v46 = vsel %vm1022_vm5, %v3560_v12, %v3569_v5 }
 0x1b1   : > { %v3577_v13 = vrot.slane %v3575_v16, 5  ;;  %v3592_v16 = vrot.slane %v3590_v34, 4  ;;  %v3595_v6 = vrot.slane %v3593_v40, 5 }
 0x1b3   : > { %9317 = vmatmul.mubr.msk.bf16.vlgmr.msra.gmra.mrb[0].mxu0 %vm385_vm1, %v3534_v25  ;;  %v3552_v25 = vsel %vm1022_vm5, %v3542_v18, %v3551_v38 }
 0x1b4   : > { %9349 = vmatpush3.bf16.msra.mxu0 %v4125_v42  ;;  %9320 = vmatprep.mubr.msk.bf16.mxu0 %vm385_vm1, %v3543_v33  ;;  %v3561_v42 = vsel %vm1022_vm5, %v3551_v38, %v3560_v12  ;;  %v3574_v33 = vrot.slane %v3572_v9, 4  ;;  %v3596_v12 = vor.u32 %v3595_v6, %v3592_v16  ;;  %v3629_v16 = vshll.u32 %v3503_v27, 16 }
 0x1b5   : > { %10275 = vmatprep.subr.msk.bf16.mxu0 %vm1302_vm0, %v11318_v59 }
 0x1b6   : > { %v3578_v18 = vor.u32 %v3577_v13, %v3574_v33  ;;  %v3597_v34 = vsel %vm1022_vm5, %v3587_v51, %v3596_v12 }
 0x1b8   : > { %v3579_v9 = vsel %vm1022_vm5, %v3569_v5, %v3578_v18  ;;  %v3588_v1 = vsel %vm1022_vm5, %v3578_v18, %v3587_v51  ;;  %v3502_v5 = vmul.bf16 %v11131_v52, %v11108_v23  ;;  %v3504_v51 = vmul.bf16 %v11152_v48, %v11136_v15 }
 0x1ba   : > { %v3617_v29 = vshrl.u32 %v3502_v5, 16 }
 0x1bb   : > { %9321 = vmatmul.mubr.msk.bf16.gmra.mrb[4].mxu0 %vm385_vm1, %v3552_v25  ;;  %v12657_v25 = vld [vmem:[#allocation30_spill] sm:$0xff] }
 0x1bc   : > { %9324 = vmatprep.mubr.msk.bf16.mxu0 %vm385_vm1, %v3561_v42  ;;  %v3500_v38 = vmul.bf16 %v11114_v55, %v12657_v25  ;;  %v12658_v42 = vld [vmem:[#allocation31_spill] sm:$0xff] }
 0x1bd   : > { %v3501_v56 = vmul.bf16 %v11127_v61, %v12658_v42 }
 0x1be   : > { %v3599_v13 = vshrl.u32 %v3500_v38, 16  ;;  %v3602_v53 = vshll.u32 %v3500_v38, 16  ;;  %v3620_v38 = vshll.u32 %v3502_v5, 16  ;;  %v3635_v5 = vshrl.u32 %v3504_v51, 16 }
 0x1bf   : > { %v3608_v33 = vshrl.u32 %v3501_v56, 16  ;;  %v3611_v4 = vshll.u32 %v3501_v56, 16 }
 0x1c0   : > { %v3601_v28 = vrot.slane %v3599_v13, 4  ;;  %v3604_v25 = vrot.slane %v3602_v53, 5  ;;  %v3619_v13 = vrot.slane %v3617_v29, 4  ;;  %v3622_v53 = vrot.slane %v3620_v38, 5  ;;  %v12660_v29 = vld [vmem:[#allocation35_spill] sm:$0xff] }
 0x1c1   : > { %v3610_v40 = vrot.slane %v3608_v33, 4  ;;  %v3506_v38 = vmul.bf16 %v12660_v29, %v11233_v17  ;;  %v3637_v15 = vrot.slane %v3635_v5, 4 }
 0x1c2   : > { %v3605_v6 = vor.u32 %v3604_v25, %v3601_v28  ;;  %v3623_v28 = vor.u32 %v3622_v53, %v3619_v13 }
 0x1c3   : > { %9325 = vmatmul.mubr.msk.bf16.gmra.mrb[8].mxu0 %vm385_vm1, %v3570_v46  ;;  %v3613_v46 = vrot.slane %v3611_v4, 5 }
 0x1c4   : > { %9328 = vmatprep.mubr.msk.bf16.mxu0 %vm385_vm1, %v3579_v9  ;;  %v3626_v9 = vshrl.u32 %v3503_v27, 16  ;;  %v3606_v56 = vsel %vm1022_vm5, %v3596_v12, %v3605_v6 }
 0x1c5   : > { %v3614_v18 = vor.u32 %v3613_v46, %v3610_v40  ;;  %v3638_v40 = vshll.u32 %v3504_v51, 16 }
 0x1c6   : > { %v3628_v4 = vrot.slane %v3626_v9, 4  ;;  %v11362_v9 = vld [vmem:[#allocation2 + $0x10] sm:$0xff] }
 0x1c7   : > { %v3615_v33 = vsel %vm1022_vm5, %v3605_v6, %v3614_v18  ;;  %v3640_v6 = vrot.slane %v3638_v40, 5  ;;  %12661 = vst [vmem:[#allocation5_spill] sm:$0xff] %v11362_v9 }
 0x1c9   : > { %v3641_v5 = vor.u32 %v3640_v6, %v3637_v15 }
 0x1cb   : > { %9329 = vmatmul.mubr.msk.bf16.gmra.mrb[12].mxu0 %vm385_vm1, %v3588_v1  ;;  %v3631_v1 = vrot.slane %v3629_v16, 5  ;;  %v12662_v16 = vld [vmem:[#allocation14_spill] sm:$0xff] }
 0x1cc   : > { %9332 = vmatprep.mubr.msk.bf16.mxu0 %vm385_vm1, %v3597_v34  ;;  %v12659_v34 = vld [vmem:[#allocation36_spill] sm:$0xff] }
 0x1cd   : > { %v3505_v25 = vmul.bf16 %v11158_v10, %v12659_v34  ;;  %v3632_v12 = vor.u32 %v3631_v1, %v3628_v4  ;;  %v3905_v34 = vmul.bf16 %v11362_v9, %v12662_v16  ;;  %v12663_v4 = vld [vmem:[#allocation15_spill] sm:$0xff]  ;;  %v12664_v9 = vld [vmem:[#allocation16_spill] sm:$0xff] }
 0x1ce   : > { %v3907_v21 = vmul.bf16 %v11037_v30, %v12664_v9 }
 0x1cf   : > { %v3644_v46 = vshrl.u32 %v3505_v25, 16  ;;  %v3647_v27 = vshll.u32 %v3505_v25, 16  ;;  %v3633_v13 = vsel %vm1022_vm5, %v3623_v28, %v3632_v12  ;;  %v3656_v25 = vshll.u32 %v3506_v38, 16 }
 0x1d0   : > { %v3925_v40 = vshrl.u32 %v3905_v34, 16  ;;  %v3928_v29 = vshll.u32 %v3905_v34, 16  ;;  %v3908_v34 = vmul.bf16 %v11041_v20, %v10851_v45 }
 0x1d1   : > { %v3646_v53 = vrot.slane %v3644_v46, 4  ;;  %v3649_v51 = vrot.slane %v3647_v27, 5  ;;  %v3658_v42 = vrot.slane %v3656_v25, 5 }
 0x1d2   : > { %v3927_v46 = vrot.slane %v3925_v40, 3  ;;  %v3930_v27 = vrot.slane %v3928_v29, 4  ;;  %v3951_v29 = vshrl.u32 %v3908_v34, 16 }
 0x1d3   : > { %9333 = vmatmul.mubr.msk.bf16.gmra.mrb[16].mxu0 %vm385_vm1, %v3606_v56  ;;  %v3624_v56 = vsel %vm1022_vm5, %v3614_v18, %v3623_v28  ;;  %v3653_v18 = vshrl.u32 %v3506_v38, 16  ;;  %v3650_v8 = vor.u32 %v3649_v51, %v3646_v53  ;;  %v3642_v28 = vsel %vm1022_vm5, %v3632_v12, %v3641_v5 }
 0x1d4   : > { %9336 = vmatprep.mubr.msk.bf16.mxu0 %vm385_vm1, %v3615_v33  ;;  %v11368_v33 = vld [vmem:[#allocation2 + $0x18] sm:$0xff]  ;;  %v3942_v53 = vshrl.u32 %v3907_v21, 16  ;;  %v3945_v51 = vshll.u32 %v3907_v21, 16  ;;  %v3931_v12 = vor.u32 %v3930_v27, %v3927_v46  ;;  %v3910_v21 = vmul.bf16 %v11071_v3, %v10869_v39  ;;  %v11397_v3 = vld [vmem:[%s12471_s1 + $0x10] sm:$0x3] }
 0x1d5   : > { %v3906_v1 = vmul.bf16 %v11368_v33, %v12663_v4 }
 0x1d6   : > { %v3944_v25 = vrot.slane %v3942_v53, 3  ;;  %v3947_v40 = vrot.slane %v3945_v51, 4  ;;  %v3969_v46 = vshrl.u32 %v3910_v21, 16  ;;  %v3972_v27 = vshll.u32 %v3910_v21, 16 }
 0x1d7   : > { %v3933_v16 = vshrl.u32 %v3906_v1, 16  ;;  %v3936_v23 = vshll.u32 %v3906_v1, 16  ;;  %v3914_v21 = vmul.bf16 %v11114_v55, %v10911_v24 }
 0x1d8   : > { %v3971_v53 = vrot.slane %v3969_v46, 3  ;;  %v3974_v51 = vrot.slane %v3972_v27, 4 }
 0x1d9   : > { %v3935_v38 = vrot.slane %v3933_v16, 3  ;;  %v3938_v15 = vrot.slane %v3936_v23, 4  ;;  %v3909_v16 = vmul.bf16 %v11066_v31, %v10861_v0  ;;  %v3953_v23 = vrot.slane %v3951_v29, 3 }
 0x1da   : > { %v4329_v31 = vsel %vm1302_vm0, %v11318_v59, 0  ;;  %v3912_v59 = vmul.bf16 %v11093_v47, %v10895_v36  ;;  %v3975_v29 = vor.u32 %v3974_v51, %v3971_v53  ;;  %v4005_v46 = vshrl.u32 %v3914_v21, 16 }
 0x1db   : > { %9337 = vmatmul.mubr.msk.bf16.gmra.mrb[20].mxu0 %vm385_vm1, %v3624_v56  ;;  %v3655_v56 = vrot.slane %v3653_v18, 4  ;;  %v3939_v1 = vor.u32 %v3938_v15, %v3935_v38  ;;  %v3954_v18 = vshll.u32 %v3908_v34, 16  ;;  %v3911_v34 = vmul.bf16 %v11085_v57, %v10882_v14 }
 0x1dc   : > { %9340 = vmatprep.mubr.msk.bf16.mxu0 %vm385_vm1, %v3633_v13  ;;  %v3651_v13 = vsel %vm1022_vm5, %v3641_v5, %v3650_v8  ;;  %v4008_v27 = vshll.u32 %v3914_v21, 16  ;;  %v4007_v55 = vrot.slane %v4005_v46, 3 }
 0x1dd   : > { %v3659_v6 = vor.u32 %v3658_v42, %v3655_v56  ;;  %v3940_v20 = vsel %vm1467_vm6, %v3931_v12, %v3939_v1  ;;  %v3956_v5 = vrot.slane %v3954_v18, 4  ;;  %v3948_v42 = vor.u32 %v3947_v40, %v3944_v25 }
 0x1de   : > { %v3960_v56 = vshrl.u32 %v3909_v16, 16  ;;  %v3978_v12 = vshrl.u32 %v3911_v34, 16  ;;  %v3987_v18 = vshrl.u32 %v3912_v59, 16 }
 0x1df   : > { %v3660_v30 = vsel %vm1022_vm5, %v3650_v8, %v3659_v6  ;;  %v3957_v8 = vor.u32 %v3956_v5, %v3953_v23 }
 0x1e0   : > { %v3962_v38 = vrot.slane %v3960_v56, 3  ;;  %v3980_v40 = vrot.slane %v3978_v12, 3  ;;  %v3989_v23 = vrot.slane %v3987_v18, 3 }
 0x1e1   : > { %v3958_v6 = vsel %vm1467_vm6, %v3948_v42, %v3957_v8 }
 0x1e3   : > { %9341 = vmatmul.mubr.msk.bf16.gmra.mrb[24].mxu0 %vm385_vm1, %v3642_v28  ;;  %v3963_v28 = vshll.u32 %v3909_v16, 16 }
 0x1e4   : > { %9344 = vmatprep.mubr.msk.bf16.mxu0 %vm385_vm1, %v3651_v13  ;;  %v3949_v13 = vsel %vm1467_vm6, %v3939_v1, %v3948_v42  ;;  %v3981_v1 = vshll.u32 %v3911_v34, 16  ;;  %v4010_v34 = vrot.slane %v4008_v27, 4 }
 0x1e5   : > { %v3965_v15 = vrot.slane %v3963_v28, 4 }
 0x1e6   : > { %v3983_v16 = vrot.slane %v3981_v1, 4 }
 0x1e7   : > { %v3966_v57 = vor.u32 %v3965_v15, %v3962_v38  ;;  %v3915_v38 = vmul.bf16 %v11127_v61, %v10921_v37 }
 0x1e8   : > { %v3984_v42 = vor.u32 %v3983_v16, %v3980_v40  ;;  %v3918_v16 = vmul.bf16 %v11152_v48, %v10946_v22 }
 0x1e9   : > { %v3967_v25 = vsel %vm1467_vm6, %v3957_v8, %v3966_v57  ;;  %v3976_v47 = vsel %vm1467_vm6, %v3966_v57, %v3975_v29  ;;  %v4014_v51 = vshrl.u32 %v3915_v38, 16  ;;  %v4011_v57 = vor.u32 %v4010_v34, %v4007_v55 }
 0x1ea   : > { %v4041_v21 = vshrl.u32 %v3918_v16, 16 }
 0x1eb   : > { %9345 = vmatmul.mubr.msk.bf16.gmra.mrb[28].mxu0 %vm385_vm1, %v3660_v30  ;;  %v3990_v30 = vshll.u32 %v3912_v59, 16  ;;  %v4017_v59 = vshll.u32 %v3915_v38, 16  ;;  %v4016_v61 = vrot.slane %v4014_v51, 3 }
 0x1ec   : > { %9350 = vmatprep.mubr.msk.bf16.mxu0 %vm385_vm1, %v3940_v20  ;;  %v3913_v20 = vmul.bf16 %v11110_v32, %v10903_v62  ;;  %v4043_v48 = vrot.slane %v4041_v21, 3 }
 0x1ed   : > { %v3992_v5 = vrot.slane %v3990_v30, 4  ;;  %v4019_v18 = vrot.slane %v4017_v59, 4  ;;  %v3917_v30 = vmul.bf16 %v11142_v41, %v10937_v54 }
 0x1ee   : > { %v3996_v56 = vshrl.u32 %v3913_v20, 16  ;;  %v3999_v28 = vshll.u32 %v3913_v20, 16 }
 0x1ef   : > { %v3993_v8 = vor.u32 %v3992_v5, %v3989_v23  ;;  %v4020_v20 = vor.u32 %v4019_v18, %v4016_v61  ;;  %v4035_v23 = vshll.u32 %v3917_v30, 16 }
 0x1f0   : > { %v3998_v32 = vrot.slane %v3996_v56, 3 }
 0x1f1   : > { %v3994_v15 = vsel %vm1467_vm6, %v3984_v42, %v3993_v8  ;;  %v4021_v56 = vsel %vm1467_vm6, %v4011_v57, %v4020_v20 }
 0x1f3   : > { %9351 = vmatmul.mubr.msk.bf16.vlgmr.msra.gmra.mrb[0].mxu0 %vm385_vm1, %v3949_v13  ;;  %v4001_v13 = vrot.slane %v3999_v28, 4  ;;  %v4037_v28 = vrot.slane %v4035_v23, 4  ;;  %v4744_v23 = vsel %vm1302_vm0, %v11397_v3, 0 }
 0x1f4   : > { %9383 = vmatpush3.bf16.msra.mxu0 %v4329_v31  ;;  %9354 = vmatprep.mubr.msk.bf16.mxu0 %vm385_vm1, %v3958_v6  ;;  %v3985_v31 = vsel %vm1467_vm6, %v3975_v29, %v3984_v42  ;;  %v3916_v6 = vmul.bf16 %v11131_v52, %v10930_v19  ;;  %v4044_v42 = vshll.u32 %v3918_v16, 16 }
 0x1f5   : > { %10276 = vmatprep.subr.msk.bf16.mxu0 %vm1302_vm0, %v11397_v3  ;;  %v4002_v53 = vor.u32 %v4001_v13, %v3998_v32 }
 0x1f6   : > { %v4023_v12 = vshrl.u32 %v3916_v6, 16  ;;  %v4026_v1 = vshll.u32 %v3916_v6, 16  ;;  %v4046_v27 = vrot.slane %v4044_v42, 4  ;;  %v11438_v6 = vld [vmem:[#allocation2 + $0x90] sm:$0xff] }
 0x1f7   : > { %v4003_v29 = vsel %vm1467_vm6, %v3993_v8, %v4002_v53  ;;  %v3919_v8 = vmul.bf16 %v11158_v10, %v10957_v43  ;;  %v3921_v59 = vmul.bf16 %v10960_v58, %v11438_v6 }
 0x1f8   : > { %v4025_v52 = vrot.slane %v4023_v12, 3  ;;  %v4028_v40 = vrot.slane %v4026_v1, 4 }
 0x1f9   : > { %v4050_v13 = vshrl.u32 %v3919_v8, 16  ;;  %v4053_v38 = vshll.u32 %v3919_v8, 16  ;;  %v4068_v61 = vshrl.u32 %v3921_v59, 16  ;;  %v4071_v18 = vshll.u32 %v3921_v59, 16  ;;  %v12673_v8 = vld [vmem:[#allocation13_spill] sm:$0xff] }
 0x1fa   : > { %v4029_v5 = vor.u32 %v4028_v40, %v4025_v52  ;;  %v12676_v59 = vrot.slane %v11233_v17, 4 }
 0x1fb   : > { %9355 = vmatmul.mubr.msk.bf16.gmra.mrb[4].mxu0 %vm385_vm1, %v3967_v25  ;;  %v4012_v25 = vsel %vm1467_vm6, %v4002_v53, %v4011_v57  ;;  %v4052_v53 = vrot.slane %v4050_v13, 3  ;;  %v4055_v51 = vrot.slane %v4053_v38, 4  ;;  %v4070_v52 = vrot.slane %v4068_v61, 3  ;;  %v10336_v61 = vld [vmem:[#allocation2 + $0x30] sm:$0xff] }
 0x1fc   : > { %9358 = vmatprep.mubr.msk.bf16.mxu0 %vm385_vm1, %v3976_v47  ;;  %v4032_v47 = vshrl.u32 %v3917_v30, 16  ;;  %v4030_v46 = vsel %vm1467_vm6, %v4020_v20, %v4029_v5  ;;  %v4073_v40 = vrot.slane %v4071_v18, 4  ;;  %v4323_v13 = vrot.slane %v11438_v6, 4  ;;  %v12677_v18 = vld [vmem:[#allocation24_spill] sm:$0xff] }
 0x1fe   : > { %v4034_v41 = vrot.slane %v4032_v47, 3  ;;  %v4074_v20 = vor.u32 %v4073_v40, %v4070_v52 }
 0x200   : > { %v4038_v32 = vor.u32 %v4037_v28, %v4034_v41  ;;  %v12672_v41 = vld [vmem:[#allocation22_spill] sm:$0xff] }
 0x202   : > { %v4039_v10 = vsel %vm1467_vm6, %v4029_v5, %v4038_v32 }
 0x203   : > { %9359 = vmatmul.mubr.msk.bf16.gmra.mrb[8].mxu0 %vm385_vm1, %v3985_v31  ;;  %v3920_v31 = vmul.bf16 %v10969_v35, %v11233_v17 }
 0x204   : > { %9362 = vmatprep.mubr.msk.bf16.mxu0 %vm385_vm1, %v3994_v15  ;;  %v4047_v15 = vor.u32 %v4046_v27, %v4043_v48  ;;  %v10335_v27 = vld [vmem:[#allocation2 + $0x28] sm:$0xff] }
 0x205   : > { %v4059_v55 = vshrl.u32 %v3920_v31, 16  ;;  %v4062_v34 = vshll.u32 %v3920_v31, 16 }
 0x206   : > { %v4048_v57 = vsel %vm1467_vm6, %v4038_v32, %v4047_v15  ;;  %v12675_v32 = vld [vmem:[#allocation4_spill] sm:$0xff] }
 0x207   : > { %v4061_v12 = vrot.slane %v4059_v55, 3  ;;  %v4064_v1 = vrot.slane %v4062_v34, 4 }
 0x209   : > { %v4065_v30 = vor.u32 %v4064_v1, %v4061_v12 }
 0x20b   : > { %9363 = vmatmul.mubr.msk.bf16.gmra.mrb[12].mxu0 %vm385_vm1, %v4003_v29  ;;  %v4056_v29 = vor.u32 %v4055_v51, %v4052_v53  ;;  %v4075_v47 = vsel %vm1467_vm6, %v4065_v30, %v4074_v20  ;;  %v12678_v20 = vld [vmem:[#allocation25_spill] sm:$0xff] }
 0x20c   : > { %9366 = vmatprep.mubr.msk.bf16.mxu0 %vm385_vm1, %v4012_v25 }
 0x20d   : > { %v4057_v25 = vsel %vm1467_vm6, %v4047_v15, %v4056_v29  ;;  %v4066_v16 = vsel %vm1467_vm6, %v4056_v29, %v4065_v30  ;;  %v4528_v30 = vmul.bf16 %v10336_v61, %v12677_v18  ;;  %v10341_v61 = vld [vmem:[#allocation2 + $0x58] sm:$0xff] }
 0x213   : > { %9367 = vmatmul.mubr.msk.bf16.gmra.mrb[16].mxu0 %vm385_vm1, %v4021_v56  ;;  %v10334_v56 = vld [vmem:[#allocation2 + $0x20] sm:$0xff] }
 0x214   : > { %9370 = vmatprep.mubr.msk.bf16.mxu0 %vm385_vm1, %v4030_v46  ;;  %v4526_v28 = vmul.bf16 %v10334_v56, %v12672_v41 }
 0x216   : > { %v4561_v55 = vshrl.u32 %v4526_v28, 16  ;;  %v4564_v34 = vshll.u32 %v4526_v28, 16 }
 0x218   : > { %v4563_v1 = vrot.slane %v4561_v55, 4  ;;  %v4566_v29 = vrot.slane %v4564_v34, 5 }
 0x21b   : > { %9371 = vmatmul.mubr.msk.bf16.gmra.mrb[20].mxu0 %vm385_vm1, %v4039_v10 }
 0x21c   : > { %9374 = vmatprep.mubr.msk.bf16.mxu0 %vm385_vm1, %v4048_v57  ;;  %v4324_v57 = vsel %vm1220_vm4, %v12676_v59, %v4323_v13  ;;  %v12681_v59 = vld [vmem:[#allocation28_spill] sm:$0xff] }
 0x223   : > { %9375 = vmatmul.mubr.msk.bf16.gmra.mrb[24].mxu0 %vm385_vm1, %v4057_v25 }
 0x224   : > { %9378 = vmatprep.mubr.msk.bf16.mxu0 %vm385_vm1, %v4066_v16  ;;  %v10337_v16 = vld [vmem:[#allocation2 + $0x38] sm:$0xff] }
 0x22b   : > { %9379 = vmatmul.mubr.msk.bf16.gmra.mrb[28].mxu0 %vm385_vm1, %v4075_v47  ;;  %v4529_v47 = vmul.bf16 %v10337_v16, %v12678_v20 }
 0x22c   : > { %9384 = vmatprep.mubr.msk.bf16.mxu0 %vm385_vm1, %v10567_v49  ;;  %v12665_v49 = vld [vmem:[#allocation8_spill] sm:$0xff] }
 0x233   : > { %9385 = vmatmul.mubr.msk.bf16.vlgmr.msra.gmra.mrb[0].mxu0 %vm385_vm1, %v10591_v60  ;;  %v12666_v60 = vld [vmem:[#allocation9_spill] sm:$0xff] }
 0x234   : > { %9417 = vmatpush3.bf16.msra.mxu0 %v4744_v23  ;;  %9388 = vmatprep.mubr.msk.bf16.mxu0 %vm385_vm1, %v10598_v63  ;;  %v12667_v63 = vld [vmem:[#allocation10_spill] sm:$0xff]  ;;  %v4567_v23 = vor.u32 %v4566_v29, %v4563_v1 }
 0x23b   : > { %9389 = vmatmul.mubr.msk.bf16.gmra.mrb[4].mxu0 %vm385_vm1, %v10624_v7  ;;  %v12668_v7 = vld [vmem:[#allocation21_spill] sm:$0xff] }
 0x23c   : > { %9392 = vmatprep.mubr.msk.bf16.mxu0 %vm385_vm1, %v10635_v11  ;;  %v4525_v11 = vmul.bf16 %v11368_v33, %v12668_v7  ;;  %v12674_v33 = vld [vmem:[#allocation23_spill] sm:$0xff] }
 0x23d   : > { %v4527_v31 = vmul.bf16 %v10335_v27, %v12674_v33 }
 0x23e   : > { %v4552_v5 = vshrl.u32 %v4525_v11, 16 }
 0x23f   : > { %v4570_v53 = vshrl.u32 %v4527_v31, 16  ;;  %v4573_v51 = vshll.u32 %v4527_v31, 16 }
 0x240   : > { %v4554_v46 = vrot.slane %v4552_v5, 4 }
 0x241   : > { %v4572_v52 = vrot.slane %v4570_v53, 4  ;;  %v4575_v40 = vrot.slane %v4573_v51, 5  ;;  %v10340_v51 = vld [vmem:[#allocation2 + $0x50] sm:$0xff] }
 0x243   : > { %9393 = vmatmul.mubr.msk.bf16.gmra.mrb[8].mxu0 %vm385_vm1, %v12634_v44  ;;  %v12669_v44 = vld [vmem:[#allocation12_spill] sm:$0xff] }
 0x244   : > { %9396 = vmatprep.mubr.msk.bf16.mxu0 %vm385_vm1, %v12635_v26  ;;  %v12670_v26 = vld [vmem:[#allocation20_spill] sm:$0xff] }
 0x24b   : > { %9397 = vmatmul.mubr.msk.bf16.gmra.mrb[12].mxu0 %vm385_vm1, %v12636_v2  ;;  %v12671_v2 = vld [vmem:[#allocation5_spill] sm:$0xff] }
 0x24c   : > { %9400 = vmatprep.mubr.msk.bf16.mxu0 %vm385_vm1, %v12638_v50  ;;  %v4524_v3 = vmul.bf16 %v12671_v2, %v12670_v26  ;;  %v4555_v50 = vshll.u32 %v4525_v11, 16  ;;  %v4588_v11 = vshrl.u32 %v4529_v47, 16 }
 0x24e   : > { %v4544_v21 = vshrl.u32 %v4524_v3, 16  ;;  %v4547_v42 = vshll.u32 %v4524_v3, 16  ;;  %v4557_v48 = vrot.slane %v4555_v50, 5  ;;  %v10338_v50 = vld [vmem:[#allocation2 + $0x40] sm:$0xff]  ;;  %v4590_v28 = vrot.slane %v4588_v11, 4 }
 0x250   : > { %v4546_v38 = vrot.slane %v4544_v21, 4  ;;  %v4549_v15 = vrot.slane %v4547_v42, 5  ;;  %v4558_v10 = vor.u32 %v4557_v48, %v4554_v46  ;;  %v12679_v21 = vld [vmem:[#allocation26_spill] sm:$0xff]  ;;  %v10339_v46 = vld [vmem:[#allocation2 + $0x48] sm:$0xff] }
 0x251   : > { %v4530_v42 = vmul.bf16 %v10338_v50, %v12679_v21  ;;  %v12680_v48 = vld [vmem:[#allocation27_spill] sm:$0xff] }
 0x252   : > { %v4550_v12 = vor.u32 %v4549_v15, %v4546_v38  ;;  %v4568_v2 = vsel %vm1022_vm5, %v4558_v10, %v4567_v23  ;;  %v4531_v27 = vmul.bf16 %v10339_v46, %v12680_v48 }
 0x253   : > { %9401 = vmatmul.mubr.msk.bf16.gmra.mrb[16].mxu0 %vm385_vm1, %v12665_v49  ;;  %v4579_v49 = vshrl.u32 %v4528_v30, 16  ;;  %v4600_v13 = vshll.u32 %v4530_v42, 16 }
 0x254   : > { %9404 = vmatprep.mubr.msk.bf16.mxu0 %vm385_vm1, %v12666_v60  ;;  %v4559_v25 = vsel %vm1022_vm5, %v4550_v12, %v4558_v10  ;;  %v4582_v60 = vshll.u32 %v4528_v30, 16  ;;  %v4606_v15 = vshrl.u32 %v4531_v27, 16  ;;  %v4609_v55 = vshll.u32 %v4531_v27, 16  ;;  %v12682_v30 = vld [vmem:[#allocation29_spill] sm:$0xff] }
 0x255   : > { %v4581_v3 = vrot.slane %v4579_v49, 4  ;;  %v4602_v53 = vrot.slane %v4600_v13, 5 }
 0x256   : > { %v4584_v5 = vrot.slane %v4582_v60, 5  ;;  %v4608_v1 = vrot.slane %v4606_v15, 4  ;;  %v4611_v29 = vrot.slane %v4609_v55, 5 }
 0x258   : > { %v4585_v31 = vor.u32 %v4584_v5, %v4581_v3 }
 0x25b   : > { %9405 = vmatmul.mubr.msk.bf16.gmra.mrb[20].mxu0 %vm385_vm1, %v12667_v63  ;;  %v4576_v63 = vor.u32 %v4575_v40, %v4572_v52 }
 0x25c   : > { %9408 = vmatprep.mubr.msk.bf16.mxu0 %vm385_vm1, %v12669_v44  ;;  %v4591_v44 = vshll.u32 %v4529_v47, 16  ;;  %v4612_v47 = vor.u32 %v4611_v29, %v4608_v1  ;;  %v10345_v29 = vld [vmem:[#allocation2 + $0x78] sm:$0xff] }
 0x25d   : > { %v4577_v56 = vsel %vm1022_vm5, %v4567_v23, %v4576_v63  ;;  %v4586_v34 = vsel %vm1022_vm5, %v4576_v63, %v4585_v31 }
 0x263   : > { %9409 = vmatmul.mubr.msk.bf16.gmra.mrb[24].mxu0 %vm385_vm1, %v12673_v8  ;;  %v4593_v8 = vrot.slane %v4591_v44, 5  ;;  %v10342_v44 = vld [vmem:[#allocation2 + $0x60] sm:$0xff] }
 0x264   : > { %9412 = vmatprep.mubr.msk.bf16.mxu0 %vm385_vm1, %v12675_v32  ;;  %v4597_v32 = vshrl.u32 %v4530_v42, 16 }
 0x265   : > { %v4594_v38 = vor.u32 %v4593_v8, %v4590_v28  ;;  %v12684_v28 = vld [vmem:[#allocation31_spill] sm:$0xff] }
 0x266   : > { %v4599_v10 = vrot.slane %v4597_v32, 4 }
 0x267   : > { %v4595_v12 = vsel %vm1022_vm5, %v4585_v31, %v4594_v38 }
 0x268   : > { %v4603_v52 = vor.u32 %v4602_v53, %v4599_v10  ;;  %v10344_v10 = vld [vmem:[#allocation2 + $0x70] sm:$0xff] }
 0x269   : > { %v12685_v53 = vld [vmem:[#allocation32_spill] sm:$0xff] }
 0x26a   : > { %v4604_v60 = vsel %vm1022_vm5, %v4594_v38, %v4603_v52  ;;  %v4613_v5 = vsel %vm1022_vm5, %v4603_v52, %v4612_v47 }
 0x26b   : > { %9413 = vmatmul.mubr.msk.bf16.gmra.mrb[28].mxu0 %vm385_vm1, %v4324_v57  ;;  %v4532_v57 = vmul.bf16 %v10340_v51, %v12681_v59  ;;  %v4536_v51 = vmul.bf16 %v10344_v10, %v12685_v53 }
 0x26c   : > { %9418 = vmatprep.mubr.msk.bf16.mxu0 %vm385_vm1, %v4559_v25  ;;  %v4533_v25 = vmul.bf16 %v10341_v61, %v12682_v30  ;;  %v12686_v61 = vld [vmem:[#allocation33_spill] sm:$0xff] }
 0x26d   : > { %v4615_v40 = vshrl.u32 %v4532_v57, 16  ;;  %v4618_v16 = vshll.u32 %v4532_v57, 16 }
 0x26e   : > { %v4624_v23 = vshrl.u32 %v4533_v25, 16  ;;  %v4627_v49 = vshll.u32 %v4533_v25, 16  ;;  %v4537_v25 = vmul.bf16 %v10345_v29, %v12686_v61 }
 0x26f   : > { %v4617_v63 = vrot.slane %v4615_v40, 4  ;;  %v4620_v11 = vrot.slane %v4618_v16, 5  ;;  %v4651_v40 = vshrl.u32 %v4536_v51, 16  ;;  %v4654_v16 = vshll.u32 %v4536_v51, 16  ;;  %v12689_v51 = vld [vmem:[#allocation35_spill] sm:$0xff] }
 0x270   : > { %v4626_v50 = vrot.slane %v4624_v23, 4  ;;  %v4629_v42 = vrot.slane %v4627_v49, 5  ;;  %v4660_v23 = vshrl.u32 %v4537_v25, 16  ;;  %v4663_v49 = vshll.u32 %v4537_v25, 16 }
 0x271   : > { %v4621_v46 = vor.u32 %v4620_v11, %v4617_v63  ;;  %v4653_v63 = vrot.slane %v4651_v40, 4  ;;  %v4656_v11 = vrot.slane %v4654_v16, 5 }
 0x272   : > { %v4630_v32 = vor.u32 %v4629_v42, %v4626_v50  ;;  %v4662_v42 = vrot.slane %v4660_v23, 4 }
 0x273   : > { %9419 = vmatmul.mubr.msk.bf16.vlgmr.msra.gmra.mrb[0].mxu0 %vm385_vm1, %v4568_v2  ;;  %v12683_v2 = vld [vmem:[#allocation30_spill] sm:$0xff]  ;;  %v4622_v15 = vsel %vm1022_vm5, %v4612_v47, %v4621_v46 }
 0x274   : > { %9422 = vmatprep.mubr.msk.bf16.mxu0 %vm385_vm1, %v4577_v56  ;;  %v4534_v3 = vmul.bf16 %v10342_v44, %v12683_v2  ;;  %v10343_v56 = vld [vmem:[#allocation2 + $0x68] sm:$0xff]  ;;  %v4631_v57 = vsel %vm1022_vm5, %v4621_v46, %v4630_v32  ;;  %v10346_v44 = vld [vmem:[#allocation2 + $0x80] sm:$0xff] }
 0x275   : > { %v4535_v8 = vmul.bf16 %v10343_v56, %v12684_v28  ;;  %v4665_v56 = vrot.slane %v4663_v49, 5 }
 0x276   : > { %v4633_v27 = vshrl.u32 %v4534_v3, 16  ;;  %v4636_v31 = vshll.u32 %v4534_v3, 16  ;;  %v12687_v3 = vld [vmem:[#allocation34_spill] sm:$0xff] }
 0x277   : > { %v4642_v13 = vshrl.u32 %v4535_v8, 16  ;;  %v4645_v38 = vshll.u32 %v4535_v8, 16  ;;  %v12688_v8 = vld [vmem:[#allocation36_spill] sm:$0xff] }
 0x278   : > { %v4635_v55 = vrot.slane %v4633_v27, 4  ;;  %v4539_v46 = vmul.bf16 %v12688_v8, %v11233_v17  ;;  %v4657_v27 = vor.u32 %v4656_v11, %v4653_v63  ;;  %v12690_v63 = vmov 0   ;;  %v8681_v11 = vld [vmem:[%s12476_s6 + $0x4] sm:$0xf] }
 0x279   : > { %v4647_v1 = vrot.slane %v4645_v38, 5  ;;  %5054 = vst.msk [vmem:[#allocation3 + $0x88] sm:$0xf0] %vm5053_vm8, %v12690_v63  ;;  %10277 = vmatprep.subr.msk.bf16.mxu1 %vm1220_vm4, %v8681_v11 }
 0x27a   : > { %v4678_v38 = vshrl.u32 %v4539_v46, 16  ;;  %5052 = vst.msk [vmem:[#allocation3 + $0x8] sm:$0xf] %vm5051_vm9, %v12690_v63 }
 0x27b   : > { %9423 = vmatmul.mubr.msk.bf16.gmra.mrb[4].mxu0 %vm385_vm1, %v4586_v34  ;;  %v4638_v34 = vrot.slane %v4636_v31, 5 }
 0x27c   : > { %9426 = vmatprep.mubr.msk.bf16.mxu0 %vm385_vm1, %v4595_v12  ;;  %v4644_v12 = vrot.slane %v4642_v13, 4  ;;  %v4680_v17 = vrot.slane %v4678_v38, 4 }
 0x27d   : > { %v4639_v52 = vor.u32 %v4638_v34, %v4635_v55 }
 0x27e   : > { %v4648_v47 = vor.u32 %v4647_v1, %v4644_v12 }
 0x280   : > { %v4649_v50 = vsel %vm1022_vm5, %v4639_v52, %v4648_v47  ;;  %v4658_v55 = vsel %vm1022_vm5, %v4648_v47, %v4657_v27 }
 0x283   : > { %9427 = vmatmul.mubr.msk.bf16.gmra.mrb[8].mxu0 %vm385_vm1, %v4604_v60  ;;  %v4640_v60 = vsel %vm1022_vm5, %v4630_v32, %v4639_v52  ;;  %v4666_v32 = vor.u32 %v4665_v56, %v4662_v42 }
 0x284   : > { %9430 = vmatprep.mubr.msk.bf16.mxu0 %vm385_vm1, %v4613_v5  ;;  %v4538_v5 = vmul.bf16 %v10346_v44, %v12687_v3  ;;  %v5292_v44 = vsel %vm1220_vm4, %v8681_v11, 0 }
 0x285   : > { %v4667_v12 = vsel %vm1022_vm5, %v4657_v27, %v4666_v32  ;;  %9451 = vmatpush3.bf16.msra.mxu1 %v5292_v44 }
 0x286   : > { %v4669_v31 = vshrl.u32 %v4538_v5, 16  ;;  %v4672_v13 = vshll.u32 %v4538_v5, 16  ;;  %v11554_v5 = vld [vmem:[%s12476_s6] sm:$0xf] }
 0x287   : > { %10278 = vmatprep.subr.msk.bf16.mxu1 %vm1220_vm4, %v11554_v5 }
 0x288   : > { %v4671_v34 = vrot.slane %v4669_v31, 4  ;;  %v4674_v10 = vrot.slane %v4672_v13, 5 }
 0x28a   : > { %v4675_v29 = vor.u32 %v4674_v10, %v4671_v34 }
 0x28b   : > { %9431 = vmatmul.mubr.msk.bf16.gmra.mrb[12].mxu0 %vm385_vm1, %v4622_v15  ;;  %v4681_v15 = vshll.u32 %v4539_v46, 16 }
 0x28c   : > { %9434 = vmatprep.mubr.msk.bf16.mxu0 %vm385_vm1, %v4631_v57  ;;  %v4540_v57 = vmul.bf16 %v12689_v51, %v11438_v6  ;;  %v4676_v16 = vsel %vm1022_vm5, %v4666_v32, %v4675_v29 }
 0x28d   : > { %v4683_v1 = vrot.slane %v4681_v15, 5  ;;  %v11570_v15 = vld [vmem:[%s314_s22] ss:$0 sm:$0xff]  ;;  %s12370_s22 = scalar_lea.vmem %s12478_s8, %s8837_s23 }
 0x28e   : > { %v4687_v25 = vshrl.u32 %v4540_v57, 16  ;;  %v4690_v52 = vshll.u32 %v4540_v57, 16 }
 0x28f   : > { %v4684_v40 = vor.u32 %v4683_v1, %v4680_v17 }
 0x290   : > { %v4689_v47 = vrot.slane %v4687_v25, 4  ;;  %v4692_v23 = vrot.slane %v4690_v52, 5 }
 0x291   : > { %v4685_v6 = vsel %vm1022_vm5, %v4675_v29, %v4684_v40 }
 0x292   : > { %v4693_v49 = vor.u32 %v4692_v23, %v4689_v47 }
 0x293   : > { %9435 = vmatmul.mubr.msk.bf16.gmra.mrb[16].mxu0 %vm385_vm1, %v4640_v60 }
 0x294   : > { %9438 = vmatprep.mubr.msk.bf16.mxu0 %vm385_vm1, %v4649_v50  ;;  %v4694_v60 = vsel %vm1022_vm5, %v4684_v40, %v4693_v49  ;;  %v11561_v50 = vld [vmem:[%s12472_s2] ss:$0 sm:$0xff] }
 0x29b   : > { %9439 = vmatmul.mubr.msk.bf16.gmra.mrb[20].mxu0 %vm385_vm1, %v4658_v55 }
 0x29c   : > { %9442 = vmatprep.mubr.msk.bf16.mxu0 %vm385_vm1, %v4667_v12 }
 0x2a3   : > { %9443 = vmatmul.mubr.msk.bf16.gmra.mrb[24].mxu0 %vm385_vm1, %v4676_v16 }
 0x2a4   : > { %9446 = vmatprep.mubr.msk.bf16.mxu0 %vm385_vm1, %v4685_v6 }
 0x2ab   : > { %9447 = vmatmul.mubr.msk.bf16.gmra.mrb[28].mxu0 %vm385_vm1, %v4694_v60 }
 0x346   : > { %v9420_v42 = vpop.f32.mrb[0].mxu0 }
 0x347   : > { %v4948_v56 = vadd.f32 %v9420_v42, %v11561_v50  ;;  %v4780_v46 = vpop.f32.mrb[1].mxu0 }
 0x348   : > { %v4946_v27 = vadd.f32 %v11561_v50, %v4780_v46  ;;  %v9421_v31 = vpop.f32.mrb[2].mxu0 }
 0x349   : > { %v4980_v13 = vmax.f32 %v4948_v56, 0.0  ;;  %v4949_v32 = vadd.f32 %v9421_v31, %v11561_v50  ;;  %v4783_v38 = vpop.f32.mrb[3].mxu0 }
 0x34a   : > { %v4978_v55 = vmax.f32 %v4946_v27, 0.0  ;;  %v4947_v34 = vadd.f32 %v11561_v50, %v4783_v38 }
 0x34b   : > { %v4981_v10 = vmax.f32 %v4949_v32, 0.0  ;;  %v5019_v12 = vadd.f32 %v11570_v15, %v4980_v13 }
 0x34c   : > { %v4979_v57 = vmax.f32 %v4947_v34, 0.0  ;;  %v5017_v1 = vadd.f32 %v11570_v15, %v4978_v55 }
 0x34d   : > { %v5020_v17 = vadd.f32 %v11570_v15, %v4981_v10 }
 0x34e   : > { %v5018_v29 = vadd.f32 %v11570_v15, %v4979_v57  ;;  %v9424_v25 = vpop.f32.mrb[4].mxu0 }
 0x34f   : > { %v5057_v52 = vpack.c.bf16 %v5020_v17, %v5019_v12  ;;  %v4952_v40 = vadd.f32 %v9424_v25, %v11561_v50  ;;  %v4796_v16 = vpop.f32.mrb[5].mxu0 }
 0x350   : > { %v5056_v47 = vpack.c.bf16 %v5018_v29, %v5017_v1  ;;  %v4950_v23 = vadd.f32 %v11561_v50, %v4796_v16  ;;  %v9425_v6 = vpop.f32.mrb[6].mxu0 }
 0x351   : > { %v5089_v49 = vrot.slane %v5057_v52, 4  ;;  %v4984_v60 = vmax.f32 %v4952_v40, 0.0  ;;  %v4953_v63 = vadd.f32 %v9425_v6, %v11561_v50  ;;  %v4799_v11 = vpop.f32.mrb[7].mxu0 }
 0x352   : > { %v5088_v44 = vrot.slane %v5056_v47, 4  ;;  %v4982_v42 = vmax.f32 %v4950_v23, 0.0  ;;  %v4951_v56 = vadd.f32 %v11561_v50, %v4799_v11 }
 0x353   : > { %v4985_v46 = vmax.f32 %v4953_v63, 0.0  ;;  %v5023_v13 = vadd.f32 %v11570_v15, %v4984_v60  ;;  %v11592_v60 = vld [vmem:[#allocation3] sm:$0xff] }
 0x354   : > { %v5090_v27 = vsel %vm1220_vm4, %v5088_v44, %v5089_v49  ;;  %5136 = vst.msk [vmem:[#allocation3 + $0x8] sm:$0xf0] %vm5053_vm8, %v5088_v44  ;;  %v4983_v31 = vmax.f32 %v4951_v56, 0.0  ;;  %v5021_v38 = vadd.f32 %v11570_v15, %v4982_v42  ;;  %v5209_v44 = vrot.slane %v11592_v60, 4 }
 0x355   : > { %5137 = vst.msk [vmem:[#allocation3 + $0x10] sm:$0xff] %vm5049_vm7, %v5090_v27  ;;  %v5024_v32 = vadd.f32 %v11570_v15, %v4985_v46 }
 0x356   : > { %v5022_v55 = vadd.f32 %v11570_v15, %v4983_v31  ;;  %v9428_v34 = vpop.f32.mrb[8].mxu0 }
 0x357   : > { %v5059_v10 = vpack.c.bf16 %v5024_v32, %v5023_v13  ;;  %v4956_v57 = vadd.f32 %v9428_v34, %v11561_v50  ;;  %v4812_v12 = vpop.f32.mrb[9].mxu0 }
 0x358   : > { %v5058_v17 = vpack.c.bf16 %v5022_v55, %v5021_v38  ;;  %v4954_v1 = vadd.f32 %v11561_v50, %v4812_v12  ;;  %v9429_v29 = vpop.f32.mrb[10].mxu0 }
 0x359   : > { %v5093_v25 = vrot.slane %v5059_v10, 4  ;;  %v4988_v52 = vmax.f32 %v4956_v57, 0.0  ;;  %v4957_v40 = vadd.f32 %v9429_v29, %v11561_v50  ;;  %v4815_v16 = vpop.f32.mrb[11].mxu0  ;;  %v5656_v10 = vsel %vm1220_vm4, %v11554_v5, 0 }
 0x35a   : > { %v5091_v47 = vrot.slane %v5058_v17, 4  ;;  %v4986_v23 = vmax.f32 %v4954_v1, 0.0  ;;  %v4955_v6 = vadd.f32 %v11561_v50, %v4815_v16 }
 0x35b   : > { %v4989_v63 = vmax.f32 %v4957_v40, 0.0  ;;  %v11594_v11 = vld [vmem:[#allocation3 + $0x8] sm:$0xff]  ;;  %v5027_v31 = vadd.f32 %v11570_v15, %v4988_v52 }
 0x35c   : > { %v5092_v42 = vsel %vm1220_vm4, %v5089_v49, %v5091_v47  ;;  %v5094_v56 = vsel %vm1220_vm4, %v5091_v47, %v5093_v25  ;;  %v4987_v46 = vmax.f32 %v4955_v6, 0.0  ;;  %v11599_v27 = vld [vmem:[#allocation3 + $0x10] sm:$0xff]  ;;  %v5210_v32 = vrot.slane %v11594_v11, 4 }
 0x35d   : > { %5138 = vst.msk [vmem:[#allocation3 + $0x18] sm:$0xff] %vm5049_vm7, %v5092_v42  ;;  %5139 = vst.msk [vmem:[#allocation3 + $0x20] sm:$0xff] %vm5049_vm7, %v5094_v56  ;;  %v5028_v13 = vadd.f32 %v11570_v15, %v4989_v63  ;;  %v5212_v38 = vrot.slane %v11599_v27, 4  ;;  %v5025_v55 = vadd.f32 %v11570_v15, %v4986_v23  ;;  %v11621_v47 = vld [vmem:[%s12476_s6 + $0x8] sm:$0xf] }
 0x35e   : > { %v5026_v49 = vadd.f32 %v11570_v15, %v4987_v46  ;;  %v9432_v34 = vpop.f32.mrb[12].mxu0  ;;  %v5211_v1 = vsel %vm1220_vm4, %v5209_v44, %v5210_v32 }
 0x35f   : > { %v5061_v57 = vpack.c.bf16 %v5028_v13, %v5027_v31  ;;  %v4960_v12 = vadd.f32 %v9432_v34, %v11561_v50  ;;  %v4828_v17 = vpop.f32.mrb[13].mxu0  ;;  %v11614_v29 = vsel %vm1220_vm4, %v5210_v32, %v5212_v38  ;;  %9452 = vmatprep.mubr.msk.bf16.mxu1 %vm5049_vm7, %v5211_v1 }
 0x360   : > { %12691 = vst [vmem:[#allocation6_spill] sm:$0xff] %v11614_v29  ;;  %v5060_v52 = vpack.c.bf16 %v5026_v49, %v5025_v55  ;;  %v4958_v40 = vadd.f32 %v11561_v50, %v4828_v17  ;;  %v9433_v16 = vpop.f32.mrb[14].mxu0  ;;  %9453 = vmatmul.mubr.msk.bf16.vlgmr.msra.gmra.mrb[0].mxu1 %vm5049_vm7, %v11614_v29 }
 0x361   : > { %v5097_v5 = vrot.slane %v5061_v57, 4  ;;  %v4992_v23 = vmax.f32 %v4960_v12, 0.0  ;;  %v4961_v6 = vadd.f32 %v9433_v16, %v11561_v50  ;;  %v4831_v63 = vpop.f32.mrb[15].mxu0  ;;  %9485 = vmatpush3.bf16.msra.mxu1 %v5656_v10 }
 0x362   : > { %v5095_v44 = vrot.slane %v5060_v52, 4  ;;  %v4990_v42 = vmax.f32 %v4958_v40, 0.0  ;;  %v4959_v56 = vadd.f32 %v11561_v50, %v4831_v63  ;;  %10279 = vmatprep.subr.msk.bf16.mxu1 %vm1220_vm4, %v11621_v47 }
 0x363   : > { %v4993_v46 = vmax.f32 %v4961_v6, 0.0  ;;  %v5031_v34 = vadd.f32 %v11570_v15, %v4992_v23 }
 0x364   : > { %v5096_v31 = vsel %vm1220_vm4, %v5093_v25, %v5095_v44  ;;  %v5098_v13 = vsel %vm1220_vm4, %v5095_v44, %v5097_v5  ;;  %v4991_v32 = vmax.f32 %v4959_v56, 0.0  ;;  %v11631_v55 = vld [vmem:[#allocation3 + $0x18] sm:$0xff]  ;;  %v11633_v49 = vld [vmem:[#allocation3 + $0x20] sm:$0xff]  ;;  %v5029_v25 = vadd.f32 %v11570_v15, %v4990_v42 }
 0x365   : > { %5140 = vst.msk [vmem:[#allocation3 + $0x28] sm:$0xff] %vm5049_vm7, %v5096_v31  ;;  %5141 = vst.msk [vmem:[#allocation3 + $0x30] sm:$0xff] %vm5049_vm7, %v5098_v13  ;;  %v5032_v10 = vadd.f32 %v11570_v15, %v4993_v46  ;;  %v5214_v57 = vrot.slane %v11631_v55, 4  ;;  %v5216_v12 = vrot.slane %v11633_v49, 4 }
 0x366   : > { %v5030_v17 = vadd.f32 %v11570_v15, %v4991_v32  ;;  %v9436_v1 = vpop.f32.mrb[16].mxu0 }
 0x367   : > { %v5063_v52 = vpack.c.bf16 %v5032_v10, %v5031_v34  ;;  %v4964_v40 = vadd.f32 %v9436_v1, %v11561_v50  ;;  %v4844_v16 = vpop.f32.mrb[17].mxu0  ;;  %v11645_v6 = vsel %vm1220_vm4, %v5212_v38, %v5214_v57  ;;  %v11648_v23 = vsel %vm1220_vm4, %v5214_v57, %v5216_v12 }
 0x368   : > { %12692 = vst [vmem:[#allocation7_spill] sm:$0xff] %v11645_v6  ;;  %12693 = vst [vmem:[#allocation11_spill] sm:$0xff] %v11648_v23  ;;  %v5062_v63 = vpack.c.bf16 %v5030_v17, %v5029_v25  ;;  %v4962_v44 = vadd.f32 %v11561_v50, %v4844_v16  ;;  %v9437_v56 = vpop.f32.mrb[18].mxu0  ;;  %9456 = vmatprep.mubr.msk.bf16.mxu1 %vm5049_vm7, %v11645_v6 }
 0x369   : > { %v5101_v42 = vrot.slane %v5063_v52, 4  ;;  %v4996_v46 = vmax.f32 %v4964_v40, 0.0  ;;  %v4965_v31 = vadd.f32 %v9437_v56, %v11561_v50  ;;  %v4847_v13 = vpop.f32.mrb[19].mxu0  ;;  %9457 = vmatmul.mubr.msk.bf16.gmra.mrb[4].mxu1 %vm5049_vm7, %v11648_v23 }
 0x36a   : > { %v5099_v38 = vrot.slane %v5062_v63, 4  ;;  %v4994_v32 = vmax.f32 %v4962_v44, 0.0  ;;  %v4963_v34 = vadd.f32 %v11561_v50, %v4847_v13 }
 0x36b   : > { %v4997_v10 = vmax.f32 %v4965_v31, 0.0  ;;  %v5035_v40 = vadd.f32 %v11570_v15, %v4996_v46 }
 0x36c   : > { %v5100_v57 = vsel %vm1220_vm4, %v5097_v5, %v5099_v38  ;;  %v5102_v25 = vsel %vm1220_vm4, %v5099_v38, %v5101_v42  ;;  %v4995_v17 = vmax.f32 %v4963_v34, 0.0  ;;  %v11659_v1 = vld [vmem:[#allocation3 + $0x28] sm:$0xff]  ;;  %v11661_v52 = vld [vmem:[#allocation3 + $0x30] sm:$0xff]  ;;  %v5033_v5 = vadd.f32 %v11570_v15, %v4994_v32 }
 0x36d   : > { %5142 = vst.msk [vmem:[#allocation3 + $0x38] sm:$0xff] %vm5049_vm7, %v5100_v57  ;;  %5143 = vst.msk [vmem:[#allocation3 + $0x40] sm:$0xff] %vm5049_vm7, %v5102_v25  ;;  %v5036_v16 = vadd.f32 %v11570_v15, %v4997_v10  ;;  %v5218_v63 = vrot.slane %v11659_v1, 4  ;;  %v5220_v44 = vrot.slane %v11661_v52, 4 }
 0x36e   : > { %v5034_v56 = vadd.f32 %v11570_v15, %v4995_v17  ;;  %v9440_v31 = vpop.f32.mrb[20].mxu0 }
 0x36f   : > { %v5065_v13 = vpack.c.bf16 %v5036_v16, %v5035_v40  ;;  %v4968_v38 = vadd.f32 %v9440_v31, %v11561_v50  ;;  %v4860_v34 = vpop.f32.mrb[21].mxu0  ;;  %v11673_v57 = vsel %vm1220_vm4, %v5216_v12, %v5218_v63  ;;  %v11676_v46 = vsel %vm1220_vm4, %v5218_v63, %v5220_v44 }
 0x370   : > { %12694 = vst [vmem:[#allocation8_spill] sm:$0xff] %v11673_v57  ;;  %12695 = vst [vmem:[#allocation9_spill] sm:$0xff] %v11676_v46  ;;  %v5064_v10 = vpack.c.bf16 %v5034_v56, %v5033_v5  ;;  %v4966_v25 = vadd.f32 %v11561_v50, %v4860_v34  ;;  %v9441_v23 = vpop.f32.mrb[22].mxu0  ;;  %9460 = vmatprep.mubr.msk.bf16.mxu1 %vm5049_vm7, %v11673_v57 }
 0x371   : > { %v5105_v32 = vrot.slane %v5065_v13, 4  ;;  %v5000_v17 = vmax.f32 %v4968_v38, 0.0  ;;  %v4969_v40 = vadd.f32 %v9441_v23, %v11561_v50  ;;  %v4863_v16 = vpop.f32.mrb[23].mxu0  ;;  %9461 = vmatmul.mubr.msk.bf16.gmra.mrb[8].mxu1 %vm5049_vm7, %v11676_v46 }
 0x372   : > { %v5103_v12 = vrot.slane %v5064_v10, 4  ;;  %v4998_v31 = vmax.f32 %v4966_v25, 0.0  ;;  %v4967_v63 = vadd.f32 %v11561_v50, %v4863_v16 }
 0x373   : > { %v5001_v6 = vmax.f32 %v4969_v40, 0.0  ;;  %v5039_v23 = vadd.f32 %v11570_v15, %v5000_v17 }
 0x374   : > { %v5104_v5 = vsel %vm1220_vm4, %v5101_v42, %v5103_v12  ;;  %v5106_v56 = vsel %vm1220_vm4, %v5103_v12, %v5105_v32  ;;  %v4999_v34 = vmax.f32 %v4967_v63, 0.0  ;;  %v11687_v29 = vld [vmem:[#allocation3 + $0x38] sm:$0xff]  ;;  %v11689_v13 = vld [vmem:[#allocation3 + $0x40] sm:$0xff]  ;;  %v5037_v42 = vadd.f32 %v11570_v15, %v4998_v31 }
 0x375   : > { %5144 = vst.msk [vmem:[#allocation3 + $0x48] sm:$0xff] %vm5049_vm7, %v5104_v5  ;;  %5145 = vst.msk [vmem:[#allocation3 + $0x50] sm:$0xff] %vm5049_vm7, %v5106_v56  ;;  %v5040_v38 = vadd.f32 %v11570_v15, %v5001_v6  ;;  %v5222_v10 = vrot.slane %v11687_v29, 4  ;;  %v5224_v25 = vrot.slane %v11689_v13, 4 }
 0x376   : > { %v5038_v40 = vadd.f32 %v11570_v15, %v4999_v34  ;;  %v9444_v16 = vpop.f32.mrb[24].mxu0 }
 0x377   : > { %v5067_v12 = vpack.c.bf16 %v5040_v38, %v5039_v23  ;;  %v4972_v63 = vadd.f32 %v9444_v16, %v11561_v50  ;;  %v4876_v46 = vpop.f32.mrb[25].mxu0  ;;  %v11701_v5 = vsel %vm1220_vm4, %v5220_v44, %v5222_v10  ;;  %v11704_v17 = vsel %vm1220_vm4, %v5222_v10, %v5224_v25 }
 0x378   : > { %12696 = vst [vmem:[#allocation10_spill] sm:$0xff] %v11701_v5  ;;  %12697 = vst [vmem:[#allocation12_spill] sm:$0xff] %v11704_v17  ;;  %v5066_v6 = vpack.c.bf16 %v5038_v40, %v5037_v42  ;;  %v4970_v56 = vadd.f32 %v11561_v50, %v4876_v46  ;;  %v9445_v57 = vpop.f32.mrb[26].mxu0  ;;  %9464 = vmatprep.mubr.msk.bf16.mxu1 %vm5049_vm7, %v11701_v5 }
 0x379   : > { %v5109_v31 = vrot.slane %v5067_v12, 4  ;;  %v5004_v34 = vmax.f32 %v4972_v63, 0.0  ;;  %v4973_v23 = vadd.f32 %v9445_v57, %v11561_v50  ;;  %v4879_v38 = vpop.f32.mrb[27].mxu0  ;;  %9465 = vmatmul.mubr.msk.bf16.gmra.mrb[12].mxu1 %vm5049_vm7, %v11704_v17 }
 0x37a   : > { %v5107_v44 = vrot.slane %v5066_v6, 4  ;;  %v5002_v16 = vmax.f32 %v4970_v56, 0.0  ;;  %v4971_v10 = vadd.f32 %v11561_v50, %v4879_v38 }
 0x37b   : > { %v5005_v51 = vmax.f32 %v4973_v23, 0.0  ;;  %v5043_v57 = vadd.f32 %v11570_v15, %v5004_v34 }
 0x37c   : > { %v5108_v42 = vsel %vm1220_vm4, %v5105_v32, %v5107_v44  ;;  %v5110_v46 = vsel %vm1220_vm4, %v5107_v44, %v5109_v31  ;;  %v5003_v40 = vmax.f32 %v4971_v10, 0.0  ;;  %v11715_v8 = vld [vmem:[#allocation3 + $0x48] sm:$0xff]  ;;  %v11717_v12 = vld [vmem:[#allocation3 + $0x50] sm:$0xff]  ;;  %v5041_v32 = vadd.f32 %v11570_v15, %v5002_v16 }
 0x37d   : > { %5146 = vst.msk [vmem:[#allocation3 + $0x58] sm:$0xff] %vm5049_vm7, %v5108_v42  ;;  %5147 = vst.msk [vmem:[#allocation3 + $0x60] sm:$0xff] %vm5049_vm7, %v5110_v46  ;;  %v5044_v63 = vadd.f32 %v11570_v15, %v5005_v51  ;;  %v5226_v6 = vrot.slane %v11715_v8, 4  ;;  %v5228_v56 = vrot.slane %v11717_v12, 4 }
 0x37e   : > { %v5042_v23 = vadd.f32 %v11570_v15, %v5003_v40  ;;  %v9448_v38 = vpop.f32.mrb[28].mxu0 }
 0x37f   : > { %v5069_v44 = vpack.c.bf16 %v5044_v63, %v5043_v57  ;;  %v4976_v10 = vadd.f32 %v9448_v38, %v11561_v50  ;;  %v4892_v17 = vpop.f32.mrb[29].mxu0  ;;  %v11729_v42 = vsel %vm1220_vm4, %v5224_v25, %v5226_v6  ;;  %v11732_v34 = vsel %vm1220_vm4, %v5226_v6, %v5228_v56 }
 0x380   : > { %12698 = vst [vmem:[#allocation5_spill] sm:$0xff] %v11729_v42  ;;  %12699 = vst [vmem:[#allocation13_spill] sm:$0xff] %v11732_v34  ;;  %v5068_v51 = vpack.c.bf16 %v5042_v23, %v5041_v32  ;;  %v4974_v46 = vadd.f32 %v11561_v50, %v4892_v17  ;;  %v9449_v5 = vpop.f32.mrb[30].mxu0  ;;  %9468 = vmatprep.mubr.msk.bf16.mxu1 %vm5049_vm7, %v11729_v42 }
 0x381   : > { %v5113_v16 = vrot.slane %v5069_v44, 4  ;;  %v5008_v40 = vmax.f32 %v4976_v10, 0.0  ;;  %v4977_v57 = vadd.f32 %v9449_v5, %v11561_v50  ;;  %v4895_v63 = vpop.f32.mrb[31].mxu0  ;;  %9469 = vmatmul.mubr.msk.bf16.gmra.mrb[16].mxu1 %vm5049_vm7, %v11732_v34 }
 0x382   : > { %v5111_v25 = vrot.slane %v5068_v51, 4  ;;  %v5006_v38 = vmax.f32 %v4974_v46, 0.0  ;;  %v4975_v6 = vadd.f32 %v11561_v50, %v4895_v63 }
 0x383   : > { %v5009_v3 = vmax.f32 %v4977_v57, 0.0  ;;  %v5047_v5 = vadd.f32 %v11570_v15, %v5008_v40 }
 0x384   : > { %v5112_v32 = vsel %vm1220_vm4, %v5109_v31, %v5111_v25  ;;  %v5114_v17 = vsel %vm1220_vm4, %v5111_v25, %v5113_v16  ;;  %v5007_v23 = vmax.f32 %v4975_v6, 0.0  ;;  %v11743_v61 = vld [vmem:[#allocation3 + $0x58] sm:$0xff]  ;;  %v11745_v44 = vld [vmem:[#allocation3 + $0x60] sm:$0xff]  ;;  %v5045_v31 = vadd.f32 %v11570_v15, %v5006_v38 }
 0x385   : > { %5148 = vst.msk [vmem:[#allocation3 + $0x68] sm:$0xff] %vm5049_vm7, %v5112_v32  ;;  %5149 = vst.msk [vmem:[#allocation3 + $0x70] sm:$0xff] %vm5049_vm7, %v5114_v17  ;;  %v5048_v10 = vadd.f32 %v11570_v15, %v5009_v3  ;;  %v5230_v50 = vrot.slane %v11743_v61, 4  ;;  %v5232_v51 = vrot.slane %v11745_v44, 4  ;;  %v5173_v3 = vmul.bf16 %v11594_v11, %v12663_v4 }
 0x386   : > { %v5046_v46 = vadd.f32 %v11570_v15, %v5007_v23  ;;  %v12702_v15 = vld [vmem:[#allocation14_spill] sm:$0xff] }
 0x387   : > { %v5071_v57 = vpack.c.bf16 %v5048_v10, %v5047_v5  ;;  %v11756_v63 = vsel %vm1220_vm4, %v5228_v56, %v5230_v50  ;;  %v11759_v25 = vsel %vm1220_vm4, %v5230_v50, %v5232_v51  ;;  %v5172_v32 = vmul.bf16 %v11592_v60, %v12702_v15 }
 0x388   : > { %12700 = vst [vmem:[#allocation4_spill] sm:$0xff] %v11756_v63  ;;  %12701 = vst [vmem:[#allocation37_spill] sm:$0xff] %v11759_v25  ;;  %v5070_v6 = vpack.c.bf16 %v5046_v46, %v5045_v31  ;;  %9472 = vmatprep.mubr.msk.bf16.mxu1 %vm5049_vm7, %v11756_v63  ;;  %v5464_v10 = vshrl.u32 %v5173_v3, 16  ;;  %v5467_v50 = vshll.u32 %v5173_v3, 16 }
 0x389   : > { %v5117_v40 = vrot.slane %v5071_v57, 4  ;;  %9473 = vmatmul.mubr.msk.bf16.gmra.mrb[20].mxu1 %vm5049_vm7, %v11759_v25 }
 0x38a   : > { %v5115_v38 = vrot.slane %v5070_v6, 4  ;;  %v5456_v6 = vshrl.u32 %v5172_v32, 16  ;;  %v5466_v3 = vrot.slane %v5464_v10, 3 }
 0x38b   : > { %5152 = vst.msk [vmem:[#allocation3 + $0x88] sm:$0xf] %vm5051_vm9, %v5117_v40 }
 0x38c   : > { %v5116_v56 = vsel %vm1220_vm4, %v5113_v16, %v5115_v38  ;;  %v5118_v17 = vsel %vm1220_vm4, %v5115_v38, %v5117_v40  ;;  %v11772_v23 = vld [vmem:[#allocation3 + $0x68] sm:$0xff]  ;;  %v11774_v5 = vld [vmem:[#allocation3 + $0x70] sm:$0xff]  ;;  %v5459_v40 = vshll.u32 %v5172_v32, 16  ;;  %v5469_v38 = vrot.slane %v5467_v50, 4 }
 0x38d   : > { %5150 = vst.msk [vmem:[#allocation3 + $0x78] sm:$0xff] %vm5049_vm7, %v5116_v56  ;;  %5151 = vst.msk [vmem:[#allocation3 + $0x80] sm:$0xff] %vm5049_vm7, %v5118_v17  ;;  %v5234_v31 = vrot.slane %v11772_v23, 4  ;;  %v5236_v46 = vrot.slane %v11774_v5, 4  ;;  %v5174_v56 = vmul.bf16 %v11599_v27, %v12664_v9  ;;  %v5458_v17 = vrot.slane %v5456_v6, 3 }
 0x38e   : > { %v5461_v25 = vrot.slane %v5459_v40, 4  ;;  %v5470_v32 = vor.u32 %v5469_v38, %v5466_v3 }
 0x38f   : > { %v11781_v57 = vsel %vm1220_vm4, %v5232_v51, %v5234_v31  ;;  %v11784_v16 = vsel %vm1220_vm4, %v5234_v31, %v5236_v46  ;;  %v5175_v51 = vmul.bf16 %v11631_v55, %v10851_v45  ;;  %v5473_v34 = vshrl.u32 %v5174_v56, 16 }
 0x390   : > { %12703 = vst [vmem:[#allocation38_spill] sm:$0xff] %v11781_v57  ;;  %12704 = vst [vmem:[#allocation39_spill] sm:$0xff] %v11784_v16  ;;  %9476 = vmatprep.mubr.msk.bf16.mxu1 %vm5049_vm7, %v11781_v57  ;;  %v5476_v57 = vshll.u32 %v5174_v56, 16  ;;  %v5462_v40 = vor.u32 %v5461_v25, %v5458_v17  ;;  %v5176_v56 = vmul.bf16 %v11633_v49, %v10861_v0  ;;  %v6039_v0 = vsel %vm1220_vm4, %v11621_v47, 0 }
 0x391   : > { %9477 = vmatmul.mubr.msk.bf16.gmra.mrb[24].mxu1 %vm5049_vm7, %v11784_v16  ;;  %v5482_v42 = vshrl.u32 %v5175_v51, 16  ;;  %v5485_v9 = vshll.u32 %v5175_v51, 16  ;;  %v5475_v3 = vrot.slane %v5473_v34, 3  ;;  %v5179_v47 = vmul.bf16 %v11687_v29, %v10895_v36 }
 0x392   : > { %v5478_v38 = vrot.slane %v5476_v57, 4  ;;  %v5491_v17 = vshrl.u32 %v5176_v56, 16 }
 0x393   : > { %v5484_v51 = vrot.slane %v5482_v42, 3  ;;  %v5487_v45 = vrot.slane %v5485_v9, 4  ;;  %v5178_v9 = vmul.bf16 %v11661_v52, %v10882_v14  ;;  %v11826_v42 = vld [vmem:[%s12476_s6 + $0xc] sm:$0xf] }
 0x394   : > { %v11794_v31 = vld [vmem:[#allocation3 + $0x78] sm:$0xff]  ;;  %v11796_v63 = vld [vmem:[#allocation3 + $0x80] sm:$0xff]  ;;  %v5479_v25 = vor.u32 %v5478_v38, %v5475_v3  ;;  %v5493_v4 = vrot.slane %v5491_v17, 3 }
 0x395   : > { %v5238_v10 = vrot.slane %v11794_v31, 4  ;;  %v12573_v50 = vrot.slane %v11796_v63, 4  ;;  %v5488_v34 = vor.u32 %v5487_v45, %v5484_v51  ;;  %v5518_v51 = vshrl.u32 %v5179_v47, 16 }
 0x397   : > { %v11801_v16 = vsel %vm1220_vm4, %v5236_v46, %v5238_v10  ;;  %v11806_v6 = vsel %vm1220_vm4, %v5238_v10, %v12573_v50  ;;  %v5471_v46 = vsel %vm1467_vm6, %v5462_v40, %v5470_v32  ;;  %v5177_v10 = vmul.bf16 %v11659_v1, %v10869_v39 }
 0x398   : > { %12705 = vst [vmem:[#allocation40_spill] sm:$0xff] %v11801_v16  ;;  %12706 = vst [vmem:[#allocation41_spill] sm:$0xff] %v11806_v6  ;;  %9480 = vmatprep.mubr.msk.bf16.mxu1 %vm5049_vm7, %v11801_v16  ;;  %v5494_v50 = vshll.u32 %v5176_v56, 16  ;;  %v5489_v45 = vsel %vm1467_vm6, %v5479_v25, %v5488_v34  ;;  %v5512_v56 = vshll.u32 %v5178_v9, 16 }
 0x399   : > { %9481 = vmatmul.mubr.msk.bf16.gmra.mrb[28].mxu1 %vm5049_vm7, %v11806_v6  ;;  %v5500_v57 = vshrl.u32 %v5177_v10, 16  ;;  %v5503_v16 = vshll.u32 %v5177_v10, 16  ;;  %v5480_v6 = vsel %vm1467_vm6, %v5470_v32, %v5479_v25  ;;  %v5521_v10 = vshll.u32 %v5179_v47, 16 }
 0x39a   : > { %9486 = vmatprep.mubr.msk.bf16.mxu1 %vm5049_vm7, %v5471_v46  ;;  %v5496_v40 = vrot.slane %v5494_v50, 4  ;;  %v5509_v50 = vshrl.u32 %v5178_v9, 16  ;;  %v5514_v17 = vrot.slane %v5512_v56, 4 }
 0x39b   : > { %v5502_v3 = vrot.slane %v5500_v57, 3  ;;  %v5505_v38 = vrot.slane %v5503_v16, 4  ;;  %v5180_v16 = vmul.bf16 %v11689_v13, %v10903_v62  ;;  %v5520_v57 = vrot.slane %v5518_v51, 3 }
 0x39c   : > { %v5497_v32 = vor.u32 %v5496_v40, %v5493_v4  ;;  %v5511_v25 = vrot.slane %v5509_v50, 3  ;;  %v5181_v4 = vmul.bf16 %v11715_v8, %v10911_v24 }
 0x39d   : > { %v5506_v46 = vor.u32 %v5505_v38, %v5502_v3  ;;  %v5527_v9 = vshrl.u32 %v5180_v16, 16  ;;  %v5530_v3 = vshll.u32 %v5180_v16, 16 }
 0x39e   : > { %v5515_v40 = vor.u32 %v5514_v17, %v5511_v25  ;;  %v5536_v38 = vshrl.u32 %v5181_v4, 16  ;;  %v5539_v47 = vshll.u32 %v5181_v4, 16  ;;  %v5183_v25 = vmul.bf16 %v11743_v61, %v10930_v19 }
 0x39f   : > { %v5529_v56 = vrot.slane %v5527_v9, 3  ;;  %v5532_v62 = vrot.slane %v5530_v3, 4 }
 0x3a0   : > { %v5516_v50 = vsel %vm1467_vm6, %v5506_v46, %v5515_v40 }
 0x3a1   : > { %9487 = vmatmul.mubr.msk.bf16.vlgmr.msra.gmra.mrb[0].mxu1 %vm5049_vm7, %v5480_v6  ;;  %v5498_v6 = vsel %vm1467_vm6, %v5488_v34, %v5497_v32  ;;  %v5533_v17 = vor.u32 %v5532_v62, %v5529_v56  ;;  %v5185_v62 = vmul.bf16 %v11772_v23, %v10946_v22 }
 0x3a2   : > { %9519 = vmatpush3.bf16.msra.mxu1 %v6039_v0  ;;  %9490 = vmatprep.mubr.msk.bf16.mxu1 %vm5049_vm7, %v5489_v45  ;;  %v5507_v0 = vsel %vm1467_vm6, %v5497_v32, %v5506_v46  ;;  %v5523_v45 = vrot.slane %v5521_v10, 4  ;;  %v5182_v32 = vmul.bf16 %v11717_v12, %v10921_v37  ;;  %v5538_v10 = vrot.slane %v5536_v38, 3 }
 0x3a3   : > { %10280 = vmatprep.subr.msk.bf16.mxu1 %vm1220_vm4, %v11826_v42 }
 0x3a4   : > { %v5524_v34 = vor.u32 %v5523_v45, %v5520_v57  ;;  %v5545_v16 = vshrl.u32 %v5182_v32, 16  ;;  %v5554_v57 = vshrl.u32 %v5183_v25, 16  ;;  %v5557_v45 = vshll.u32 %v5183_v25, 16 }
 0x3a6   : > { %v5525_v51 = vsel %vm1467_vm6, %v5515_v40, %v5524_v34  ;;  %v5534_v4 = vsel %vm1467_vm6, %v5524_v34, %v5533_v17  ;;  %v5547_v9 = vrot.slane %v5545_v16, 3  ;;  %v5184_v40 = vmul.bf16 %v11745_v44, %v10937_v54 }
 0x3a9   : > { %9491 = vmatmul.mubr.msk.bf16.gmra.mrb[4].mxu1 %vm5049_vm7, %v5498_v6  ;;  %v5541_v6 = vrot.slane %v5539_v47, 4  ;;  %v5556_v47 = vrot.slane %v5554_v57, 3 }
 0x3aa   : > { %9494 = vmatprep.mubr.msk.bf16.mxu1 %vm5049_vm7, %v5507_v0  ;;  %v5548_v0 = vshll.u32 %v5182_v32, 16  ;;  %v5563_v32 = vshrl.u32 %v5184_v40, 16 }
 0x3ab   : > { %v5542_v46 = vor.u32 %v5541_v6, %v5538_v10  ;;  %v5572_v10 = vshrl.u32 %v5185_v62, 16  ;;  %v5575_v6 = vshll.u32 %v5185_v62, 16 }
 0x3ac   : > { %v5550_v3 = vrot.slane %v5548_v0, 4  ;;  %v5565_v16 = vrot.slane %v5563_v32, 3 }
 0x3ad   : > { %v5543_v38 = vsel %vm1467_vm6, %v5533_v17, %v5542_v46  ;;  %v5186_v17 = vmul.bf16 %v11774_v5, %v10957_v43 }
 0x3ae   : > { %v5551_v56 = vor.u32 %v5550_v3, %v5547_v9  ;;  %v5187_v9 = vmul.bf16 %v11794_v31, %v10969_v35 }
 0x3b0   : > { %v5552_v25 = vsel %vm1467_vm6, %v5542_v46, %v5551_v56 }
 0x3b1   : > { %9495 = vmatmul.mubr.msk.bf16.gmra.mrb[8].mxu1 %vm5049_vm7, %v5516_v50  ;;  %v5559_v50 = vrot.slane %v5557_v45, 4  ;;  %v5574_v45 = vrot.slane %v5572_v10, 3 }
 0x3b2   : > { %9498 = vmatprep.mubr.msk.bf16.mxu1 %vm5049_vm7, %v5525_v51  ;;  %v5566_v51 = vshll.u32 %v5184_v40, 16  ;;  %v5581_v40 = vshrl.u32 %v5186_v17, 16 }
 0x3b3   : > { %v5560_v34 = vor.u32 %v5559_v50, %v5556_v47  ;;  %v5590_v47 = vshrl.u32 %v5187_v9, 16  ;;  %v5593_v50 = vshll.u32 %v5187_v9, 16 }
 0x3b4   : > { %v5568_v0 = vrot.slane %v5566_v51, 4  ;;  %v5583_v32 = vrot.slane %v5581_v40, 3 }
 0x3b5   : > { %v5561_v57 = vsel %vm1467_vm6, %v5551_v56, %v5560_v34  ;;  %v5188_v56 = vmul.bf16 %v11796_v63, %v10960_v58 }
 0x3b6   : > { %v5569_v3 = vor.u32 %v5568_v0, %v5565_v16  ;;  %v5820_v16 = vmul.bf16 %v11594_v11, %v12668_v7  ;;  %v5819_v0 = vmul.bf16 %v11592_v60, %v12670_v26 }
 0x3b8   : > { %v5570_v62 = vsel %vm1467_vm6, %v5560_v34, %v5569_v3  ;;  %v5850_v9 = vshll.u32 %v5820_v16, 16  ;;  %v5839_v40 = vshrl.u32 %v5819_v0, 16 }
 0x3b9   : > { %9499 = vmatmul.mubr.msk.bf16.gmra.mrb[12].mxu1 %vm5049_vm7, %v5534_v4  ;;  %v5577_v4 = vrot.slane %v5575_v6, 4  ;;  %v5592_v6 = vrot.slane %v5590_v47, 3 }
 0x3ba   : > { %9502 = vmatprep.mubr.msk.bf16.mxu1 %vm5049_vm7, %v5543_v38  ;;  %v5584_v38 = vshll.u32 %v5186_v17, 16  ;;  %v5599_v17 = vshrl.u32 %v5188_v56, 16 }
 0x3bb   : > { %v5578_v46 = vor.u32 %v5577_v4, %v5574_v45  ;;  %v5847_v4 = vshrl.u32 %v5820_v16, 16 }
 0x3bc   : > { %v5586_v51 = vrot.slane %v5584_v38, 4  ;;  %v5842_v38 = vshll.u32 %v5819_v0, 16  ;;  %v5601_v47 = vrot.slane %v5599_v17, 3 }
 0x3bd   : > { %v5579_v10 = vsel %vm1467_vm6, %v5569_v3, %v5578_v46  ;;  %v5849_v60 = vrot.slane %v5847_v4, 4  ;;  %v5823_v4 = vmul.bf16 %v11633_v49, %v12677_v18 }
 0x3be   : > { %v5587_v34 = vor.u32 %v5586_v51, %v5583_v32  ;;  %v5852_v32 = vrot.slane %v5850_v9, 5  ;;  %v5822_v51 = vmul.bf16 %v11631_v55, %v12674_v33 }
 0x3c0   : > { %v5588_v3 = vsel %vm1467_vm6, %v5578_v46, %v5587_v34  ;;  %v5853_v0 = vor.u32 %v5852_v32, %v5849_v60  ;;  %v5865_v17 = vshrl.u32 %v5822_v51, 16 }
 0x3c1   : > { %9503 = vmatmul.mubr.msk.bf16.gmra.mrb[16].mxu1 %vm5049_vm7, %v5552_v25  ;;  %v5595_v25 = vrot.slane %v5593_v50, 4 }
 0x3c2   : > { %9506 = vmatprep.mubr.msk.bf16.mxu1 %vm5049_vm7, %v5561_v57  ;;  %v5602_v57 = vshll.u32 %v5188_v56, 16  ;;  %v5841_v56 = vrot.slane %v5839_v40, 4  ;;  %v5867_v40 = vrot.slane %v5865_v17, 4 }
 0x3c3   : > { %v5596_v45 = vor.u32 %v5595_v25, %v5592_v6  ;;  %v5844_v6 = vrot.slane %v5842_v38, 5 }
 0x3c4   : > { %v5604_v50 = vrot.slane %v5602_v57, 4  ;;  %v5868_v57 = vshll.u32 %v5822_v51, 16  ;;  %v6454_v51 = vsel %vm1220_vm4, %v11826_v42, 0  ;;  %v5826_v42 = vmul.bf16 %v11687_v29, %v12680_v48 }
 0x3c6   : > { %v5605_v25 = vor.u32 %v5604_v50, %v5601_v47  ;;  %v5870_v38 = vrot.slane %v5868_v57, 5  ;;  %v5824_v47 = vmul.bf16 %v11659_v1, %v12678_v20 }
 0x3c8   : > { %v5883_v60 = vshrl.u32 %v5824_v47, 16  ;;  %v5886_v32 = vshll.u32 %v5824_v47, 16 }
 0x3c9   : > { %9507 = vmatmul.mubr.msk.bf16.gmra.mrb[20].mxu1 %vm5049_vm7, %v5570_v62  ;;  %v5821_v62 = vmul.bf16 %v11599_v27, %v12672_v41  ;;  %v5845_v41 = vor.u32 %v5844_v6, %v5841_v56 }
 0x3ca   : > { %9510 = vmatprep.mubr.msk.bf16.mxu1 %vm5049_vm7, %v5579_v10  ;;  %v5597_v10 = vsel %vm1467_vm6, %v5587_v34, %v5596_v45  ;;  %v5888_v17 = vrot.slane %v5886_v32, 5  ;;  %v5828_v32 = vmul.bf16 %v11715_v8, %v12682_v30 }
 0x3cb   : > { %v5856_v46 = vshrl.u32 %v5821_v62, 16  ;;  %v5859_v16 = vshll.u32 %v5821_v62, 16  ;;  %v5854_v9 = vsel %vm1022_vm5, %v5845_v41, %v5853_v0  ;;  %v5874_v62 = vshrl.u32 %v5823_v4, 16 }
 0x3cd   : > { %v5858_v7 = vrot.slane %v5856_v46, 4  ;;  %v5861_v34 = vrot.slane %v5859_v16, 5  ;;  %v5876_v6 = vrot.slane %v5874_v62, 4  ;;  %v11901_v46 = vld [vmem:[%s12476_s6 + $0x10] sm:$0xf]  ;;  %v5885_v16 = vrot.slane %v5883_v60, 4 }
 0x3cf   : > { %v5862_v50 = vor.u32 %v5861_v34, %v5858_v7  ;;  %v5889_v34 = vor.u32 %v5888_v17, %v5885_v16 }
 0x3d1   : > { %9511 = vmatmul.mubr.msk.bf16.gmra.mrb[24].mxu1 %vm5049_vm7, %v5588_v3  ;;  %v5606_v3 = vsel %vm1467_vm6, %v5596_v45, %v5605_v25  ;;  %v5871_v45 = vor.u32 %v5870_v38, %v5867_v40  ;;  %v5863_v56 = vsel %vm1022_vm5, %v5853_v0, %v5862_v50  ;;  %v5825_v25 = vmul.bf16 %v11661_v52, %v12679_v21 }
 0x3d2   : > { %9514 = vmatprep.mubr.msk.bf16.mxu1 %vm5049_vm7, %v5597_v10  ;;  %v5877_v10 = vshll.u32 %v5823_v4, 16  ;;  %v5901_v4 = vshrl.u32 %v5826_v42, 16 }
 0x3d3   : > { %v5872_v7 = vsel %vm1022_vm5, %v5862_v50, %v5871_v45  ;;  %v5892_v57 = vshrl.u32 %v5825_v25, 16  ;;  %v5827_v50 = vmul.bf16 %v11689_v13, %v12681_v59 }
 0x3d4   : > { %v5879_v41 = vrot.slane %v5877_v10, 5  ;;  %v5903_v10 = vrot.slane %v5901_v4, 4  ;;  %v5830_v4 = vmul.bf16 %v11743_v61, %v12684_v28 }
 0x3d5   : > { %v5894_v38 = vrot.slane %v5892_v57, 4 }
 0x3d6   : > { %v5880_v0 = vor.u32 %v5879_v41, %v5876_v6  ;;  %v5913_v6 = vshll.u32 %v5827_v50, 16  ;;  %v5919_v41 = vshrl.u32 %v5828_v32, 16 }
 0x3d8   : > { %v5881_v40 = vsel %vm1022_vm5, %v5871_v45, %v5880_v0  ;;  %v5890_v62 = vsel %vm1022_vm5, %v5880_v0, %v5889_v34  ;;  %v5915_v17 = vrot.slane %v5913_v6, 5  ;;  %v5921_v57 = vrot.slane %v5919_v41, 4  ;;  %v12707_v41 = vld [vmem:[#allocation33_spill] sm:$0xff] }
 0x3d9   : > { %9515 = vmatmul.mubr.msk.bf16.gmra.mrb[28].mxu1 %vm5049_vm7, %v5606_v3  ;;  %v5895_v3 = vshll.u32 %v5825_v25, 16  ;;  %v5922_v25 = vshll.u32 %v5828_v32, 16 }
 0x3da   : > { %9520 = vmatprep.mubr.msk.bf16.mxu1 %vm5049_vm7, %v5854_v9  ;;  %v5904_v9 = vshll.u32 %v5826_v42, 16  ;;  %v5829_v42 = vmul.bf16 %v11717_v12, %v12683_v2 }
 0x3db   : > { %v5897_v47 = vrot.slane %v5895_v3, 5  ;;  %v5924_v3 = vrot.slane %v5922_v25, 5  ;;  %v5832_v25 = vmul.bf16 %v11772_v23, %v12707_v41 }
 0x3dc   : > { %v5906_v60 = vrot.slane %v5904_v9, 5 }
 0x3de   : > { %v5907_v45 = vor.u32 %v5906_v60, %v5903_v10 }
 0x3e1   : > { %9521 = vmatmul.mubr.msk.bf16.vlgmr.msra.gmra.mrb[0].mxu1 %vm5049_vm7, %v5863_v56  ;;  %v5910_v56 = vshrl.u32 %v5827_v50, 16  ;;  %v5940_v50 = vshll.u32 %v5830_v4, 16 }
 0x3e2   : > { %9553 = vmatpush3.bf16.msra.mxu1 %v6454_v51  ;;  %9524 = vmatprep.mubr.msk.bf16.mxu1 %vm5049_vm7, %v5872_v7  ;;  %v5898_v51 = vor.u32 %v5897_v47, %v5894_v38  ;;  %v5931_v38 = vshll.u32 %v5829_v42, 16  ;;  %v5937_v47 = vshrl.u32 %v5830_v4, 16 }
 0x3e3   : > { %10281 = vmatprep.subr.msk.bf16.mxu1 %vm1220_vm4, %v11901_v46  ;;  %v5912_v16 = vrot.slane %v5910_v56, 4  ;;  %v5942_v6 = vrot.slane %v5940_v50, 5 }
 0x3e4   : > { %v5899_v7 = vsel %vm1022_vm5, %v5889_v34, %v5898_v51  ;;  %v5908_v0 = vsel %vm1022_vm5, %v5898_v51, %v5907_v45  ;;  %v5925_v34 = vor.u32 %v5924_v3, %v5921_v57  ;;  %v5933_v32 = vrot.slane %v5931_v38, 5  ;;  %v12709_v38 = vld [vmem:[#allocation36_spill] sm:$0xff] }
 0x3e5   : > { %v5916_v9 = vor.u32 %v5915_v17, %v5912_v16  ;;  %v5939_v56 = vrot.slane %v5937_v47, 4  ;;  %v5958_v57 = vshll.u32 %v5832_v25, 16  ;;  %v5834_v47 = vmul.bf16 %v11794_v31, %v12709_v38 }
 0x3e7   : > { %v5917_v10 = vsel %vm1022_vm5, %v5907_v45, %v5916_v9  ;;  %v5926_v51 = vsel %vm1022_vm5, %v5916_v9, %v5925_v34 }
 0x3e9   : > { %9525 = vmatmul.mubr.msk.bf16.gmra.mrb[4].mxu1 %vm5049_vm7, %v5881_v40  ;;  %v5928_v40 = vshrl.u32 %v5829_v42, 16  ;;  %v5943_v42 = vor.u32 %v5942_v6, %v5939_v56  ;;  %v5973_v56 = vshrl.u32 %v5834_v47, 16  ;;  %v5976_v6 = vshll.u32 %v5834_v47, 16 }
 0x3ea   : > { %9528 = vmatprep.mubr.msk.bf16.mxu1 %vm5049_vm7, %v5890_v62  ;;  %v5831_v62 = vmul.bf16 %v11745_v44, %v12685_v53 }
 0x3eb   : > { %v5930_v60 = vrot.slane %v5928_v40, 4  ;;  %v12708_v40 = vld [vmem:[#allocation34_spill] sm:$0xff]  ;;  %v5978_v41 = vrot.slane %v5976_v6, 5 }
 0x3ec   : > { %v5949_v16 = vshll.u32 %v5831_v62, 16  ;;  %v5833_v9 = vmul.bf16 %v11774_v5, %v12708_v40 }
 0x3ed   : > { %v5934_v17 = vor.u32 %v5933_v32, %v5930_v60 }
 0x3ee   : > { %v5951_v3 = vrot.slane %v5949_v16, 5  ;;  %v5964_v32 = vshrl.u32 %v5833_v9, 16 }
 0x3ef   : > { %v5935_v4 = vsel %vm1022_vm5, %v5925_v34, %v5934_v17  ;;  %v5944_v50 = vsel %vm1022_vm5, %v5934_v17, %v5943_v42 }
 0x3f0   : > { %v5966_v38 = vrot.slane %v5964_v32, 4 }
 0x3f1   : > { %9529 = vmatmul.mubr.msk.bf16.gmra.mrb[8].mxu1 %vm5049_vm7, %v5899_v7  ;;  %v5946_v7 = vshrl.u32 %v5831_v62, 16  ;;  %v5960_v62 = vrot.slane %v5958_v57, 5  ;;  %v12711_v57 = vld [vmem:[#allocation15_spill] sm:$0xff] }
 0x3f2   : > { %9532 = vmatprep.mubr.msk.bf16.mxu1 %vm5049_vm7, %v5908_v0  ;;  %v5955_v0 = vshrl.u32 %v5832_v25, 16 }
 0x3f3   : > { %v5948_v45 = vrot.slane %v5946_v7, 4  ;;  %v12710_v7 = vld [vmem:[#allocation35_spill] sm:$0xff] }
 0x3f4   : > { %v5835_v16 = vmul.bf16 %v11796_v63, %v12710_v7 }
 0x3f5   : > { %v5952_v60 = vor.u32 %v5951_v3, %v5948_v45  ;;  %v6235_v45 = vmul.bf16 %v11599_v27, %v12711_v57  ;;  %v12713_v27 = vld [vmem:[#allocation17_spill] sm:$0xff] }
 0x3f6   : > { %v5985_v3 = vshll.u32 %v5835_v16, 16 }
 0x3f7   : > { %v5953_v25 = vsel %vm1022_vm5, %v5943_v42, %v5952_v60  ;;  %v5982_v42 = vshrl.u32 %v5835_v16, 16  ;;  %v6265_v32 = vshll.u32 %v6235_v45, 16 }
 0x3f9   : > { %9533 = vmatmul.mubr.msk.bf16.gmra.mrb[12].mxu1 %vm5049_vm7, %v5917_v10  ;;  %v5957_v10 = vrot.slane %v5955_v0, 4  ;;  %v6234_v0 = vmul.bf16 %v11594_v11, %v12702_v15  ;;  %v12712_v11 = vld [vmem:[#allocation16_spill] sm:$0xff]  ;;  %v6267_v16 = vrot.slane %v6265_v32, 4  ;;  %v6239_v32 = vmul.bf16 %v11661_v52, %v10869_v39 }
 0x3fa   : > { %9536 = vmatprep.mubr.msk.bf16.mxu1 %vm5049_vm7, %v5926_v51  ;;  %v5967_v51 = vshll.u32 %v5833_v9, 16  ;;  %v11976_v52 = vld [vmem:[%s12476_s6 + $0x14] sm:$0xf] }
 0x3fb   : > { %v5961_v34 = vor.u32 %v5960_v62, %v5957_v10  ;;  %v6257_v10 = vshll.u32 %v6234_v0, 16  ;;  %v6262_v62 = vshrl.u32 %v6235_v45, 16 }
 0x3fc   : > { %v5969_v40 = vrot.slane %v5967_v51, 5  ;;  %v5984_v51 = vrot.slane %v5982_v42, 4 }
 0x3fd   : > { %v5962_v17 = vsel %vm1022_vm5, %v5952_v60, %v5961_v34 }
 0x3fe   : > { %v5970_v9 = vor.u32 %v5969_v40, %v5966_v38  ;;  %v6264_v38 = vrot.slane %v6262_v62, 3 }
 0x400   : > { %v5971_v60 = vsel %vm1022_vm5, %v5961_v34, %v5970_v9  ;;  %v6268_v42 = vor.u32 %v6267_v16, %v6264_v38  ;;  %v6240_v16 = vmul.bf16 %v11687_v29, %v10882_v14 }
 0x401   : > { %9537 = vmatmul.mubr.msk.bf16.gmra.mrb[16].mxu1 %vm5049_vm7, %v5935_v4  ;;  %v5975_v4 = vrot.slane %v5973_v56, 4  ;;  %v5987_v56 = vrot.slane %v5985_v3, 5 }
 0x402   : > { %9540 = vmatprep.mubr.msk.bf16.mxu1 %vm5049_vm7, %v5944_v50  ;;  %v6254_v50 = vshrl.u32 %v6234_v0, 16 }
 0x403   : > { %v5979_v47 = vor.u32 %v5978_v41, %v5975_v4  ;;  %v6259_v41 = vrot.slane %v6257_v10, 4  ;;  %v5988_v4 = vor.u32 %v5987_v56, %v5984_v51 }
 0x404   : > { %v6256_v40 = vrot.slane %v6254_v50, 3 }
 0x405   : > { %v5980_v6 = vsel %vm1022_vm5, %v5970_v9, %v5979_v47 }
 0x406   : > { %v6260_v34 = vor.u32 %v6259_v41, %v6256_v40 }
 0x408   : > { %v6269_v50 = vsel %vm1467_vm6, %v6260_v34, %v6268_v42 }
 0x409   : > { %9541 = vmatmul.mubr.msk.bf16.gmra.mrb[20].mxu1 %vm5049_vm7, %v5953_v25  ;;  %v6236_v25 = vmul.bf16 %v11631_v55, %v12712_v11  ;;  %v5989_v55 = vsel %vm1022_vm5, %v5979_v47, %v5988_v4 }
 0x40a   : > { %9544 = vmatprep.mubr.msk.bf16.mxu1 %vm5049_vm7, %v5962_v17  ;;  %v6237_v17 = vmul.bf16 %v11633_v49, %v12713_v27  ;;  %v12714_v49 = vld [vmem:[#allocation18_spill] sm:$0xff] }
 0x40b   : > { %v6271_v0 = vshrl.u32 %v6236_v25, 16  ;;  %v6274_v45 = vshll.u32 %v6236_v25, 16  ;;  %v6298_v25 = vshrl.u32 %v6239_v32, 16 }
 0x40c   : > { %v6280_v3 = vshrl.u32 %v6237_v17, 16  ;;  %v6283_v9 = vshll.u32 %v6237_v17, 16  ;;  %v6301_v17 = vshll.u32 %v6239_v32, 16 }
 0x40d   : > { %v6273_v11 = vrot.slane %v6271_v0, 3  ;;  %v6276_v15 = vrot.slane %v6274_v45, 4  ;;  %v6307_v0 = vshrl.u32 %v6240_v16, 16  ;;  %v6310_v45 = vshll.u32 %v6240_v16, 16 }
 0x40e   : > { %v6282_v10 = vrot.slane %v6280_v3, 3  ;;  %v6285_v62 = vrot.slane %v6283_v9, 4  ;;  %v6303_v4 = vrot.slane %v6301_v17, 4 }
 0x40f   : > { %v6277_v51 = vor.u32 %v6276_v15, %v6273_v11  ;;  %v6300_v11 = vrot.slane %v6298_v25, 3 }
 0x410   : > { %v6286_v47 = vor.u32 %v6285_v62, %v6282_v10 }
 0x411   : > { %9545 = vmatmul.mubr.msk.bf16.gmra.mrb[24].mxu1 %vm5049_vm7, %v5971_v60  ;;  %v6238_v60 = vmul.bf16 %v11659_v1, %v12714_v49  ;;  %v6658_v1 = vsel %vm1220_vm4, %v11901_v46, 0  ;;  %v6278_v40 = vsel %vm1467_vm6, %v6268_v42, %v6277_v51  ;;  %v6241_v46 = vmul.bf16 %v11689_v13, %v10895_v36 }
 0x412   : > { %9548 = vmatprep.mubr.msk.bf16.mxu1 %vm5049_vm7, %v5980_v6  ;;  %v6287_v15 = vsel %vm1467_vm6, %v6277_v51, %v6286_v47  ;;  %v6304_v34 = vor.u32 %v6303_v4, %v6300_v11  ;;  %v6243_v51 = vmul.bf16 %v11717_v12, %v10911_v24  ;;  %v6245_v11 = vmul.bf16 %v11745_v44, %v10930_v19 }
 0x413   : > { %v6289_v56 = vshrl.u32 %v6238_v60, 16  ;;  %v6292_v6 = vshll.u32 %v6238_v60, 16  ;;  %v6316_v42 = vshrl.u32 %v6241_v46, 16  ;;  %v6319_v3 = vshll.u32 %v6241_v46, 16 }
 0x414   : > { %v6312_v60 = vrot.slane %v6310_v45, 4  ;;  %v6334_v17 = vshrl.u32 %v6243_v51, 16  ;;  %v6352_v45 = vshrl.u32 %v6245_v11, 16 }
 0x415   : > { %v6291_v41 = vrot.slane %v6289_v56, 3  ;;  %v6294_v38 = vrot.slane %v6292_v6, 4  ;;  %v6318_v62 = vrot.slane %v6316_v42, 3  ;;  %v6321_v32 = vrot.slane %v6319_v3, 4 }
 0x416   : > { %v6336_v12 = vrot.slane %v6334_v17, 3  ;;  %v6354_v44 = vrot.slane %v6352_v45, 3  ;;  %v6248_v17 = vmul.bf16 %v11794_v31, %v10957_v43 }
 0x417   : > { %v6295_v29 = vor.u32 %v6294_v38, %v6291_v41  ;;  %v6244_v38 = vmul.bf16 %v11743_v61, %v10921_v37 }
 0x419   : > { %9549 = vmatmul.mubr.msk.bf16.gmra.mrb[28].mxu1 %vm5049_vm7, %v5989_v55  ;;  %v6296_v9 = vsel %vm1467_vm6, %v6286_v47, %v6295_v29  ;;  %v6309_v55 = vrot.slane %v6307_v0, 3  ;;  %v6305_v13 = vsel %vm1467_vm6, %v6295_v29, %v6304_v34  ;;  %v6322_v47 = vor.u32 %v6321_v32, %v6318_v62 }
 0x41a   : > { %9554 = vmatprep.mubr.msk.bf16.mxu1 %vm5049_vm7, %v6269_v50  ;;  %v12715_v50 = vld [vmem:[#allocation19_spill] sm:$0xff]  ;;  %v6343_v46 = vshrl.u32 %v6244_v38, 16  ;;  %v6346_v29 = vshll.u32 %v6244_v38, 16  ;;  %v6379_v38 = vshrl.u32 %v6248_v17, 16 }
 0x41b   : > { %v6242_v10 = vmul.bf16 %v11715_v8, %v12715_v50  ;;  %v6313_v56 = vor.u32 %v6312_v60, %v6309_v55 }
 0x41c   : > { %v6345_v61 = vrot.slane %v6343_v46, 3  ;;  %v6348_v3 = vrot.slane %v6346_v29, 4  ;;  %v6381_v46 = vrot.slane %v6379_v38, 3  ;;  %v10347_v38 = vld [vmem:[#allocation3 + $0x8] sm:$0xff] }
 0x41d   : > { %v6325_v6 = vshrl.u32 %v6242_v10, 16  ;;  %v6328_v25 = vshll.u32 %v6242_v10, 16  ;;  %v6323_v16 = vsel %vm1467_vm6, %v6313_v56, %v6322_v47  ;;  %v6247_v10 = vmul.bf16 %v11774_v5, %v10946_v22 }
 0x41f   : > { %v6327_v8 = vrot.slane %v6325_v6, 3  ;;  %v6330_v41 = vrot.slane %v6328_v25, 4  ;;  %v6373_v6 = vshll.u32 %v6247_v10, 16 }
 0x421   : > { %9555 = vmatmul.mubr.msk.bf16.vlgmr.msra.gmra.mrb[0].mxu1 %vm5049_vm7, %v6278_v40  ;;  %v6314_v40 = vsel %vm1467_vm6, %v6304_v34, %v6313_v56  ;;  %v6331_v4 = vor.u32 %v6330_v41, %v6327_v8  ;;  %v6355_v34 = vshll.u32 %v6245_v11, 16  ;;  %v6370_v56 = vshrl.u32 %v6247_v10, 16 }
 0x422   : > { %9587 = vmatpush3.bf16.msra.mxu1 %v6658_v1  ;;  %9558 = vmatprep.mubr.msk.bf16.mxu1 %vm5049_vm7, %v6287_v15  ;;  %v6337_v1 = vshll.u32 %v6243_v51, 16  ;;  %v6249_v8 = vmul.bf16 %v11796_v63, %v10969_v35 }
 0x423   : > { %10282 = vmatprep.subr.msk.bf16.mxu1 %vm1220_vm4, %v11976_v52  ;;  %v6332_v42 = vsel %vm1467_vm6, %v6322_v47, %v6331_v4  ;;  %v6357_v60 = vrot.slane %v6355_v34, 4  ;;  %v6372_v5 = vrot.slane %v6370_v56, 3  ;;  %v7073_v56 = vsel %vm1220_vm4, %v11976_v52, 0  ;;  %v12721_v52 = vld [vmem:[#allocation10_spill] sm:$0xff] }
 0x424   : > { %v6339_v15 = vrot.slane %v6337_v1, 4  ;;  %v6391_v11 = vshll.u32 %v6249_v8, 16 }
 0x425   : > { %v6358_v51 = vor.u32 %v6357_v60, %v6354_v44 }
 0x426   : > { %v6340_v0 = vor.u32 %v6339_v15, %v6336_v12  ;;  %v6388_v15 = vshrl.u32 %v6249_v8, 16  ;;  %v6393_v34 = vrot.slane %v6391_v11, 4  ;;  %v12725_v8 = vld [vmem:[#allocation4_spill] sm:$0xff]  ;;  %v12728_v11 = vld [vmem:[#allocation21_spill] sm:$0xff] }
 0x428   : > { %v6341_v55 = vsel %vm1467_vm6, %v6331_v4, %v6340_v0  ;;  %v12017_v4 = vld [vmem:[#allocation3 + $0x88] sm:$0xff]  ;;  %v6390_v45 = vrot.slane %v6388_v15, 3  ;;  %v12062_v15 = vld [vmem:[#allocation3 + $0x10] sm:$0xff] }
 0x429   : > { %9559 = vmatmul.mubr.msk.bf16.gmra.mrb[4].mxu1 %vm5049_vm7, %v6296_v9  ;;  %v6246_v9 = vmul.bf16 %v11772_v23, %v10937_v54 }
 0x42a   : > { %9562 = vmatprep.mubr.msk.bf16.mxu1 %vm5049_vm7, %v6305_v13  ;;  %v6349_v13 = vor.u32 %v6348_v3, %v6345_v61  ;;  %v6394_v3 = vor.u32 %v6393_v34, %v6390_v45 }
 0x42b   : > { %v6361_v62 = vshrl.u32 %v6246_v9, 16  ;;  %v6364_v32 = vshll.u32 %v6246_v9, 16 }
 0x42c   : > { %v6350_v25 = vsel %vm1467_vm6, %v6340_v0, %v6349_v13  ;;  %v6359_v1 = vsel %vm1467_vm6, %v6349_v13, %v6358_v51 }
 0x42d   : > { %v6363_v23 = vrot.slane %v6361_v62, 3  ;;  %v6366_v47 = vrot.slane %v6364_v32, 4 }
 0x42f   : > { %v6367_v41 = vor.u32 %v6366_v47, %v6363_v23  ;;  %v12718_v23 = vld [vmem:[#allocation11_spill] sm:$0xff]  ;;  %v12719_v47 = vld [vmem:[#allocation8_spill] sm:$0xff] }
 0x431   : > { %9563 = vmatmul.mubr.msk.bf16.gmra.mrb[8].mxu1 %vm5049_vm7, %v6314_v40  ;;  %v6375_v40 = vrot.slane %v6373_v6, 4  ;;  %v6368_v31 = vsel %vm1467_vm6, %v6358_v51, %v6367_v41  ;;  %v12716_v51 = vld [vmem:[#allocation6_spill] sm:$0xff]  ;;  %v8782_v6 = vld [vmem:[%s12476_s6 + $0x18] sm:$0xf] }
 0x432   : > { %9566 = vmatprep.mubr.msk.bf16.mxu1 %vm5049_vm7, %v6323_v16  ;;  %v6382_v16 = vshll.u32 %v6248_v17, 16  ;;  %v12720_v17 = vld [vmem:[#allocation9_spill] sm:$0xff] }
 0x433   : > { %v6376_v12 = vor.u32 %v6375_v40, %v6372_v5  ;;  %v12723_v5 = vld [vmem:[#allocation5_spill] sm:$0xff] }
 0x434   : > { %v6384_v29 = vrot.slane %v6382_v16, 4  ;;  %v12724_v40 = vld [vmem:[#allocation13_spill] sm:$0xff]  ;;  %v6853_v16 = vmul.bf16 %v10347_v38, %v12670_v26  ;;  %v12088_v26 = vld [vmem:[#allocation3 + $0x28] sm:$0xff] }
 0x435   : > { %v6377_v0 = vsel %vm1467_vm6, %v6367_v41, %v6376_v12  ;;  %v12726_v41 = vld [vmem:[#allocation37_spill] sm:$0xff] }
 0x436   : > { %v6385_v61 = vor.u32 %v6384_v29, %v6381_v46  ;;  %v12729_v46 = vld [vmem:[#allocation39_spill] sm:$0xff]  ;;  %v6873_v29 = vshrl.u32 %v6853_v16, 16 }
 0x438   : > { %v6386_v44 = vsel %vm1467_vm6, %v6376_v12, %v6385_v61  ;;  %v6395_v60 = vsel %vm1467_vm6, %v6385_v61, %v6394_v3  ;;  %v12727_v12 = vld [vmem:[#allocation38_spill] sm:$0xff]  ;;  %v12068_v61 = vld [vmem:[#allocation3 + $0x18] sm:$0xff] }
 0x439   : > { %9567 = vmatmul.mubr.msk.bf16.gmra.mrb[12].mxu1 %vm5049_vm7, %v6332_v42  ;;  %v6250_v42 = vmul.bf16 %v12017_v4, %v10960_v58 }
 0x43a   : > { %9570 = vmatprep.mubr.msk.bf16.mxu1 %vm5049_vm7, %v6341_v55 }
 0x43b   : > { %v6397_v9 = vshrl.u32 %v6250_v42, 16  ;;  %v6400_v55 = vshll.u32 %v6250_v42, 16  ;;  %v6875_v42 = vrot.slane %v6873_v29, 4 }
 0x43d   : > { %v6399_v10 = vrot.slane %v6397_v9, 3  ;;  %v6402_v13 = vrot.slane %v6400_v55, 4  ;;  %v12731_v55 = vld [vmem:[#allocation40_spill] sm:$0xff] }
 0x43f   : > { %v6403_v62 = vor.u32 %v6402_v13, %v6399_v10  ;;  %v12074_v13 = vld [vmem:[#allocation3 + $0x20] sm:$0xff] }
 0x440   : > { %12732 = vst [vmem:[#allocation15_spill] sm:$0xff] %v12074_v13 }
 0x441   : > { %9571 = vmatmul.mubr.msk.bf16.gmra.mrb[16].mxu1 %vm5049_vm7, %v6350_v25  ;;  %v6404_v32 = vsel %vm1467_vm6, %v6394_v3, %v6403_v62  ;;  %v12717_v25 = vld [vmem:[#allocation7_spill] sm:$0xff]  ;;  %v12730_v3 = vld [vmem:[#allocation22_spill] sm:$0xff]  ;;  %v6856_v62 = vmul.bf16 %v12074_v13, %v12674_v33 }
 0x442   : > { %9574 = vmatprep.mubr.msk.bf16.mxu1 %vm5049_vm7, %v6359_v1  ;;  %v12722_v1 = vld [vmem:[#allocation12_spill] sm:$0xff]  ;;  %v6855_v9 = vmul.bf16 %v12068_v61, %v12730_v3  ;;  %v12588_v3 = vrot.slane %v12017_v4, 4 }
 0x443   : > { %v6902_v29 = vshll.u32 %v6856_v62, 16 }
 0x449   : > { %9575 = vmatmul.mubr.msk.bf16.gmra.mrb[20].mxu1 %vm5049_vm7, %v6368_v31  ;;  %v6854_v31 = vmul.bf16 %v12062_v15, %v12728_v11 }
 0x44a   : > { %9578 = vmatprep.mubr.msk.bf16.mxu1 %vm5049_vm7, %v6377_v0  ;;  %v6876_v0 = vshll.u32 %v6853_v16, 16 }
 0x44b   : > { %v6881_v45 = vshrl.u32 %v6854_v31, 16  ;;  %v6884_v34 = vshll.u32 %v6854_v31, 16  ;;  %v6899_v31 = vshrl.u32 %v6856_v62, 16 }
 0x44d   : > { %v6886_v10 = vrot.slane %v6884_v34, 5 }
 0x451   : > { %9579 = vmatmul.mubr.msk.bf16.gmra.mrb[24].mxu1 %vm5049_vm7, %v6386_v44  ;;  %v6878_v44 = vrot.slane %v6876_v0, 5  ;;  %v12734_v0 = vrot.slane %v11796_v63, 4 }
 0x452   : > { %9582 = vmatprep.mubr.msk.bf16.mxu1 %vm5049_vm7, %v6395_v60  ;;  %v6883_v60 = vrot.slane %v6881_v45, 4 }
 0x453   : > { %v6879_v38 = vor.u32 %v6878_v44, %v6875_v42  ;;  %v12086_v45 = vsel %vm1220_vm4, %v12734_v0, %v12588_v3  ;;  %v6901_v44 = vrot.slane %v6899_v31, 4 }
 0x454   : > { %v6887_v16 = vor.u32 %v6886_v10, %v6883_v60  ;;  %12735 = vst [vmem:[#allocation17_spill] sm:$0xff] %v12086_v45  ;;  %v6904_v60 = vrot.slane %v6902_v29, 5  ;;  %v12095_v10 = vld [vmem:[#allocation3 + $0x30] sm:$0xff]  ;;  %v12102_v29 = vld [vmem:[#allocation3 + $0x38] sm:$0xff] }
 0x455   : > { %v6858_v63 = vmul.bf16 %v12095_v10, %v12678_v20 }
 0x456   : > { %v6888_v42 = vsel %vm1022_vm5, %v6879_v38, %v6887_v16  ;;  %v6905_v0 = vor.u32 %v6904_v60, %v6901_v44 }
 0x457   : > { %v6917_v3 = vshrl.u32 %v6858_v63, 16 }
 0x459   : > { %9583 = vmatmul.mubr.msk.bf16.gmra.mrb[28].mxu1 %vm5049_vm7, %v6404_v32  ;;  %v12733_v32 = vld [vmem:[#allocation41_spill] sm:$0xff] }
 0x45a   : > { %9588 = vmatprep.mubr.msk.bf16.mxu1 %vm5049_vm7, %v12716_v51  ;;  %v6890_v51 = vshrl.u32 %v6855_v9, 16 }
 0x45c   : > { %v6892_v34 = vrot.slane %v6890_v51, 4 }
 0x461   : > { %9589 = vmatmul.mubr.msk.bf16.vlgmr.msra.gmra.mrb[0].mxu1 %vm5049_vm7, %v12717_v25 }
 0x462   : > { %9621 = vmatpush3.bf16.msra.mxu1 %v7073_v56  ;;  %9592 = vmatprep.mubr.msk.bf16.mxu1 %vm5049_vm7, %v12718_v23  ;;  %v6893_v56 = vshll.u32 %v6855_v9, 16  ;;  %v6857_v9 = vmul.bf16 %v12088_v26, %v12677_v18  ;;  %v6920_v18 = vshll.u32 %v6858_v63, 16 }
 0x463   : > { %10283 = vmatprep.subr.msk.bf16.mxu1 %vm1220_vm4, %v8782_v6 }
 0x464   : > { %v6895_v33 = vrot.slane %v6893_v56, 5  ;;  %v6908_v51 = vshrl.u32 %v6857_v9, 16  ;;  %v6911_v56 = vshll.u32 %v6857_v9, 16  ;;  %v6919_v9 = vrot.slane %v6917_v3, 4 }
 0x466   : > { %v6896_v62 = vor.u32 %v6895_v33, %v6892_v34  ;;  %v6910_v38 = vrot.slane %v6908_v51, 4  ;;  %v6913_v31 = vrot.slane %v6911_v56, 5  ;;  %v12109_v33 = vld [vmem:[%s12476_s6 + $0x1c] sm:$0xf] }
 0x468   : > { %v6906_v34 = vsel %vm1022_vm5, %v6896_v62, %v6905_v0  ;;  %v6914_v44 = vor.u32 %v6913_v31, %v6910_v38  ;;  %v12127_v31 = vld [vmem:[#allocation3 + $0x50] sm:$0xff] }
 0x469   : > { %9593 = vmatmul.mubr.msk.bf16.gmra.mrb[4].mxu1 %vm5049_vm7, %v12719_v47 }
 0x46a   : > { %9596 = vmatprep.mubr.msk.bf16.mxu1 %vm5049_vm7, %v12720_v17  ;;  %v6915_v3 = vsel %vm1022_vm5, %v6905_v0, %v6914_v44 }
 0x471   : > { %9597 = vmatmul.mubr.msk.bf16.gmra.mrb[8].mxu1 %vm5049_vm7, %v12721_v52 }
 0x472   : > { %9600 = vmatprep.mubr.msk.bf16.mxu1 %vm5049_vm7, %v12722_v1 }
 0x479   : > { %9601 = vmatmul.mubr.msk.bf16.gmra.mrb[12].mxu1 %vm5049_vm7, %v12723_v5 }
 0x47a   : > { %9604 = vmatprep.mubr.msk.bf16.mxu1 %vm5049_vm7, %v12724_v40 }
 0x481   : > { %9605 = vmatmul.mubr.msk.bf16.gmra.mrb[16].mxu1 %vm5049_vm7, %v12725_v8 }
 0x482   : > { %9608 = vmatprep.mubr.msk.bf16.mxu1 %vm5049_vm7, %v12726_v41 }
 0x489   : > { %9609 = vmatmul.mubr.msk.bf16.gmra.mrb[20].mxu1 %vm5049_vm7, %v12727_v12 }
 0x48a   : > { %9612 = vmatprep.mubr.msk.bf16.mxu1 %vm5049_vm7, %v12729_v46 }
 0x491   : > { %9613 = vmatmul.mubr.msk.bf16.gmra.mrb[24].mxu1 %vm5049_vm7, %v12731_v55  ;;  %v6859_v55 = vmul.bf16 %v12102_v29, %v12679_v21  ;;  %v12121_v21 = vld [vmem:[#allocation3 + $0x48] sm:$0xff] }
 0x492   : > { %9616 = vmatprep.mubr.msk.bf16.mxu1 %vm5049_vm7, %v12733_v32  ;;  %v7488_v32 = vsel %vm1220_vm4, %v8782_v6, 0  ;;  %v6922_v6 = vrot.slane %v6920_v18, 5 }
 0x493   : > { %v6926_v60 = vshrl.u32 %v6859_v55, 16  ;;  %v6929_v63 = vshll.u32 %v6859_v55, 16  ;;  %v6862_v55 = vmul.bf16 %v12127_v31, %v12682_v30 }
 0x494   : > { %v6923_v51 = vor.u32 %v6922_v6, %v6919_v9 }
 0x495   : > { %v6928_v18 = vrot.slane %v6926_v60, 4  ;;  %v6953_v60 = vshrl.u32 %v6862_v55, 16 }
 0x499   : > { %9617 = vmatmul.mubr.msk.bf16.gmra.mrb[28].mxu1 %vm5049_vm7, %v12086_v45  ;;  %v6897_v45 = vsel %vm1022_vm5, %v6887_v16, %v6896_v62  ;;  %v6931_v62 = vrot.slane %v6929_v63, 5  ;;  %v6956_v63 = vshll.u32 %v6862_v55, 16 }
 0x49a   : > { %9622 = vmatprep.mubr.msk.bf16.mxu1 %vm5049_vm7, %v6888_v42  ;;  %v12113_v42 = vld [vmem:[#allocation3 + $0x40] sm:$0xff] }
 0x49b   : > { %v6860_v16 = vmul.bf16 %v12113_v42, %v12680_v48  ;;  %v6932_v0 = vor.u32 %v6931_v62, %v6928_v18  ;;  %v6958_v18 = vrot.slane %v6956_v63, 5  ;;  %v12139_v62 = vld [vmem:[#allocation3 + $0x60] sm:$0xff] }
 0x49d   : > { %v6938_v56 = vshll.u32 %v6860_v16, 16 }
 0x49f   : > { %v6940_v38 = vrot.slane %v6938_v56, 5 }
 0x4a1   : > { %9623 = vmatmul.mubr.msk.bf16.vlgmr.msra.gmra.mrb[0].mxu1 %vm5049_vm7, %v6897_v45  ;;  %v6935_v45 = vshrl.u32 %v6860_v16, 16 }
 0x4a2   : > { %9655 = vmatpush3.bf16.msra.mxu1 %v7488_v32  ;;  %9626 = vmatprep.mubr.msk.bf16.mxu1 %vm5049_vm7, %v6906_v34  ;;  %v6861_v32 = vmul.bf16 %v12121_v21, %v12681_v59  ;;  %v6924_v34 = vsel %vm1022_vm5, %v6914_v44, %v6923_v51  ;;  %v6933_v59 = vsel %vm1022_vm5, %v6923_v51, %v6932_v0  ;;  %v12133_v44 = vld [vmem:[#allocation3 + $0x58] sm:$0xff] }
 0x4a3   : > { %10284 = vmatprep.subr.msk.bf16.mxu1 %vm1220_vm4, %v12109_v33  ;;  %v6937_v48 = vrot.slane %v6935_v45, 4  ;;  %v6863_v45 = vmul.bf16 %v12133_v44, %v12683_v2 }
 0x4a4   : > { %v6944_v9 = vshrl.u32 %v6861_v32, 16  ;;  %v6947_v6 = vshll.u32 %v6861_v32, 16 }
 0x4a5   : > { %v6941_v16 = vor.u32 %v6940_v38, %v6937_v48  ;;  %v6864_v48 = vmul.bf16 %v12139_v62, %v12684_v28  ;;  %v6962_v32 = vshrl.u32 %v6863_v45, 16  ;;  %v6965_v38 = vshll.u32 %v6863_v45, 16  ;;  %v12736_v45 = vld [vmem:[#allocation33_spill] sm:$0xff] }
 0x4a6   : > { %v6949_v20 = vrot.slane %v6947_v6, 5 }
 0x4a7   : > { %v6942_v56 = vsel %vm1022_vm5, %v6932_v0, %v6941_v16  ;;  %v6974_v6 = vshll.u32 %v6864_v48, 16  ;;  %v6967_v30 = vrot.slane %v6965_v38, 5  ;;  %v12145_v0 = vld [vmem:[#allocation3 + $0x68] sm:$0xff] }
 0x4a9   : > { %9627 = vmatmul.mubr.msk.bf16.gmra.mrb[4].mxu1 %vm5049_vm7, %v6915_v3  ;;  %v6946_v3 = vrot.slane %v6944_v9, 4  ;;  %v6971_v9 = vshrl.u32 %v6864_v48, 16 }
 0x4aa   : > { %9630 = vmatprep.mubr.msk.bf16.mxu1 %vm5049_vm7, %v6924_v34  ;;  %v6955_v34 = vrot.slane %v6953_v60, 4  ;;  %v6865_v60 = vmul.bf16 %v12145_v0, %v12685_v53 }
 0x4ab   : > { %v6950_v51 = vor.u32 %v6949_v20, %v6946_v3  ;;  %v6976_v20 = vrot.slane %v6974_v6, 5  ;;  %v12151_v3 = vld [vmem:[#allocation3 + $0x70] sm:$0xff] }
 0x4ac   : > { %v6959_v55 = vor.u32 %v6958_v18, %v6955_v34  ;;  %v6866_v34 = vmul.bf16 %v12151_v3, %v12736_v45  ;;  %v6980_v18 = vshrl.u32 %v6865_v60, 16  ;;  %v6983_v48 = vshll.u32 %v6865_v60, 16  ;;  %v12738_v60 = vld [vmem:[#allocation36_spill] sm:$0xff] }
 0x4ad   : > { %v6951_v2 = vsel %vm1022_vm5, %v6941_v16, %v6950_v51 }
 0x4ae   : > { %v6960_v63 = vsel %vm1022_vm5, %v6950_v51, %v6959_v55  ;;  %v6989_v38 = vshrl.u32 %v6866_v34, 16  ;;  %v6992_v28 = vshll.u32 %v6866_v34, 16  ;;  %v6985_v11 = vrot.slane %v6983_v48, 5  ;;  %v12157_v51 = vld [vmem:[#allocation3 + $0x78] sm:$0xff] }
 0x4b1   : > { %9631 = vmatmul.mubr.msk.bf16.gmra.mrb[8].mxu1 %vm5049_vm7, %v6933_v59  ;;  %v6964_v59 = vrot.slane %v6962_v32, 4 }
 0x4b2   : > { %9634 = vmatprep.mubr.msk.bf16.mxu1 %vm5049_vm7, %v6942_v56  ;;  %v6973_v56 = vrot.slane %v6971_v9, 4  ;;  %v12737_v9 = vld [vmem:[#allocation34_spill] sm:$0xff] }
 0x4b3   : > { %v6968_v16 = vor.u32 %v6967_v30, %v6964_v59  ;;  %v6867_v6 = vmul.bf16 %v12157_v51, %v12737_v9  ;;  %v6994_v30 = vrot.slane %v6992_v28, 5  ;;  %v12163_v59 = vld [vmem:[#allocation3 + $0x80] sm:$0xff] }
 0x4b4   : > { %v6977_v32 = vor.u32 %v6976_v20, %v6973_v56  ;;  %v6868_v56 = vmul.bf16 %v12163_v59, %v12738_v60  ;;  %v7269_v60 = vmul.bf16 %v12068_v61, %v12711_v57 }
 0x4b5   : > { %v6969_v53 = vsel %vm1022_vm5, %v6959_v55, %v6968_v16  ;;  %v6998_v20 = vshrl.u32 %v6867_v6, 16  ;;  %v7001_v34 = vshll.u32 %v6867_v6, 16 }
 0x4b6   : > { %v6978_v45 = vsel %vm1022_vm5, %v6968_v16, %v6977_v32  ;;  %v7007_v48 = vshrl.u32 %v6868_v56, 16  ;;  %v7010_v46 = vshll.u32 %v6868_v56, 16 }
 0x4b7   : > { %v7003_v12 = vrot.slane %v7001_v34, 5  ;;  %v12740_v34 = vld [vmem:[#allocation16_spill] sm:$0xff] }
 0x4b8   : > { %v7009_v16 = vrot.slane %v7007_v48, 4  ;;  %v7270_v57 = vmul.bf16 %v12074_v13, %v12740_v34 }
 0x4b9   : > { %9635 = vmatmul.mubr.msk.bf16.gmra.mrb[12].mxu1 %vm5049_vm7, %v6951_v2  ;;  %v6982_v2 = vrot.slane %v6980_v18, 4 }
 0x4ba   : > { %9638 = vmatprep.mubr.msk.bf16.mxu1 %vm5049_vm7, %v6960_v63  ;;  %v6991_v63 = vrot.slane %v6989_v38, 4  ;;  %v7012_v38 = vrot.slane %v7010_v46, 5 }
 0x4bb   : > { %v6986_v55 = vor.u32 %v6985_v11, %v6982_v2  ;;  %v6869_v11 = vmul.bf16 %v12017_v4, %v12710_v7 }
 0x4bc   : > { %v6995_v18 = vor.u32 %v6994_v30, %v6991_v63  ;;  %v7013_v6 = vor.u32 %v7012_v38, %v7009_v16  ;;  %v7296_v63 = vshrl.u32 %v7269_v60, 16  ;;  %v7299_v30 = vshll.u32 %v7269_v60, 16 }
 0x4bd   : > { %v6987_v9 = vsel %vm1022_vm5, %v6977_v32, %v6986_v55  ;;  %v7019_v56 = vshll.u32 %v6869_v11, 16 }
 0x4be   : > { %v6996_v28 = vsel %vm1022_vm5, %v6986_v55, %v6995_v18  ;;  %v7301_v7 = vrot.slane %v7299_v30, 4 }
 0x4c1   : > { %9639 = vmatmul.mubr.msk.bf16.gmra.mrb[16].mxu1 %vm5049_vm7, %v6969_v53  ;;  %v7000_v53 = vrot.slane %v6998_v20, 4 }
 0x4c2   : > { %9642 = vmatprep.mubr.msk.bf16.mxu1 %vm5049_vm7, %v6978_v45  ;;  %v12739_v45 = vld [vmem:[#allocation14_spill] sm:$0xff] }
 0x4c3   : > { %v7268_v2 = vmul.bf16 %v12062_v15, %v12739_v45  ;;  %v7004_v32 = vor.u32 %v7003_v12, %v7000_v53  ;;  %v7271_v12 = vmul.bf16 %v12088_v26, %v12713_v27  ;;  %v7021_v53 = vrot.slane %v7019_v56, 5 }
 0x4c4   : > { %v7272_v27 = vmul.bf16 %v12095_v10, %v12714_v49  ;;  %v7692_v49 = vsel %vm1220_vm4, %v12109_v33, 0  ;;  %v7275_v33 = vmul.bf16 %v12121_v21, %v10895_v36 }
 0x4c5   : > { %v7288_v55 = vshrl.u32 %v7268_v2, 16  ;;  %v7291_v20 = vshll.u32 %v7268_v2, 16  ;;  %v7005_v46 = vsel %vm1022_vm5, %v6995_v18, %v7004_v32  ;;  %v7014_v48 = vsel %vm1022_vm5, %v7004_v32, %v7013_v6 }
 0x4c6   : > { %v7308_v18 = vshll.u32 %v7270_v57, 16  ;;  %v7314_v2 = vshrl.u32 %v7271_v12, 16  ;;  %v7317_v34 = vshll.u32 %v7271_v12, 16 }
 0x4c7   : > { %v7290_v16 = vrot.slane %v7288_v55, 3  ;;  %v7293_v38 = vrot.slane %v7291_v20, 4 }
 0x4c8   : > { %v7310_v30 = vrot.slane %v7308_v18, 4  ;;  %v7316_v56 = vrot.slane %v7314_v2, 3  ;;  %v7319_v55 = vrot.slane %v7317_v34, 4 }
 0x4c9   : > { %9643 = vmatmul.mubr.msk.bf16.gmra.mrb[20].mxu1 %vm5049_vm7, %v6987_v9  ;;  %v7016_v9 = vshrl.u32 %v6869_v11, 16  ;;  %v7305_v11 = vshrl.u32 %v7270_v57, 16  ;;  %v7323_v57 = vshrl.u32 %v7272_v27, 16 }
 0x4ca   : > { %9646 = vmatprep.mubr.msk.bf16.mxu1 %vm5049_vm7, %v6996_v28  ;;  %v7298_v28 = vrot.slane %v7296_v63, 3 }
 0x4cb   : > { %v7018_v60 = vrot.slane %v7016_v9, 4  ;;  %v7307_v63 = vrot.slane %v7305_v11, 3 }
 0x4cc   : > { %v7302_v45 = vor.u32 %v7301_v7, %v7298_v28  ;;  %v7273_v7 = vmul.bf16 %v12102_v29, %v10869_v39  ;;  %v12202_v39 = vld [vmem:[%s12476_s6 + $0x20] sm:$0xf] }
 0x4cd   : > { %v7022_v13 = vor.u32 %v7021_v53, %v7018_v60  ;;  %v7311_v20 = vor.u32 %v7310_v30, %v7307_v63  ;;  %v7325_v60 = vrot.slane %v7323_v57, 3 }
 0x4ce   : > { %v7335_v28 = vshll.u32 %v7273_v7, 16 }
 0x4cf   : > { %v7023_v32 = vsel %vm1022_vm5, %v7013_v6, %v7022_v13  ;;  %v7320_v13 = vor.u32 %v7319_v55, %v7316_v56  ;;  %v7332_v6 = vshrl.u32 %v7273_v7, 16  ;;  %v7312_v12 = vsel %vm1467_vm6, %v7302_v45, %v7311_v20 }
 0x4d0   : > { %v7337_v18 = vrot.slane %v7335_v28, 4  ;;  %v7277_v7 = vmul.bf16 %v12133_v44, %v10911_v24 }
 0x4d1   : > { %9647 = vmatmul.mubr.msk.bf16.gmra.mrb[24].mxu1 %vm5049_vm7, %v7005_v46  ;;  %v7294_v46 = vor.u32 %v7293_v38, %v7290_v16  ;;  %v7274_v16 = vmul.bf16 %v12113_v42, %v10882_v14  ;;  %v7321_v38 = vsel %vm1467_vm6, %v7311_v20, %v7320_v13  ;;  %v7334_v11 = vrot.slane %v7332_v6, 3 }
 0x4d2   : > { %9650 = vmatprep.mubr.msk.bf16.mxu1 %vm5049_vm7, %v7014_v48  ;;  %v7326_v48 = vshll.u32 %v7272_v27, 16  ;;  %v7368_v6 = vshrl.u32 %v7277_v7, 16  ;;  %v7371_v28 = vshll.u32 %v7277_v7, 16 }
 0x4d3   : > { %v7303_v9 = vsel %vm1467_vm6, %v7294_v46, %v7302_v45  ;;  %v7341_v45 = vshrl.u32 %v7274_v16, 16  ;;  %v7344_v2 = vshll.u32 %v7274_v16, 16  ;;  %v7338_v34 = vor.u32 %v7337_v18, %v7334_v11 }
 0x4d4   : > { %v7328_v53 = vrot.slane %v7326_v48, 4  ;;  %v7350_v46 = vshrl.u32 %v7275_v33, 16  ;;  %v7370_v24 = vrot.slane %v7368_v6, 3  ;;  %v7373_v16 = vrot.slane %v7371_v28, 4 }
 0x4d5   : > { %v7343_v30 = vrot.slane %v7341_v45, 3  ;;  %v7346_v27 = vrot.slane %v7344_v2, 4 }
 0x4d6   : > { %v7329_v14 = vor.u32 %v7328_v53, %v7325_v60  ;;  %v7352_v56 = vrot.slane %v7350_v46, 3  ;;  %v7278_v60 = vmul.bf16 %v12139_v62, %v10921_v37 }
 0x4d7   : > { %v7347_v20 = vor.u32 %v7346_v27, %v7343_v30  ;;  %v7281_v27 = vmul.bf16 %v12157_v51, %v10946_v22 }
 0x4d8   : > { %v7330_v63 = vsel %vm1467_vm6, %v7320_v13, %v7329_v14  ;;  %v7339_v36 = vsel %vm1467_vm6, %v7329_v14, %v7338_v34  ;;  %v7377_v18 = vshrl.u32 %v7278_v60, 16  ;;  %v7374_v14 = vor.u32 %v7373_v16, %v7370_v24 }
 0x4d9   : > { %9651 = vmatmul.mubr.msk.bf16.gmra.mrb[28].mxu1 %vm5049_vm7, %v7023_v32  ;;  %v7353_v32 = vshll.u32 %v7275_v33, 16  ;;  %v7380_v33 = vshll.u32 %v7278_v60, 16  ;;  %v7404_v7 = vshrl.u32 %v7281_v27, 16 }
 0x4da   : > { %9656 = vmatprep.mubr.msk.bf16.mxu1 %vm5049_vm7, %v7303_v9  ;;  %v7276_v9 = vmul.bf16 %v12127_v31, %v12715_v50  ;;  %v7379_v37 = vrot.slane %v7377_v18, 3 }
 0x4db   : > { %v7355_v55 = vrot.slane %v7353_v32, 4  ;;  %v7382_v46 = vrot.slane %v7380_v33, 4  ;;  %v7280_v32 = vmul.bf16 %v12151_v3, %v10937_v54  ;;  %v7406_v22 = vrot.slane %v7404_v7, 3  ;;  %v12748_v7 = vld [vmem:[#allocation41_spill] sm:$0xff] }
 0x4dc   : > { %v7359_v57 = vshrl.u32 %v7276_v9, 16  ;;  %v7362_v48 = vshll.u32 %v7276_v9, 16 }
 0x4dd   : > { %v7356_v13 = vor.u32 %v7355_v55, %v7352_v56  ;;  %v7383_v9 = vor.u32 %v7382_v46, %v7379_v37  ;;  %v7398_v56 = vshll.u32 %v7280_v32, 16 }
 0x4de   : > { %v7361_v50 = vrot.slane %v7359_v57, 3 }
 0x4df   : > { %v7357_v53 = vsel %vm1467_vm6, %v7347_v20, %v7356_v13  ;;  %v7384_v57 = vsel %vm1467_vm6, %v7374_v14, %v7383_v9 }
 0x4e1   : > { %9657 = vmatmul.mubr.msk.bf16.vlgmr.msra.gmra.mrb[0].mxu1 %vm5049_vm7, %v7312_v12  ;;  %v7364_v12 = vrot.slane %v7362_v48, 4  ;;  %v7400_v48 = vrot.slane %v7398_v56, 4  ;;  %v12747_v56 = vld [vmem:[#allocation15_spill] sm:$0xff] }
 0x4e2   : > { %9689 = vmatpush3.bf16.msra.mxu1 %v7692_v49  ;;  %9660 = vmatprep.mubr.msk.bf16.mxu1 %vm5049_vm7, %v7321_v38  ;;  %v7348_v49 = vsel %vm1467_vm6, %v7338_v34, %v7347_v20  ;;  %v7279_v38 = vmul.bf16 %v12145_v0, %v10930_v19  ;;  %v7407_v20 = vshll.u32 %v7281_v27, 16 }
 0x4e3   : > { %10285 = vmatprep.subr.msk.bf16.mxu1 %vm1220_vm4, %v12202_v39  ;;  %v7365_v11 = vor.u32 %v7364_v12, %v7361_v50 }
 0x4e4   : > { %v7386_v45 = vshrl.u32 %v7279_v38, 16  ;;  %v7389_v2 = vshll.u32 %v7279_v38, 16  ;;  %v7409_v28 = vrot.slane %v7407_v20, 4  ;;  %v12243_v38 = vld [vmem:[#allocation3 + $0x90] sm:$0xff] }
 0x4e5   : > { %v7366_v34 = vsel %vm1467_vm6, %v7356_v13, %v7365_v11  ;;  %v7282_v13 = vmul.bf16 %v12163_v59, %v10957_v43 }
 0x4e6   : > { %v7388_v19 = vrot.slane %v7386_v45, 3  ;;  %v7391_v30 = vrot.slane %v7389_v2, 4 }
 0x4e7   : > { %v7413_v12 = vshrl.u32 %v7282_v13, 16  ;;  %v7416_v60 = vshll.u32 %v7282_v13, 16 }
 0x4e8   : > { %v7392_v55 = vor.u32 %v7391_v30, %v7388_v19 }
 0x4e9   : > { %9661 = vmatmul.mubr.msk.bf16.gmra.mrb[4].mxu1 %vm5049_vm7, %v7330_v63  ;;  %v7375_v63 = vsel %vm1467_vm6, %v7365_v11, %v7374_v14  ;;  %v7415_v11 = vrot.slane %v7413_v12, 3  ;;  %v7418_v18 = vrot.slane %v7416_v60, 4 }
 0x4ea   : > { %9664 = vmatprep.mubr.msk.bf16.mxu1 %vm5049_vm7, %v7339_v36  ;;  %v7395_v36 = vshrl.u32 %v7280_v32, 16  ;;  %v7393_v6 = vsel %vm1467_vm6, %v7383_v9, %v7392_v55 }
 0x4eb   : > { %v7419_v2 = vor.u32 %v7418_v18, %v7415_v11 }
 0x4ec   : > { %v7397_v54 = vrot.slane %v7395_v36, 3 }
 0x4ee   : > { %v7401_v50 = vor.u32 %v7400_v48, %v7397_v54  ;;  %v12749_v54 = vld [vmem:[#allocation23_spill] sm:$0xff]  ;;  %v12750_v48 = vld [vmem:[#allocation17_spill] sm:$0xff] }
 0x4f0   : > { %v7402_v43 = vsel %vm1467_vm6, %v7392_v55, %v7401_v50 }
 0x4f1   : > { %9665 = vmatmul.mubr.msk.bf16.gmra.mrb[8].mxu1 %vm5049_vm7, %v7348_v49  ;;  %v7283_v49 = vmul.bf16 %v12017_v4, %v10969_v35  ;;  %v7284_v35 = vmul.bf16 %v12243_v38, %v10960_v58  ;;  %v8107_v58 = vsel %vm1220_vm4, %v12202_v39, 0 }
 0x4f2   : > { %9668 = vmatprep.mubr.msk.bf16.mxu1 %vm5049_vm7, %v7357_v53  ;;  %v7410_v53 = vor.u32 %v7409_v28, %v7406_v22 }
 0x4f3   : > { %v7422_v24 = vshrl.u32 %v7283_v49, 16  ;;  %v7425_v16 = vshll.u32 %v7283_v49, 16  ;;  %v7434_v37 = vshll.u32 %v7284_v35, 16 }
 0x4f4   : > { %v7411_v33 = vsel %vm1467_vm6, %v7401_v50, %v7410_v53  ;;  %v7420_v32 = vsel %vm1467_vm6, %v7410_v53, %v7419_v2  ;;  %v12751_v53 = vrot.slane %v12017_v4, 4 }
 0x4f5   : > { %v7424_v14 = vrot.slane %v7422_v24, 3  ;;  %v7427_v45 = vrot.slane %v7425_v16, 4  ;;  %v7436_v30 = vrot.slane %v7434_v37, 4 }
 0x4f7   : > { %v7428_v46 = vor.u32 %v7427_v45, %v7424_v14  ;;  %v12753_v14 = vld [vmem:[#allocation25_spill] sm:$0xff] }
 0x4f8   : > { %v7892_v45 = vmul.bf16 %v12102_v29, %v12753_v14 }
 0x4f9   : > { %9669 = vmatmul.mubr.msk.bf16.gmra.mrb[12].mxu1 %vm5049_vm7, %v7366_v34  ;;  %v7431_v34 = vshrl.u32 %v7284_v35, 16 }
 0x4fa   : > { %9672 = vmatprep.mubr.msk.bf16.mxu1 %vm5049_vm7, %v7375_v63  ;;  %v7429_v63 = vsel %vm1467_vm6, %v7419_v2, %v7428_v46 }
 0x4fb   : > { %v7433_v19 = vrot.slane %v7431_v34, 3 }
 0x4fd   : > { %v7437_v27 = vor.u32 %v7436_v30, %v7433_v19 }
 0x4ff   : > { %v7438_v9 = vsel %vm1467_vm6, %v7428_v46, %v7437_v27  ;;  %v12754_v27 = vld [vmem:[#allocation26_spill] sm:$0xff] }
 0x501   : > { %9673 = vmatmul.mubr.msk.bf16.gmra.mrb[16].mxu1 %vm5049_vm7, %v7384_v57 }
 0x502   : > { %9676 = vmatprep.mubr.msk.bf16.mxu1 %vm5049_vm7, %v7393_v6  ;;  %v7686_v6 = vrot.slane %v12243_v38, 4 }
 0x504   : > { %v7687_v24 = vsel %vm1220_vm4, %v12751_v53, %v7686_v6  ;;  %v12759_v53 = vld [vmem:[#allocation31_spill] sm:$0xff] }
 0x509   : > { %9677 = vmatmul.mubr.msk.bf16.gmra.mrb[20].mxu1 %vm5049_vm7, %v7402_v43 }
 0x50a   : > { %9680 = vmatprep.mubr.msk.bf16.mxu1 %vm5049_vm7, %v7411_v33 }
 0x511   : > { %9681 = vmatmul.mubr.msk.bf16.gmra.mrb[24].mxu1 %vm5049_vm7, %v7420_v32  ;;  %v7951_v32 = vshrl.u32 %v7892_v45, 16 }
 0x512   : > { %9684 = vmatprep.mubr.msk.bf16.mxu1 %vm5049_vm7, %v7429_v63  ;;  %v7954_v63 = vshll.u32 %v7892_v45, 16  ;;  %v12760_v45 = vld [vmem:[#allocation32_spill] sm:$0xff] }
 0x513   : > { %v7953_v29 = vrot.slane %v7951_v32, 4 }
 0x519   : > { %9685 = vmatmul.mubr.msk.bf16.gmra.mrb[28].mxu1 %vm5049_vm7, %v7438_v9  ;;  %v7893_v9 = vmul.bf16 %v12113_v42, %v12754_v27 }
 0x51a   : > { %9690 = vmatprep.mubr.msk.bf16.mxu1 %vm5049_vm7, %v12717_v25  ;;  %v12741_v25 = vld [vmem:[#allocation38_spill] sm:$0xff] }
 0x521   : > { %9691 = vmatmul.mubr.msk.bf16.vlgmr.msra.gmra.mrb[0].mxu1 %vm5049_vm7, %v12718_v23  ;;  %v12742_v23 = vld [vmem:[#allocation39_spill] sm:$0xff] }
 0x522   : > { %9723 = vmatpush3.bf16.msra.mxu1 %v8107_v58  ;;  %9694 = vmatprep.mubr.msk.bf16.mxu1 %vm5049_vm7, %v12719_v47  ;;  %v12743_v47 = vld [vmem:[#allocation21_spill] sm:$0xff] }
 0x529   : > { %9695 = vmatmul.mubr.msk.bf16.gmra.mrb[4].mxu1 %vm5049_vm7, %v12720_v17  ;;  %v7888_v17 = vmul.bf16 %v12068_v61, %v12743_v47  ;;  %v7890_v61 = vmul.bf16 %v12088_v26, %v12749_v54  ;;  %v12752_v26 = vld [vmem:[#allocation24_spill] sm:$0xff] }
 0x52a   : > { %9698 = vmatprep.mubr.msk.bf16.mxu1 %vm5049_vm7, %v12721_v52  ;;  %v12744_v52 = vld [vmem:[#allocation40_spill] sm:$0xff]  ;;  %v7891_v11 = vmul.bf16 %v12095_v10, %v12752_v26 }
 0x52b   : > { %v7933_v50 = vshrl.u32 %v7890_v61, 16  ;;  %v7936_v12 = vshll.u32 %v7890_v61, 16 }
 0x52c   : > { %v7942_v34 = vshrl.u32 %v7891_v11, 16  ;;  %v7945_v37 = vshll.u32 %v7891_v11, 16 }
 0x52d   : > { %v7935_v33 = vrot.slane %v7933_v50, 4  ;;  %v7938_v35 = vrot.slane %v7936_v12, 5 }
 0x52e   : > { %v7944_v10 = vrot.slane %v7942_v34, 4  ;;  %v7947_v30 = vrot.slane %v7945_v37, 5 }
 0x52f   : > { %v7939_v46 = vor.u32 %v7938_v35, %v7935_v33 }
 0x531   : > { %9699 = vmatmul.mubr.msk.bf16.gmra.mrb[8].mxu1 %vm5049_vm7, %v12722_v1  ;;  %v12745_v1 = vld [vmem:[#allocation20_spill] sm:$0xff] }
 0x532   : > { %9702 = vmatprep.mubr.msk.bf16.mxu1 %vm5049_vm7, %v12723_v5  ;;  %v7887_v5 = vmul.bf16 %v12062_v15, %v12745_v1  ;;  %v7963_v1 = vshll.u32 %v7893_v9, 16 }
 0x534   : > { %v7907_v39 = vshrl.u32 %v7887_v5, 16  ;;  %v7910_v36 = vshll.u32 %v7887_v5, 16 }
 0x536   : > { %v7909_v13 = vrot.slane %v7907_v39, 4  ;;  %v7912_v15 = vrot.slane %v7910_v36, 5  ;;  %v7965_v36 = vrot.slane %v7963_v1, 5 }
 0x538   : > { %v7913_v60 = vor.u32 %v7912_v15, %v7909_v13 }
 0x539   : > { %9703 = vmatmul.mubr.msk.bf16.gmra.mrb[12].mxu1 %vm5049_vm7, %v12724_v40  ;;  %v7915_v40 = vshrl.u32 %v7888_v17, 16 }
 0x53a   : > { %9706 = vmatprep.mubr.msk.bf16.mxu1 %vm5049_vm7, %v12725_v8  ;;  %v7918_v8 = vshll.u32 %v7888_v17, 16  ;;  %v7948_v17 = vor.u32 %v7947_v30, %v7944_v10 }
 0x53b   : > { %v7917_v20 = vrot.slane %v7915_v40, 4 }
 0x53c   : > { %v7920_v57 = vrot.slane %v7918_v8, 5  ;;  %v7949_v39 = vsel %vm1022_vm5, %v7939_v46, %v7948_v17 }
 0x53e   : > { %v7921_v49 = vor.u32 %v7920_v57, %v7917_v20  ;;  %v12757_v20 = vld [vmem:[#allocation29_spill] sm:$0xff] }
 0x53f   : > { %v7896_v57 = vmul.bf16 %v12133_v44, %v12757_v20 }
 0x540   : > { %v7922_v18 = vsel %vm1022_vm5, %v7913_v60, %v7921_v49 }
 0x541   : > { %9707 = vmatmul.mubr.msk.bf16.gmra.mrb[16].mxu1 %vm5049_vm7, %v12726_v41  ;;  %v12746_v41 = vld [vmem:[#allocation22_spill] sm:$0xff]  ;;  %v7987_v15 = vshrl.u32 %v7896_v57, 16  ;;  %v7990_v6 = vshll.u32 %v7896_v57, 16 }
 0x542   : > { %9710 = vmatprep.mubr.msk.bf16.mxu1 %vm5049_vm7, %v12741_v25  ;;  %v7889_v55 = vmul.bf16 %v12747_v56, %v12746_v41  ;;  %v7956_v25 = vrot.slane %v7954_v63, 5  ;;  %v12756_v41 = vld [vmem:[#allocation28_spill] sm:$0xff] }
 0x543   : > { %v7895_v56 = vmul.bf16 %v12127_v31, %v12756_v41  ;;  %v7989_v44 = vrot.slane %v7987_v15, 4  ;;  %v7992_v60 = vrot.slane %v7990_v6, 5 }
 0x544   : > { %v7924_v22 = vshrl.u32 %v7889_v55, 16  ;;  %v7927_v28 = vshll.u32 %v7889_v55, 16  ;;  %v7957_v5 = vor.u32 %v7956_v25, %v7953_v29  ;;  %v12762_v25 = vld [vmem:[#allocation34_spill] sm:$0xff] }
 0x545   : > { %v7978_v61 = vshrl.u32 %v7895_v56, 16  ;;  %v7993_v11 = vor.u32 %v7992_v60, %v7989_v44 }
 0x546   : > { %v7926_v16 = vrot.slane %v7924_v22, 4  ;;  %v7929_v43 = vrot.slane %v7927_v28, 5  ;;  %v7958_v55 = vsel %vm1022_vm5, %v7948_v17, %v7957_v5 }
 0x547   : > { %v7980_v31 = vrot.slane %v7978_v61, 4 }
 0x548   : > { %v7930_v2 = vor.u32 %v7929_v43, %v7926_v16 }
 0x549   : > { %9711 = vmatmul.mubr.msk.bf16.gmra.mrb[20].mxu1 %vm5049_vm7, %v12742_v23  ;;  %v12755_v23 = vld [vmem:[#allocation27_spill] sm:$0xff] }
 0x54a   : > { %9714 = vmatprep.mubr.msk.bf16.mxu1 %vm5049_vm7, %v12744_v52  ;;  %v7931_v19 = vsel %vm1022_vm5, %v7921_v49, %v7930_v2  ;;  %v7940_v58 = vsel %vm1022_vm5, %v7930_v2, %v7939_v46  ;;  %v7894_v47 = vmul.bf16 %v12121_v21, %v12755_v23  ;;  %v7960_v52 = vshrl.u32 %v7893_v9, 16  ;;  %v12758_v49 = vld [vmem:[#allocation30_spill] sm:$0xff]  ;;  %v12761_v46 = vld [vmem:[#allocation33_spill] sm:$0xff] }
 0x54b   : > { %v7897_v50 = vmul.bf16 %v12139_v62, %v12758_v49  ;;  %v7899_v2 = vmul.bf16 %v12151_v3, %v12760_v45  ;;  %v7900_v32 = vmul.bf16 %v12157_v51, %v12761_v46  ;;  %v7901_v23 = vmul.bf16 %v12163_v59, %v12762_v25 }
 0x54c   : > { %v7969_v40 = vshrl.u32 %v7894_v47, 16  ;;  %v7972_v8 = vshll.u32 %v7894_v47, 16  ;;  %v7962_v42 = vrot.slane %v7960_v52, 4  ;;  %v12763_v52 = vld [vmem:[#allocation36_spill] sm:$0xff] }
 0x54d   : > { %v7996_v43 = vshrl.u32 %v7897_v50, 16  ;;  %v7999_v26 = vshll.u32 %v7897_v50, 16  ;;  %v8017_v10 = vshll.u32 %v7899_v2, 16  ;;  %v8023_v27 = vshrl.u32 %v7900_v32, 16 }
 0x54e   : > { %v7971_v21 = vrot.slane %v7969_v40, 4  ;;  %v7966_v54 = vor.u32 %v7965_v36, %v7962_v42  ;;  %v8026_v9 = vshll.u32 %v7900_v32, 16  ;;  %v7902_v1 = vmul.bf16 %v12017_v4, %v12763_v52 }
 0x54f   : > { %v7998_v62 = vrot.slane %v7996_v43, 4  ;;  %v8001_v14 = vrot.slane %v7999_v26, 5  ;;  %v8019_v29 = vrot.slane %v8017_v10, 5  ;;  %v8025_v51 = vrot.slane %v8023_v27, 4 }
 0x550   : > { %v7967_v22 = vsel %vm1022_vm5, %v7957_v5, %v7966_v54  ;;  %v8028_v17 = vrot.slane %v8026_v9, 5  ;;  %v8032_v40 = vshrl.u32 %v7901_v23, 16  ;;  %v8041_v42 = vshrl.u32 %v7902_v1, 16 }
 0x551   : > { %9715 = vmatmul.mubr.msk.bf16.gmra.mrb[24].mxu1 %vm5049_vm7, %v12748_v7  ;;  %v7974_v7 = vrot.slane %v7972_v8, 5  ;;  %v8002_v63 = vor.u32 %v8001_v14, %v7998_v62  ;;  %v8035_v8 = vshll.u32 %v7901_v23, 16  ;;  %v8044_v36 = vshll.u32 %v7902_v1, 16 }
 0x552   : > { %9718 = vmatprep.mubr.msk.bf16.mxu1 %vm5049_vm7, %v12750_v48  ;;  %v7981_v48 = vshll.u32 %v7895_v56, 16  ;;  %v8034_v59 = vrot.slane %v8032_v40, 4  ;;  %v8043_v4 = vrot.slane %v8041_v42, 4 }
 0x553   : > { %v7975_v13 = vor.u32 %v7974_v7, %v7971_v21  ;;  %v8037_v56 = vrot.slane %v8035_v8, 5  ;;  %v12764_v21 = vld [vmem:[#allocation35_spill] sm:$0xff]  ;;  %v8046_v20 = vrot.slane %v8044_v36, 5 }
 0x554   : > { %v7983_v28 = vrot.slane %v7981_v48, 5  ;;  %v7903_v7 = vmul.bf16 %v12243_v38, %v12764_v21 }
 0x555   : > { %v7976_v12 = vsel %vm1022_vm5, %v7966_v54, %v7975_v13  ;;  %v8038_v57 = vor.u32 %v8037_v56, %v8034_v59  ;;  %v8047_v48 = vor.u32 %v8046_v20, %v8043_v4 }
 0x556   : > { %v7984_v16 = vor.u32 %v7983_v28, %v7980_v31  ;;  %v8050_v54 = vshrl.u32 %v7903_v7, 16  ;;  %v8053_v61 = vshll.u32 %v7903_v7, 16  ;;  %v12363_v28 = vld [vmem:[%s12477_s7] ss:$0 sm:$0xff] }
 0x557   : > { %v8048_v15 = vsel %vm1022_vm5, %v8038_v57, %v8047_v48 }
 0x558   : > { %v7985_v35 = vsel %vm1022_vm5, %v7975_v13, %v7984_v16  ;;  %v7994_v34 = vsel %vm1022_vm5, %v7984_v16, %v7993_v11  ;;  %v8052_v6 = vrot.slane %v8050_v54, 4 }
 0x559   : > { %9719 = vmatmul.mubr.msk.bf16.gmra.mrb[28].mxu1 %vm5049_vm7, %v7687_v24  ;;  %v7898_v24 = vmul.bf16 %v12145_v0, %v12759_v53 }
 0x55a   : > { %9724 = vmatprep.mubr.msk.bf16.mxu1 %vm5049_vm7, %v7922_v18 }
 0x55b   : > { %v8005_v18 = vshrl.u32 %v7898_v24, 16  ;;  %v8008_v33 = vshll.u32 %v7898_v24, 16 }
 0x55d   : > { %v8007_v0 = vrot.slane %v8005_v18, 4  ;;  %v8010_v37 = vrot.slane %v8008_v33, 5 }
 0x55f   : > { %v8011_v30 = vor.u32 %v8010_v37, %v8007_v0 }
 0x561   : > { %9725 = vmatmul.mubr.msk.bf16.vlgmr.msra.gmra.mrb[0].mxu1 %vm5049_vm7, %v7931_v19  ;;  %v8014_v19 = vshrl.u32 %v7899_v2, 16  ;;  %v8012_v47 = vsel %vm1022_vm5, %v8002_v63, %v8011_v30 }
 0x562   : > { %9728 = vmatprep.mubr.msk.bf16.mxu1 %vm5049_vm7, %v7940_v58  ;;  %v8003_v58 = vsel %vm1022_vm5, %v7993_v11, %v8002_v63 }
 0x563   : > { %v8016_v3 = vrot.slane %v8014_v19, 4 }
 0x565   : > { %v8020_v5 = vor.u32 %v8019_v29, %v8016_v3 }
 0x567   : > { %v8021_v41 = vsel %vm1022_vm5, %v8011_v30, %v8020_v5 }
 0x569   : > { %9729 = vmatmul.mubr.msk.bf16.gmra.mrb[4].mxu1 %vm5049_vm7, %v7949_v39  ;;  %v8029_v39 = vor.u32 %v8028_v17, %v8025_v51 }
 0x56a   : > { %9732 = vmatprep.mubr.msk.bf16.mxu1 %vm5049_vm7, %v7958_v55 }
 0x56b   : > { %v8030_v55 = vsel %vm1022_vm5, %v8020_v5, %v8029_v39  ;;  %v8039_v13 = vsel %vm1022_vm5, %v8029_v39, %v8038_v57 }
 0x571   : > { %9733 = vmatmul.mubr.msk.bf16.gmra.mrb[8].mxu1 %vm5049_vm7, %v7967_v22  ;;  %v8055_v22 = vrot.slane %v8053_v61, 5 }
 0x572   : > { %9736 = vmatprep.mubr.msk.bf16.mxu1 %vm5049_vm7, %v7976_v12 }
 0x573   : > { %v8056_v31 = vor.u32 %v8055_v22, %v8052_v6 }
 0x575   : > { %v8057_v38 = vsel %vm1022_vm5, %v8047_v48, %v8056_v31 }
 0x579   : > { %9737 = vmatmul.mubr.msk.bf16.gmra.mrb[12].mxu1 %vm5049_vm7, %v7985_v35 }
 0x57a   : > { %9740 = vmatprep.mubr.msk.bf16.mxu1 %vm5049_vm7, %v7994_v34 }
 0x581   : > { %9741 = vmatmul.mubr.msk.bf16.gmra.mrb[16].mxu1 %vm5049_vm7, %v8003_v58 }
 0x582   : > { %9744 = vmatprep.mubr.msk.bf16.mxu1 %vm5049_vm7, %v8012_v47 }
 0x589   : > { %9745 = vmatmul.mubr.msk.bf16.gmra.mrb[20].mxu1 %vm5049_vm7, %v8021_v41 }
 0x58a   : > { %9748 = vmatprep.mubr.msk.bf16.mxu1 %vm5049_vm7, %v8030_v55 }
 0x591   : > { %9749 = vmatmul.mubr.msk.bf16.gmra.mrb[24].mxu1 %vm5049_vm7, %v8039_v13 }
 0x592   : > { %9752 = vmatprep.mubr.msk.bf16.mxu1 %vm5049_vm7, %v8048_v15 }
 0x599   : > { %9753 = vmatmul.mubr.msk.bf16.gmra.mrb[28].mxu1 %vm5049_vm7, %v8057_v38 }
 0x634   : > { %v9726_v49 = vpop.f32.mrb[0].mxu1 }
 0x635   : > { %v8311_v50 = vadd.f32 %v9726_v49, %v12363_v28  ;;  %v8143_v12 = vpop.f32.mrb[1].mxu1 }
 0x636   : > { %v8309_v44 = vadd.f32 %v12363_v28, %v8143_v12  ;;  %v9727_v60 = vpop.f32.mrb[2].mxu1 }
 0x637   : > { %v8343_v53 = vmax.f32 %v8311_v50, 0.0  ;;  %v8312_v24 = vadd.f32 %v9727_v60, %v12363_v28  ;;  %v8146_v16 = vpop.f32.mrb[3].mxu1 }
 0x638   : > { %v8341_v43 = vmax.f32 %v8309_v44, 0.0  ;;  %v8310_v26 = vadd.f32 %v12363_v28, %v8146_v16 }
 0x639   : > { %8375 = vst.msk [vmem:[%s12370_s22 + $0x10] sm:$0xff] %vm5049_vm7, %v8343_v53  ;;  %v8344_v11 = vmax.f32 %v8312_v24, 0.0 }
 0x63a   : > { %8373 = vst.msk [vmem:[%s12370_s22] sm:$0xff] %vm5049_vm7, %v8341_v43  ;;  %v8342_v18 = vmax.f32 %v8310_v26, 0.0 }
 0x63b   : > { %8376 = vst.msk [vmem:[%s12370_s22 + $0x18] sm:$0xff] %vm5049_vm7, %v8344_v11 }
 0x63c   : > { %8374 = vst.msk [vmem:[%s12370_s22 + $0x8] sm:$0xff] %vm5049_vm7, %v8342_v18  ;;  %v9730_v33 = vpop.f32.mrb[4].mxu1 }
 0x63d   : > { %v8315_v35 = vadd.f32 %v9730_v33, %v12363_v28  ;;  %v8159_v62 = vpop.f32.mrb[5].mxu1 }
 0x63e   : > { %v8313_v14 = vadd.f32 %v12363_v28, %v8159_v62  ;;  %v9731_v45 = vpop.f32.mrb[6].mxu1 }
 0x63f   : > { %v8347_v2 = vmax.f32 %v8315_v35, 0.0  ;;  %v8316_v34 = vadd.f32 %v9731_v45, %v12363_v28  ;;  %v8162_v0 = vpop.f32.mrb[7].mxu1 }
 0x640   : > { %v8345_v37 = vmax.f32 %v8313_v14, 0.0  ;;  %v8314_v46 = vadd.f32 %v12363_v28, %v8162_v0 }
 0x641   : > { %8379 = vst.msk [vmem:[%s12370_s22 + $0x30] sm:$0xff] %vm5049_vm7, %v8347_v2  ;;  %v8348_v32 = vmax.f32 %v8316_v34, 0.0 }
 0x642   : > { %8377 = vst.msk [vmem:[%s12370_s22 + $0x20] sm:$0xff] %vm5049_vm7, %v8345_v37  ;;  %v8346_v63 = vmax.f32 %v8314_v46, 0.0 }
 0x643   : > { %8380 = vst.msk [vmem:[%s12370_s22 + $0x38] sm:$0xff] %vm5049_vm7, %v8348_v32 }
 0x644   : > { %8378 = vst.msk [vmem:[%s12370_s22 + $0x28] sm:$0xff] %vm5049_vm7, %v8346_v63  ;;  %v9734_v19 = vpop.f32.mrb[8].mxu1 }
 0x645   : > { %v8319_v10 = vadd.f32 %v9734_v19, %v12363_v28  ;;  %v8175_v30 = vpop.f32.mrb[9].mxu1 }
 0x646   : > { %v8317_v27 = vadd.f32 %v12363_v28, %v8175_v30  ;;  %v9735_v9 = vpop.f32.mrb[10].mxu1 }
 0x647   : > { %v8351_v58 = vmax.f32 %v8319_v10, 0.0  ;;  %v8320_v3 = vadd.f32 %v9735_v9, %v12363_v28  ;;  %v8178_v29 = vpop.f32.mrb[11].mxu1 }
 0x648   : > { %v8349_v25 = vmax.f32 %v8317_v27, 0.0  ;;  %v8318_v23 = vadd.f32 %v12363_v28, %v8178_v29 }
 0x649   : > { %8383 = vst.msk [vmem:[%s12370_s22 + $0x50] sm:$0xff] %vm5049_vm7, %v8351_v58  ;;  %v8352_v47 = vmax.f32 %v8320_v3, 0.0 }
 0x64a   : > { %8381 = vst.msk [vmem:[%s12370_s22 + $0x40] sm:$0xff] %vm5049_vm7, %v8349_v25  ;;  %v8350_v51 = vmax.f32 %v8318_v23, 0.0 }
 0x64b   : > { %8384 = vst.msk [vmem:[%s12370_s22 + $0x58] sm:$0xff] %vm5049_vm7, %v8352_v47 }
 0x64c   : > { %8382 = vst.msk [vmem:[%s12370_s22 + $0x48] sm:$0xff] %vm5049_vm7, %v8350_v51  ;;  %v9738_v17 = vpop.f32.mrb[12].mxu1 }
 0x64d   : > { %v8323_v52 = vadd.f32 %v9738_v17, %v12363_v28  ;;  %v8191_v1 = vpop.f32.mrb[13].mxu1 }
 0x64e   : > { %v8321_v5 = vadd.f32 %v12363_v28, %v8191_v1  ;;  %v9739_v40 = vpop.f32.mrb[14].mxu1 }
 0x64f   : > { %v8355_v8 = vmax.f32 %v8323_v52, 0.0  ;;  %v8324_v39 = vadd.f32 %v9739_v40, %v12363_v28  ;;  %v8194_v42 = vpop.f32.mrb[15].mxu1 }
 0x650   : > { %v8353_v36 = vmax.f32 %v8321_v5, 0.0  ;;  %v8322_v41 = vadd.f32 %v12363_v28, %v8194_v42 }
 0x651   : > { %8387 = vst.msk [vmem:[%s12370_s22 + $0x70] sm:$0xff] %vm5049_vm7, %v8355_v8  ;;  %v8356_v59 = vmax.f32 %v8324_v39, 0.0 }
 0x652   : > { %8385 = vst.msk [vmem:[%s12370_s22 + $0x60] sm:$0xff] %vm5049_vm7, %v8353_v36  ;;  %v8354_v56 = vmax.f32 %v8322_v41, 0.0 }
 0x653   : > { %8388 = vst.msk [vmem:[%s12370_s22 + $0x78] sm:$0xff] %vm5049_vm7, %v8356_v59 }
 0x654   : > { %8386 = vst.msk [vmem:[%s12370_s22 + $0x68] sm:$0xff] %vm5049_vm7, %v8354_v56  ;;  %v9742_v55 = vpop.f32.mrb[16].mxu1 }
 0x655   : > { %v8327_v21 = vadd.f32 %v9742_v55, %v12363_v28  ;;  %v8207_v7 = vpop.f32.mrb[17].mxu1 }
 0x656   : > { %v8325_v4 = vadd.f32 %v12363_v28, %v8207_v7  ;;  %v9743_v20 = vpop.f32.mrb[18].mxu1 }
 0x657   : > { %v8359_v57 = vmax.f32 %v8327_v21, 0.0  ;;  %v8328_v54 = vadd.f32 %v9743_v20, %v12363_v28  ;;  %v8210_v61 = vpop.f32.mrb[19].mxu1 }
 0x658   : > { %v8357_v48 = vmax.f32 %v8325_v4, 0.0  ;;  %v8326_v13 = vadd.f32 %v12363_v28, %v8210_v61 }
 0x659   : > { %8391 = vst.msk [vmem:[%s12370_s22 + $0x90] sm:$0xff] %vm5049_vm7, %v8359_v57  ;;  %v8360_v15 = vmax.f32 %v8328_v54, 0.0 }
 0x65a   : > { %8389 = vst.msk [vmem:[%s12370_s22 + $0x80] sm:$0xff] %vm5049_vm7, %v8357_v48  ;;  %v8358_v6 = vmax.f32 %v8326_v13, 0.0 }
 0x65b   : > { %8392 = vst.msk [vmem:[%s12370_s22 + $0x98] sm:$0xff] %vm5049_vm7, %v8360_v15 }
 0x65c   : > { %8390 = vst.msk [vmem:[%s12370_s22 + $0x88] sm:$0xff] %vm5049_vm7, %v8358_v6  ;;  %v9746_v22 = vpop.f32.mrb[20].mxu1 }
 0x65d   : > { %v8331_v31 = vadd.f32 %v9746_v22, %v12363_v28  ;;  %v8223_v38 = vpop.f32.mrb[21].mxu1 }
 0x65e   : > { %v8329_v49 = vadd.f32 %v12363_v28, %v8223_v38  ;;  %v9747_v50 = vpop.f32.mrb[22].mxu1 }
 0x65f   : > { %v8363_v12 = vmax.f32 %v8331_v31, 0.0  ;;  %v8332_v44 = vadd.f32 %v9747_v50, %v12363_v28  ;;  %v8226_v60 = vpop.f32.mrb[23].mxu1 }
 0x660   : > { %v8361_v53 = vmax.f32 %v8329_v49, 0.0  ;;  %v8330_v24 = vadd.f32 %v12363_v28, %v8226_v60 }
 0x661   : > { %8395 = vst.msk [vmem:[%s12370_s22 + $0xb0] sm:$0xff] %vm5049_vm7, %v8363_v12  ;;  %v8364_v16 = vmax.f32 %v8332_v44, 0.0 }
 0x662   : > { %8393 = vst.msk [vmem:[%s12370_s22 + $0xa0] sm:$0xff] %vm5049_vm7, %v8361_v53  ;;  %v8362_v43 = vmax.f32 %v8330_v24, 0.0 }
 0x663   : > { %8396 = vst.msk [vmem:[%s12370_s22 + $0xb8] sm:$0xff] %vm5049_vm7, %v8364_v16 }
 0x664   : > { %8394 = vst.msk [vmem:[%s12370_s22 + $0xa8] sm:$0xff] %vm5049_vm7, %v8362_v43  ;;  %v9750_v26 = vpop.f32.mrb[24].mxu1 }
 0x665   : > { %v8335_v11 = vadd.f32 %v9750_v26, %v12363_v28  ;;  %v8239_v18 = vpop.f32.mrb[25].mxu1 }
 0x666   : > { %v8333_v33 = vadd.f32 %v12363_v28, %v8239_v18  ;;  %v9751_v35 = vpop.f32.mrb[26].mxu1 }
 0x667   : > { %v8367_v62 = vmax.f32 %v8335_v11, 0.0  ;;  %v8336_v14 = vadd.f32 %v9751_v35, %v12363_v28  ;;  %v8242_v45 = vpop.f32.mrb[27].mxu1 }
 0x668   : > { %v8365_v2 = vmax.f32 %v8333_v33, 0.0  ;;  %v8334_v34 = vadd.f32 %v12363_v28, %v8242_v45 }
 0x669   : > { %8399 = vst.msk [vmem:[%s12370_s22 + $0xd0] sm:$0xff] %vm5049_vm7, %v8367_v62  ;;  %v8368_v0 = vmax.f32 %v8336_v14, 0.0 }
 0x66a   : > { %8397 = vst.msk [vmem:[%s12370_s22 + $0xc0] sm:$0xff] %vm5049_vm7, %v8365_v2  ;;  %v8366_v37 = vmax.f32 %v8334_v34, 0.0 }
 0x66b   : > { %8400 = vst.msk [vmem:[%s12370_s22 + $0xd8] sm:$0xff] %vm5049_vm7, %v8368_v0 }
 0x66c   : > { %8398 = vst.msk [vmem:[%s12370_s22 + $0xc8] sm:$0xff] %vm5049_vm7, %v8366_v37  ;;  %v9754_v46 = vpop.f32.mrb[28].mxu1 }
 0x66d   : > { %v8339_v32 = vadd.f32 %v9754_v46, %v12363_v28  ;;  %v8255_v63 = vpop.f32.mrb[29].mxu1 }
 0x66e   : > { %v8337_v19 = vadd.f32 %v12363_v28, %v8255_v63  ;;  %v9755_v10 = vpop.f32.mrb[30].mxu1 }
 0x66f   : > { %v8371_v30 = vmax.f32 %v8339_v32, 0.0  ;;  %v8340_v27 = vadd.f32 %v9755_v10, %v12363_v28  ;;  %v8258_v9 = vpop.f32.mrb[31].mxu1 }
 0x670   : > { %v8369_v58 = vmax.f32 %v8337_v19, 0.0  ;;  %v8338_v3 = vadd.f32 %v12363_v28, %v8258_v9 }
 0x671   : > { %8403 = vst.msk [vmem:[%s12370_s22 + $0xf0] sm:$0xff] %vm5049_vm7, %v8371_v30  ;;  %v8372_v29 = vmax.f32 %v8340_v27, 0.0 }
 0x672   : > { %8401 = vst.msk [vmem:[%s12370_s22 + $0xe0] sm:$0xff] %vm5049_vm7, %v8369_v58  ;;  %v8370_v25 = vmax.f32 %v8338_v3, 0.0 }
 0x673   : > { %8404 = vst.msk [vmem:[%s12370_s22 + $0xf8] sm:$0xff] %vm5049_vm7, %v8372_v29 }
 0x674   : > { %8402 = vst.msk [vmem:[%s12370_s22 + $0xe8] sm:$0xff] %vm5049_vm7, %v8370_v25 }
 0x675 PF: > { %s18_s27 = sadd.s32 1, %s10369_s27  }
 0x676   : > { %p15_p4 = scmp.ge.s32.totalorder %s18_s27, 4  }
 0x678   :  { %17 = sbr.rel (!%p15_p4) target bundleno = 1 (0x1), region = 101 }

</bundles_post_ra>
